<compile_context>
chip_gen: v5e
topology: v5e:2x2
jax: 0.10.0
libtpu: 0.0.40
codegen_flags: <defaults>
</compile_context>

<pallas_src>
import functools

import jax
import jax.numpy as jnp
from jax.experimental import pallas as pl
from jax.experimental.pallas import tpu as pltpu


# ----------------------------------------------------------------------------
# Pallas kernel: fused (W @ patches^T) + bias + activation, lane-dense output
# ----------------------------------------------------------------------------
def _matmul_bias_act_kernel(w_ref, p_ref, b_ref, o_ref, *, act):
    acc = jnp.dot(w_ref[...], p_ref[...], preferred_element_type=jnp.float32)
    acc = acc + b_ref[...]                    # (R, 1) broadcast along lanes
    if act == "relu":
        acc = jnp.maximum(acc, 0.0)
    elif act == "sigmoid":
        acc = jax.nn.sigmoid(acc)
    o_ref[...] = acc.astype(o_ref.dtype)


def matmul_bias_act(w, p, b, act, out_dtype):
    """w: (R, K), p: (K, M), b: (R,)  ->  act(w @ p + b[:, None]) as (R, M).

    R (output channels / channel*tap rows) is small; M (batch*spatial) is the
    large dimension and sits on the lane axis of the output.
    """
    R, K = w.shape
    K2, M = p.shape
    assert K == K2
    bias2d = b.reshape(R, 1).astype(jnp.float32)
    return pl.pallas_call(
        functools.partial(_matmul_bias_act_kernel, act=act),
        out_shape=jax.ShapeDtypeStruct((R, M), out_dtype),
        grid_spec=pltpu.PrefetchScalarGridSpec(
            num_scalar_prefetch=0,
            grid=(1,),                                    # whole layer = 1 step
            in_specs=[
                pl.BlockSpec((R, K), lambda i: (0, 0)),   # packed weights
                pl.BlockSpec((K, M), lambda i: (0, 0)),   # patches^T / x^T
                pl.BlockSpec((R, 1), lambda i: (0, 0)),   # bias column
            ],
            out_specs=pl.BlockSpec((R, M), lambda i: (0, 0)),
        ),
        compiler_params=pltpu.CompilerParams(
            dimension_semantics=("arbitrary",)),
    )(w.astype(jnp.bfloat16), p.astype(jnp.bfloat16), bias2d)


# ----------------------------------------------------------------------------
# Conv / ConvTranspose built on the Pallas matmul kernel
# ----------------------------------------------------------------------------
def conv2d(x, w_packed, b, kh, kw, stride, act, out_dtype):
    """x: (Cin, N, H, W); w_packed: (Cout, KH*KW*Cin); 'valid' padding."""
    C, N, H, W = x.shape
    Cout = w_packed.shape[0]
    oh = (H - kh) // stride + 1
    ow = (W - kw) // stride + 1
    # TODO(synk): the im2col gather stays in XLA glue; a fully in-kernel gather
    # would need awkward relayouts that are not worth it at these sizes.
    cols = []
    for ki in range(kh):
        for kj in range(kw):
            cols.append(x[:, :, ki:ki + (oh - 1) * stride + 1:stride,
                                 kj:kj + (ow - 1) * stride + 1:stride])
    # (KH*KW, Cin, N, oh, ow) -> (KH*KW*Cin, N*oh*ow); row = (ki*KW+kj)*Cin + c
    patches = jnp.stack(cols, axis=0).reshape(kh * kw * C, N * oh * ow)
    y = matmul_bias_act(w_packed, patches, b, act, out_dtype)   # (Cout, M)
    return y.reshape(Cout, N, oh, ow)


def conv_transpose2d(x, wt_packed, b, kh, kw, stride, act, out_dtype):
    """x: (Cin, N, H, W); wt_packed: (Cout*KH*KW, Cin).

    Matches PyTorch ConvTranspose2d(padding=0, output_padding=0): one dense
    matmul over the real (non-dilated) input, then a strided col2im
    scatter-add, bias and activation.
    """
    C, N, H, W = x.shape
    R = wt_packed.shape[0]
    Cout = R // (kh * kw)
    oh = (H - 1) * stride + kh
    ow = (W - 1) * stride + kw
    y = matmul_bias_act(wt_packed, x.reshape(C, N * H * W),
                        jnp.zeros((R,), jnp.float32), "none", jnp.float32)
    y = y.reshape(Cout, kh, kw, N, H, W)
    # TODO(synk): overlapping strided col2im scatter-add + bias/act remain in
    # XLA; there is no clean single-kernel Pallas equivalent for this scatter.
    out = jnp.zeros((Cout, N, oh, ow), jnp.float32)
    for ki in range(kh):
        for kj in range(kw):
            out = out.at[:, :, ki:ki + (H - 1) * stride + 1:stride,
                               kj:kj + (W - 1) * stride + 1:stride].add(y[:, ki, kj])
    out = out + b.reshape(Cout, 1, 1, 1).astype(jnp.float32)
    if act == "relu":
        out = jnp.maximum(out, 0.0)
    elif act == "sigmoid":
        out = jax.nn.sigmoid(out)
    return out.astype(out_dtype)


# ----------------------------------------------------------------------------
# AE forward pass (matches the PyTorch module's encoder/decoder stack)
# ----------------------------------------------------------------------------
def ae_forward(packed, x_nchw):
    (w1, b1), (w2, b2), (w3, b3), (w4, b4), \
        (t1, c1), (t2, c2), (t3, c3) = packed
    # NCHW -> (C, N, H, W); bf16 activations (f32 accumulation inside kernels).
    x = jnp.transpose(x_nchw.astype(jnp.float32), (1, 0, 2, 3)).astype(jnp.bfloat16)
    # encoder
    x = conv2d(x, w1, b1, 3, 3, 1, "relu", jnp.bfloat16)   # Conv2d(1, 8, 3)   + ReLU
    x = conv2d(x, w2, b2, 5, 5, 1, "relu", jnp.bfloat16)   # Conv2d(8, 16, 5)  + ReLU
    x = conv2d(x, w3, b3, 5, 5, 2, "relu", jnp.bfloat16)   # Conv2d(16, 32, 5, s=2) + ReLU
    x = conv2d(x, w4, b4, 2, 2, 2, "relu", jnp.bfloat16)   # Conv2d(32, 64, 2, s=2) + ReLU
    # decoder
    x = conv_transpose2d(x, t1, c1, 3, 3, 2, "relu", jnp.bfloat16)    # ConvT(64,16,3,s=2)+ReLU
    x = conv_transpose2d(x, t2, c2, 5, 5, 2, "relu", jnp.bfloat16)    # ConvT(16, 8,5,s=2)+ReLU
    x = conv_transpose2d(x, t3, c3, 8, 8, 1, "sigmoid", jnp.float32)  # ConvT( 8, 1,8,s=1)+Sigmoid
    return jnp.transpose(x, (1, 0, 2, 3))                  # (C,N,H,W) -> NCHW


# ----------------------------------------------------------------------------
# Parameter init (PyTorch layouts) + one-time prepacking for the kernels
# ----------------------------------------------------------------------------
def _init_conv(key, cout, cin, k):
    k1, k2 = jax.random.split(key)
    bound = 1.0 / (cin * k * k) ** 0.5
    w = jax.random.uniform(k1, (cout, cin, k, k), jnp.float32, -bound, bound)
    b = jax.random.uniform(k2, (cout,), jnp.float32, -bound, bound)
    return w, b


def _init_convt(key, cin, cout, k):
    k1, k2 = jax.random.split(key)
    bound = 1.0 / (cout * k * k) ** 0.5
    w = jax.random.uniform(k1, (cin, cout, k, k), jnp.float32, -bound, bound)
    b = jax.random.uniform(k2, (cout,), jnp.float32, -bound, bound)
    return w, b


def init_params(key):
    keys = jax.random.split(key, 7)
    return (
        _init_conv(keys[0], 8, 1, 3),
        _init_conv(keys[1], 16, 8, 5),
        _init_conv(keys[2], 32, 16, 5),
        _init_conv(keys[3], 64, 32, 2),
        _init_convt(keys[4], 64, 16, 3),
        _init_convt(keys[5], 16, 8, 5),
        _init_convt(keys[6], 8, 1, 8),
    )


def prepack_params(params):
    """Hoist all weight transposes/reshapes out of the forward pass (run once)."""
    (w1, b1), (w2, b2), (w3, b3), (w4, b4), (t1, c1), (t2, c2), (t3, c3) = params

    def pack_conv(w):                       # (Cout, Cin, KH, KW) -> (Cout, KH*KW*Cin)
        co, ci, kh, kw = w.shape
        return jnp.transpose(w, (0, 2, 3, 1)).reshape(co, kh * kw * ci).astype(jnp.bfloat16)

    def pack_convt(w):                      # (Cin, Cout, KH, KW) -> (Cout*KH*KW, Cin)
        ci, co, kh, kw = w.shape
        return jnp.transpose(w, (1, 2, 3, 0)).reshape(co * kh * kw, ci).astype(jnp.bfloat16)

    return (
        (pack_conv(w1), b1), (pack_conv(w2), b2),
        (pack_conv(w3), b3), (pack_conv(w4), b4),
        (pack_convt(t1), c1), (pack_convt(t2), c2), (pack_convt(t3), c3),
    )


if __name__ == "__main__":
    key = jax.random.PRNGKey(0)
    pkey, xkey = jax.random.split(key)
    params = init_params(pkey)
    packed = prepack_params(params)      # done once, outside the hot path
    # MNIST-like input implied by the layer stack: 28x28 -> 4x4x64 -> 28x28
    x = jax.random.normal(xkey, (2, 1, 28, 28), dtype=jnp.float32)

    out = jax.jit(ae_forward)(packed, x)
    out = jax.block_until_ready(out)

    assert out.shape == (2, 1, 28, 28), out.shape
    assert out.dtype == jnp.float32
    assert bool(jnp.all(jnp.isfinite(out)))
    assert bool(jnp.all((out >= 0.0) & (out <= 1.0)))  # sigmoid output range
    print("KERNEL_OK")
</pallas_src>

<mosaic_0001>
module attributes {stable_mosaic.version = 11 : i64} {
  func.func @_matmul_bias_act_kernel(%arg0: i32, %arg1: memref<8x9xbf16, #tpu.memory_space<vmem>>, %arg2: memref<9x1352xbf16, #tpu.memory_space<vmem>>, %arg3: memref<8x1xf32, #tpu.memory_space<vmem>>, %arg4: memref<8x1352xbf16, #tpu.memory_space<vmem>>) attributes {dimension_semantics = [#tpu.dimension_semantics<arbitrary>], iteration_bounds = array<i64: 1>, scalar_prefetch = 0 : i64, scratch_operands = 0 : i64, tpu.core_type = #tpu.core_type<tc>, window_params = [{pipeline_mode = #tpu.pipeline_mode<synchronous>, transform_indices = @transform_0, window_bounds = array<i64: 8, 9>}, {pipeline_mode = #tpu.pipeline_mode<synchronous>, transform_indices = @transform_1, window_bounds = array<i64: 9, 1352>}, {pipeline_mode = #tpu.pipeline_mode<synchronous>, transform_indices = @transform_2, window_bounds = array<i64: 8, 1>}, {pipeline_mode = #tpu.pipeline_mode<synchronous>, transform_indices = @transform_3, window_bounds = array<i64: 8, 1352>}]} {
    %c0 = arith.constant 0 : index
    %c0_0 = arith.constant 0 : index
    %0 = vector.load %arg1[%c0, %c0_0] : memref<8x9xbf16, #tpu.memory_space<vmem>>, vector<8x9xbf16>
    %c0_1 = arith.constant 0 : index
    %c0_2 = arith.constant 0 : index
    %1 = vector.load %arg2[%c0_1, %c0_2] : memref<9x1352xbf16, #tpu.memory_space<vmem>>, vector<9x1352xbf16>
    %cst = arith.constant dense<0.000000e+00> : vector<8x1352xf32>
    %2 = tpu.matmul %0, %1, %cst {dimension_numbers = #tpu.dot_dimension_numbers<[1], [0], [0], [1], [0, 0, 1, 1], [], []>} : vector<8x9xbf16>, vector<9x1352xbf16>, vector<8x1352xf32> -> vector<8x1352xf32>
    %c0_3 = arith.constant 0 : index
    %c0_4 = arith.constant 0 : index
    %3 = vector.load %arg3[%c0_3, %c0_4] : memref<8x1xf32, #tpu.memory_space<vmem>>, vector<8x1xf32>
    %4 = vector.broadcast %3 : vector<8x1xf32> to vector<8x1352xf32>
    %5 = arith.addf %2, %4 : vector<8x1352xf32>
    %cst_5 = arith.constant 0.000000e+00 : f32
    %6 = vector.broadcast %cst_5 : f32 to vector<8x1352xf32>
    %7 = arith.maximumf %5, %6 : vector<8x1352xf32>
    %8 = arith.truncf %7 : vector<8x1352xf32> to vector<8x1352xbf16>
    %c0_6 = arith.constant 0 : index
    %c0_7 = arith.constant 0 : index
    %9 = vector.load %arg4[%c0_6, %c0_7] : memref<8x1352xbf16, #tpu.memory_space<vmem>>, vector<8x1352xbf16>
    tpu.vector_store %arg4[%c0_6, %c0_7], %8 {strides = array<i32>} : memref<8x1352xbf16, #tpu.memory_space<vmem>>, vector<8x1352xbf16>,
    return
  }
  func.func @transform_0(%arg0: i32) -> (i32, i32) {
    %c0_i32 = arith.constant 0 : i32
    %c0_i32_0 = arith.constant 0 : i32
    %c0_i32_1 = arith.constant 0 : i32
    return %c0_i32, %c0_i32_0 : i32, i32
  }
  func.func @transform_1(%arg0: i32) -> (i32, i32) {
    %c0_i32 = arith.constant 0 : i32
    %c0_i32_0 = arith.constant 0 : i32
    %c0_i32_1 = arith.constant 0 : i32
    return %c0_i32, %c0_i32_0 : i32, i32
  }
  func.func @transform_2(%arg0: i32) -> (i32, i32) {
    %c0_i32 = arith.constant 0 : i32
    %c0_i32_0 = arith.constant 0 : i32
    %c0_i32_1 = arith.constant 0 : i32
    return %c0_i32, %c0_i32_0 : i32, i32
  }
  func.func @transform_3(%arg0: i32) -> (i32, i32) {
    %c0_i32 = arith.constant 0 : i32
    %c0_i32_0 = arith.constant 0 : i32
    %c0_i32_1 = arith.constant 0 : i32
    return %c0_i32, %c0_i32_0 : i32, i32
  }
}

module attributes {stable_mosaic.version = 11 : i64} {
  func.func @_matmul_bias_act_kernel(%arg0: i32, %arg1: memref<16x200xbf16, #tpu.memory_space<vmem>>, %arg2: memref<200x968xbf16, #tpu.memory_space<vmem>>, %arg3: memref<16x1xf32, #tpu.memory_space<vmem>>, %arg4: memref<16x968xbf16, #tpu.memory_space<vmem>>) attributes {dimension_semantics = [#tpu.dimension_semantics<arbitrary>], iteration_bounds = array<i64: 1>, scalar_prefetch = 0 : i64, scratch_operands = 0 : i64, tpu.core_type = #tpu.core_type<tc>, window_params = [{pipeline_mode = #tpu.pipeline_mode<synchronous>, transform_indices = @transform_0, window_bounds = array<i64: 16, 200>}, {pipeline_mode = #tpu.pipeline_mode<synchronous>, transform_indices = @transform_1, window_bounds = array<i64: 200, 968>}, {pipeline_mode = #tpu.pipeline_mode<synchronous>, transform_indices = @transform_2, window_bounds = array<i64: 16, 1>}, {pipeline_mode = #tpu.pipeline_mode<synchronous>, transform_indices = @transform_3, window_bounds = array<i64: 16, 968>}]} {
    %c0 = arith.constant 0 : index
    %c0_0 = arith.constant 0 : index
    %0 = vector.load %arg1[%c0, %c0_0] : memref<16x200xbf16, #tpu.memory_space<vmem>>, vector<16x200xbf16>
    %c0_1 = arith.constant 0 : index
    %c0_2 = arith.constant 0 : index
    %1 = vector.load %arg2[%c0_1, %c0_2] : memref<200x968xbf16, #tpu.memory_space<vmem>>, vector<200x968xbf16>
    %cst = arith.constant dense<0.000000e+00> : vector<16x968xf32>
    %2 = tpu.matmul %0, %1, %cst {dimension_numbers = #tpu.dot_dimension_numbers<[1], [0], [0], [1], [0, 0, 1, 1], [], []>} : vector<16x200xbf16>, vector<200x968xbf16>, vector<16x968xf32> -> vector<16x968xf32>
    %c0_3 = arith.constant 0 : index
    %c0_4 = arith.constant 0 : index
    %3 = vector.load %arg3[%c0_3, %c0_4] : memref<16x1xf32, #tpu.memory_space<vmem>>, vector<16x1xf32>
    %4 = vector.broadcast %3 : vector<16x1xf32> to vector<16x968xf32>
    %5 = arith.addf %2, %4 : vector<16x968xf32>
    %cst_5 = arith.constant 0.000000e+00 : f32
    %6 = vector.broadcast %cst_5 : f32 to vector<16x968xf32>
    %7 = arith.maximumf %5, %6 : vector<16x968xf32>
    %8 = arith.truncf %7 : vector<16x968xf32> to vector<16x968xbf16>
    %c0_6 = arith.constant 0 : index
    %c0_7 = arith.constant 0 : index
    %9 = vector.load %arg4[%c0_6, %c0_7] : memref<16x968xbf16, #tpu.memory_space<vmem>>, vector<16x968xbf16>
    tpu.vector_store %arg4[%c0_6, %c0_7], %8 {strides = array<i32>} : memref<16x968xbf16, #tpu.memory_space<vmem>>, vector<16x968xbf16>,
    return
  }
  func.func @transform_0(%arg0: i32) -> (i32, i32) {
    %c0_i32 = arith.constant 0 : i32
    %c0_i32_0 = arith.constant 0 : i32
    %c0_i32_1 = arith.constant 0 : i32
    return %c0_i32, %c0_i32_0 : i32, i32
  }
  func.func @transform_1(%arg0: i32) -> (i32, i32) {
    %c0_i32 = arith.constant 0 : i32
    %c0_i32_0 = arith.constant 0 : i32
    %c0_i32_1 = arith.constant 0 : i32
    return %c0_i32, %c0_i32_0 : i32, i32
  }
  func.func @transform_2(%arg0: i32) -> (i32, i32) {
    %c0_i32 = arith.constant 0 : i32
    %c0_i32_0 = arith.constant 0 : i32
    %c0_i32_1 = arith.constant 0 : i32
    return %c0_i32, %c0_i32_0 : i32, i32
  }
  func.func @transform_3(%arg0: i32) -> (i32, i32) {
    %c0_i32 = arith.constant 0 : i32
    %c0_i32_0 = arith.constant 0 : i32
    %c0_i32_1 = arith.constant 0 : i32
    return %c0_i32, %c0_i32_0 : i32, i32
  }
}

module attributes {stable_mosaic.version = 11 : i64} {
  func.func @_matmul_bias_act_kernel(%arg0: i32, %arg1: memref<32x400xbf16, #tpu.memory_space<vmem>>, %arg2: memref<400x162xbf16, #tpu.memory_space<vmem>>, %arg3: memref<32x1xf32, #tpu.memory_space<vmem>>, %arg4: memref<32x162xbf16, #tpu.memory_space<vmem>>) attributes {dimension_semantics = [#tpu.dimension_semantics<arbitrary>], iteration_bounds = array<i64: 1>, scalar_prefetch = 0 : i64, scratch_operands = 0 : i64, tpu.core_type = #tpu.core_type<tc>, window_params = [{pipeline_mode = #tpu.pipeline_mode<synchronous>, transform_indices = @transform_0, window_bounds = array<i64: 32, 400>}, {pipeline_mode = #tpu.pipeline_mode<synchronous>, transform_indices = @transform_1, window_bounds = array<i64: 400, 162>}, {pipeline_mode = #tpu.pipeline_mode<synchronous>, transform_indices = @transform_2, window_bounds = array<i64: 32, 1>}, {pipeline_mode = #tpu.pipeline_mode<synchronous>, transform_indices = @transform_3, window_bounds = array<i64: 32, 162>}]} {
    %c0 = arith.constant 0 : index
    %c0_0 = arith.constant 0 : index
    %0 = vector.load %arg1[%c0, %c0_0] : memref<32x400xbf16, #tpu.memory_space<vmem>>, vector<32x400xbf16>
    %c0_1 = arith.constant 0 : index
    %c0_2 = arith.constant 0 : index
    %1 = vector.load %arg2[%c0_1, %c0_2] : memref<400x162xbf16, #tpu.memory_space<vmem>>, vector<400x162xbf16>
    %cst = arith.constant dense<0.000000e+00> : vector<32x162xf32>
    %2 = tpu.matmul %0, %1, %cst {dimension_numbers = #tpu.dot_dimension_numbers<[1], [0], [0], [1], [0, 0, 1, 1], [], []>} : vector<32x400xbf16>, vector<400x162xbf16>, vector<32x162xf32> -> vector<32x162xf32>
    %c0_3 = arith.constant 0 : index
    %c0_4 = arith.constant 0 : index
    %3 = vector.load %arg3[%c0_3, %c0_4] : memref<32x1xf32, #tpu.memory_space<vmem>>, vector<32x1xf32>
    %4 = vector.broadcast %3 : vector<32x1xf32> to vector<32x162xf32>
    %5 = arith.addf %2, %4 : vector<32x162xf32>
    %cst_5 = arith.constant 0.000000e+00 : f32
    %6 = vector.broadcast %cst_5 : f32 to vector<32x162xf32>
    %7 = arith.maximumf %5, %6 : vector<32x162xf32>
    %8 = arith.truncf %7 : vector<32x162xf32> to vector<32x162xbf16>
    %c0_6 = arith.constant 0 : index
    %c0_7 = arith.constant 0 : index
    %9 = vector.load %arg4[%c0_6, %c0_7] : memref<32x162xbf16, #tpu.memory_space<vmem>>, vector<32x162xbf16>
    tpu.vector_store %arg4[%c0_6, %c0_7], %8 {strides = array<i32>} : memref<32x162xbf16, #tpu.memory_space<vmem>>, vector<32x162xbf16>,
    return
  }
  func.func @transform_0(%arg0: i32) -> (i32, i32) {
    %c0_i32 = arith.constant 0 : i32
    %c0_i32_0 = arith.constant 0 : i32
    %c0_i32_1 = arith.constant 0 : i32
    return %c0_i32, %c0_i32_0 : i32, i32
  }
  func.func @transform_1(%arg0: i32) -> (i32, i32) {
    %c0_i32 = arith.constant 0 : i32
    %c0_i32_0 = arith.constant 0 : i32
    %c0_i32_1 = arith.constant 0 : i32
    return %c0_i32, %c0_i32_0 : i32, i32
  }
  func.func @transform_2(%arg0: i32) -> (i32, i32) {
    %c0_i32 = arith.constant 0 : i32
    %c0_i32_0 = arith.constant 0 : i32
    %c0_i32_1 = arith.constant 0 : i32
    return %c0_i32, %c0_i32_0 : i32, i32
  }
  func.func @transform_3(%arg0: i32) -> (i32, i32) {
    %c0_i32 = arith.constant 0 : i32
    %c0_i32_0 = arith.constant 0 : i32
    %c0_i32_1 = arith.constant 0 : i32
    return %c0_i32, %c0_i32_0 : i32, i32
  }
}

module attributes {stable_mosaic.version = 11 : i64} {
  func.func @_matmul_bias_act_kernel(%arg0: i32, %arg1: memref<64x128xbf16, #tpu.memory_space<vmem>>, %arg2: memref<128x32xbf16, #tpu.memory_space<vmem>>, %arg3: memref<64x1xf32, #tpu.memory_space<vmem>>, %arg4: memref<64x32xbf16, #tpu.memory_space<vmem>>) attributes {dimension_semantics = [#tpu.dimension_semantics<arbitrary>], iteration_bounds = array<i64: 1>, scalar_prefetch = 0 : i64, scratch_operands = 0 : i64, tpu.core_type = #tpu.core_type<tc>, window_params = [{pipeline_mode = #tpu.pipeline_mode<synchronous>, transform_indices = @transform_0, window_bounds = array<i64: 64, 128>}, {pipeline_mode = #tpu.pipeline_mode<synchronous>, transform_indices = @transform_1, window_bounds = array<i64: 128, 32>}, {pipeline_mode = #tpu.pipeline_mode<synchronous>, transform_indices = @transform_2, window_bounds = array<i64: 64, 1>}, {pipeline_mode = #tpu.pipeline_mode<synchronous>, transform_indices = @transform_3, window_bounds = array<i64: 64, 32>}]} {
    %c0 = arith.constant 0 : index
    %c0_0 = arith.constant 0 : index
    %0 = vector.load %arg1[%c0, %c0_0] : memref<64x128xbf16, #tpu.memory_space<vmem>>, vector<64x128xbf16>
    %c0_1 = arith.constant 0 : index
    %c0_2 = arith.constant 0 : index
    %1 = vector.load %arg2[%c0_1, %c0_2] : memref<128x32xbf16, #tpu.memory_space<vmem>>, vector<128x32xbf16>
    %cst = arith.constant dense<0.000000e+00> : vector<64x32xf32>
    %2 = tpu.matmul %0, %1, %cst {dimension_numbers = #tpu.dot_dimension_numbers<[1], [0], [0], [1], [0, 0, 1, 1], [], []>} : vector<64x128xbf16>, vector<128x32xbf16>, vector<64x32xf32> -> vector<64x32xf32>
    %c0_3 = arith.constant 0 : index
    %c0_4 = arith.constant 0 : index
    %3 = vector.load %arg3[%c0_3, %c0_4] : memref<64x1xf32, #tpu.memory_space<vmem>>, vector<64x1xf32>
    %4 = vector.broadcast %3 : vector<64x1xf32> to vector<64x32xf32>
    %5 = arith.addf %2, %4 : vector<64x32xf32>
    %cst_5 = arith.constant 0.000000e+00 : f32
    %6 = vector.broadcast %cst_5 : f32 to vector<64x32xf32>
    %7 = arith.maximumf %5, %6 : vector<64x32xf32>
    %8 = arith.truncf %7 : vector<64x32xf32> to vector<64x32xbf16>
    %c0_6 = arith.constant 0 : index
    %c0_7 = arith.constant 0 : index
    %9 = vector.load %arg4[%c0_6, %c0_7] : memref<64x32xbf16, #tpu.memory_space<vmem>>, vector<64x32xbf16>
    tpu.vector_store %arg4[%c0_6, %c0_7], %8 {strides = array<i32>} : memref<64x32xbf16, #tpu.memory_space<vmem>>, vector<64x32xbf16>,
    return
  }
  func.func @transform_0(%arg0: i32) -> (i32, i32) {
    %c0_i32 = arith.constant 0 : i32
    %c0_i32_0 = arith.constant 0 : i32
    %c0_i32_1 = arith.constant 0 : i32
    return %c0_i32, %c0_i32_0 : i32, i32
  }
  func.func @transform_1(%arg0: i32) -> (i32, i32) {
    %c0_i32 = arith.constant 0 : i32
    %c0_i32_0 = arith.constant 0 : i32
    %c0_i32_1 = arith.constant 0 : i32
    return %c0_i32, %c0_i32_0 : i32, i32
  }
  func.func @transform_2(%arg0: i32) -> (i32, i32) {
    %c0_i32 = arith.constant 0 : i32
    %c0_i32_0 = arith.constant 0 : i32
    %c0_i32_1 = arith.constant 0 : i32
    return %c0_i32, %c0_i32_0 : i32, i32
  }
  func.func @transform_3(%arg0: i32) -> (i32, i32) {
    %c0_i32 = arith.constant 0 : i32
    %c0_i32_0 = arith.constant 0 : i32
    %c0_i32_1 = arith.constant 0 : i32
    return %c0_i32, %c0_i32_0 : i32, i32
  }
}

module attributes {stable_mosaic.version = 11 : i64} {
  func.func @_matmul_bias_act_kernel(%arg0: i32, %arg1: memref<144x64xbf16, #tpu.memory_space<vmem>>, %arg2: memref<64x32xbf16, #tpu.memory_space<vmem>>, %arg3: memref<144x1xf32, #tpu.memory_space<vmem>>, %arg4: memref<144x32xf32, #tpu.memory_space<vmem>>) attributes {dimension_semantics = [#tpu.dimension_semantics<arbitrary>], iteration_bounds = array<i64: 1>, scalar_prefetch = 0 : i64, scratch_operands = 0 : i64, tpu.core_type = #tpu.core_type<tc>, window_params = [{pipeline_mode = #tpu.pipeline_mode<synchronous>, transform_indices = @transform_0, window_bounds = array<i64: 144, 64>}, {pipeline_mode = #tpu.pipeline_mode<synchronous>, transform_indices = @transform_1, window_bounds = array<i64: 64, 32>}, {pipeline_mode = #tpu.pipeline_mode<synchronous>, transform_indices = @transform_2, window_bounds = array<i64: 144, 1>}, {pipeline_mode = #tpu.pipeline_mode<synchronous>, transform_indices = @transform_3, window_bounds = array<i64: 144, 32>}]} {
    %c0 = arith.constant 0 : index
    %c0_0 = arith.constant 0 : index
    %0 = vector.load %arg1[%c0, %c0_0] : memref<144x64xbf16, #tpu.memory_space<vmem>>, vector<144x64xbf16>
    %c0_1 = arith.constant 0 : index
    %c0_2 = arith.constant 0 : index
    %1 = vector.load %arg2[%c0_1, %c0_2] : memref<64x32xbf16, #tpu.memory_space<vmem>>, vector<64x32xbf16>
    %cst = arith.constant dense<0.000000e+00> : vector<144x32xf32>
    %2 = tpu.matmul %0, %1, %cst {dimension_numbers = #tpu.dot_dimension_numbers<[1], [0], [0], [1], [0, 0, 1, 1], [], []>} : vector<144x64xbf16>, vector<64x32xbf16>, vector<144x32xf32> -> vector<144x32xf32>
    %c0_3 = arith.constant 0 : index
    %c0_4 = arith.constant 0 : index
    %3 = vector.load %arg3[%c0_3, %c0_4] : memref<144x1xf32, #tpu.memory_space<vmem>>, vector<144x1xf32>
    %4 = vector.broadcast %3 : vector<144x1xf32> to vector<144x32xf32>
    %5 = arith.addf %2, %4 : vector<144x32xf32>
    %c0_5 = arith.constant 0 : index
    %c0_6 = arith.constant 0 : index
    %6 = vector.load %arg4[%c0_5, %c0_6] : memref<144x32xf32, #tpu.memory_space<vmem>>, vector<144x32xf32>
    tpu.vector_store %arg4[%c0_5, %c0_6], %5 {strides = array<i32>} : memref<144x32xf32, #tpu.memory_space<vmem>>, vector<144x32xf32>,
    return
  }
  func.func @transform_0(%arg0: i32) -> (i32, i32) {
    %c0_i32 = arith.constant 0 : i32
    %c0_i32_0 = arith.constant 0 : i32
    %c0_i32_1 = arith.constant 0 : i32
    return %c0_i32, %c0_i32_0 : i32, i32
  }
  func.func @transform_1(%arg0: i32) -> (i32, i32) {
    %c0_i32 = arith.constant 0 : i32
    %c0_i32_0 = arith.constant 0 : i32
    %c0_i32_1 = arith.constant 0 : i32
    return %c0_i32, %c0_i32_0 : i32, i32
  }
  func.func @transform_2(%arg0: i32) -> (i32, i32) {
    %c0_i32 = arith.constant 0 : i32
    %c0_i32_0 = arith.constant 0 : i32
    %c0_i32_1 = arith.constant 0 : i32
    return %c0_i32, %c0_i32_0 : i32, i32
  }
  func.func @transform_3(%arg0: i32) -> (i32, i32) {
    %c0_i32 = arith.constant 0 : i32
    %c0_i32_0 = arith.constant 0 : i32
    %c0_i32_1 = arith.constant 0 : i32
    return %c0_i32, %c0_i32_0 : i32, i32
  }
}

module attributes {stable_mosaic.version = 11 : i64} {
  func.func @_matmul_bias_act_kernel(%arg0: i32, %arg1: memref<200x16xbf16, #tpu.memory_space<vmem>>, %arg2: memref<16x162xbf16, #tpu.memory_space<vmem>>, %arg3: memref<200x1xf32, #tpu.memory_space<vmem>>, %arg4: memref<200x162xf32, #tpu.memory_space<vmem>>) attributes {dimension_semantics = [#tpu.dimension_semantics<arbitrary>], iteration_bounds = array<i64: 1>, scalar_prefetch = 0 : i64, scratch_operands = 0 : i64, tpu.core_type = #tpu.core_type<tc>, window_params = [{pipeline_mode = #tpu.pipeline_mode<synchronous>, transform_indices = @transform_0, window_bounds = array<i64: 200, 16>}, {pipeline_mode = #tpu.pipeline_mode<synchronous>, transform_indices = @transform_1, window_bounds = array<i64: 16, 162>}, {pipeline_mode = #tpu.pipeline_mode<synchronous>, transform_indices = @transform_2, window_bounds = array<i64: 200, 1>}, {pipeline_mode = #tpu.pipeline_mode<synchronous>, transform_indices = @transform_3, window_bounds = array<i64: 200, 162>}]} {
    %c0 = arith.constant 0 : index
    %c0_0 = arith.constant 0 : index
    %0 = vector.load %arg1[%c0, %c0_0] : memref<200x16xbf16, #tpu.memory_space<vmem>>, vector<200x16xbf16>
    %c0_1 = arith.constant 0 : index
    %c0_2 = arith.constant 0 : index
    %1 = vector.load %arg2[%c0_1, %c0_2] : memref<16x162xbf16, #tpu.memory_space<vmem>>, vector<16x162xbf16>
    %cst = arith.constant dense<0.000000e+00> : vector<200x162xf32>
    %2 = tpu.matmul %0, %1, %cst {dimension_numbers = #tpu.dot_dimension_numbers<[1], [0], [0], [1], [0, 0, 1, 1], [], []>} : vector<200x16xbf16>, vector<16x162xbf16>, vector<200x162xf32> -> vector<200x162xf32>
    %c0_3 = arith.constant 0 : index
    %c0_4 = arith.constant 0 : index
    %3 = vector.load %arg3[%c0_3, %c0_4] : memref<200x1xf32, #tpu.memory_space<vmem>>, vector<200x1xf32>
    %4 = vector.broadcast %3 : vector<200x1xf32> to vector<200x162xf32>
    %5 = arith.addf %2, %4 : vector<200x162xf32>
    %c0_5 = arith.constant 0 : index
    %c0_6 = arith.constant 0 : index
    %6 = vector.load %arg4[%c0_5, %c0_6] : memref<200x162xf32, #tpu.memory_space<vmem>>, vector<200x162xf32>
    tpu.vector_store %arg4[%c0_5, %c0_6], %5 {strides = array<i32>} : memref<200x162xf32, #tpu.memory_space<vmem>>, vector<200x162xf32>,
    return
  }
  func.func @transform_0(%arg0: i32) -> (i32, i32) {
    %c0_i32 = arith.constant 0 : i32
    %c0_i32_0 = arith.constant 0 : i32
    %c0_i32_1 = arith.constant 0 : i32
    return %c0_i32, %c0_i32_0 : i32, i32
  }
  func.func @transform_1(%arg0: i32) -> (i32, i32) {
    %c0_i32 = arith.constant 0 : i32
    %c0_i32_0 = arith.constant 0 : i32
    %c0_i32_1 = arith.constant 0 : i32
    return %c0_i32, %c0_i32_0 : i32, i32
  }
  func.func @transform_2(%arg0: i32) -> (i32, i32) {
    %c0_i32 = arith.constant 0 : i32
    %c0_i32_0 = arith.constant 0 : i32
    %c0_i32_1 = arith.constant 0 : i32
    return %c0_i32, %c0_i32_0 : i32, i32
  }
  func.func @transform_3(%arg0: i32) -> (i32, i32) {
    %c0_i32 = arith.constant 0 : i32
    %c0_i32_0 = arith.constant 0 : i32
    %c0_i32_1 = arith.constant 0 : i32
    return %c0_i32, %c0_i32_0 : i32, i32
  }
}

module attributes {stable_mosaic.version = 11 : i64} {
  func.func @_matmul_bias_act_kernel(%arg0: i32, %arg1: memref<64x8xbf16, #tpu.memory_space<vmem>>, %arg2: memref<8x882xbf16, #tpu.memory_space<vmem>>, %arg3: memref<64x1xf32, #tpu.memory_space<vmem>>, %arg4: memref<64x882xf32, #tpu.memory_space<vmem>>) attributes {dimension_semantics = [#tpu.dimension_semantics<arbitrary>], iteration_bounds = array<i64: 1>, scalar_prefetch = 0 : i64, scratch_operands = 0 : i64, tpu.core_type = #tpu.core_type<tc>, window_params = [{pipeline_mode = #tpu.pipeline_mode<synchronous>, transform_indices = @transform_0, window_bounds = array<i64: 64, 8>}, {pipeline_mode = #tpu.pipeline_mode<synchronous>, transform_indices = @transform_1, window_bounds = array<i64: 8, 882>}, {pipeline_mode = #tpu.pipeline_mode<synchronous>, transform_indices = @transform_2, window_bounds = array<i64: 64, 1>}, {pipeline_mode = #tpu.pipeline_mode<synchronous>, transform_indices = @transform_3, window_bounds = array<i64: 64, 882>}]} {
    %c0 = arith.constant 0 : index
    %c0_0 = arith.constant 0 : index
    %0 = vector.load %arg1[%c0, %c0_0] : memref<64x8xbf16, #tpu.memory_space<vmem>>, vector<64x8xbf16>
    %c0_1 = arith.constant 0 : index
    %c0_2 = arith.constant 0 : index
    %1 = vector.load %arg2[%c0_1, %c0_2] : memref<8x882xbf16, #tpu.memory_space<vmem>>, vector<8x882xbf16>
    %cst = arith.constant dense<0.000000e+00> : vector<64x882xf32>
    %2 = tpu.matmul %0, %1, %cst {dimension_numbers = #tpu.dot_dimension_numbers<[1], [0], [0], [1], [0, 0, 1, 1], [], []>} : vector<64x8xbf16>, vector<8x882xbf16>, vector<64x882xf32> -> vector<64x882xf32>
    %c0_3 = arith.constant 0 : index
    %c0_4 = arith.constant 0 : index
    %3 = vector.load %arg3[%c0_3, %c0_4] : memref<64x1xf32, #tpu.memory_space<vmem>>, vector<64x1xf32>
    %4 = vector.broadcast %3 : vector<64x1xf32> to vector<64x882xf32>
    %5 = arith.addf %2, %4 : vector<64x882xf32>
    %c0_5 = arith.constant 0 : index
    %c0_6 = arith.constant 0 : index
    %6 = vector.load %arg4[%c0_5, %c0_6] : memref<64x882xf32, #tpu.memory_space<vmem>>, vector<64x882xf32>
    tpu.vector_store %arg4[%c0_5, %c0_6], %5 {strides = array<i32>} : memref<64x882xf32, #tpu.memory_space<vmem>>, vector<64x882xf32>,
    return
  }
  func.func @transform_0(%arg0: i32) -> (i32, i32) {
    %c0_i32 = arith.constant 0 : i32
    %c0_i32_0 = arith.constant 0 : i32
    %c0_i32_1 = arith.constant 0 : i32
    return %c0_i32, %c0_i32_0 : i32, i32
  }
  func.func @transform_1(%arg0: i32) -> (i32, i32) {
    %c0_i32 = arith.constant 0 : i32
    %c0_i32_0 = arith.constant 0 : i32
    %c0_i32_1 = arith.constant 0 : i32
    return %c0_i32, %c0_i32_0 : i32, i32
  }
  func.func @transform_2(%arg0: i32) -> (i32, i32) {
    %c0_i32 = arith.constant 0 : i32
    %c0_i32_0 = arith.constant 0 : i32
    %c0_i32_1 = arith.constant 0 : i32
    return %c0_i32, %c0_i32_0 : i32, i32
  }
  func.func @transform_3(%arg0: i32) -> (i32, i32) {
    %c0_i32 = arith.constant 0 : i32
    %c0_i32_0 = arith.constant 0 : i32
    %c0_i32_1 = arith.constant 0 : i32
    return %c0_i32, %c0_i32_0 : i32, i32
  }
}

</mosaic_0001>

<bundles_post_ra>
// kernel: ae_forward.7
= control target key start
LH: loop header
LB: loop body
LE: loop exit
PB: predicated region body
PF: predicated region fallthrough
CT: control target
= control target key end

     0   :  { %8 = vsyncpa [#allocation3], 0  ;;  %s402_s15 = smov [#allocation2]   ;;  %s526_s0 = inlined_call_operand.hbm [shape: bf16[8,9], index: 0, kind: input, shape index: {}]   ;;  %s527_s1 = inlined_call_operand.vmem [shape: bf16[9,1352], index: 1, kind: input, shape index: {}]   ;;  %s528_s2 = inlined_call_operand.vmem [shape: f32[8,1], index: 2, kind: input, shape index: {}]   ;;  %s529_s3 = inlined_call_operand.vmem [shape: bf16[8,1352], index: 3, kind: output, shape index: {}]  }
   0x1   :  { %s14_s14 = sshll.u32 %s526_s0, 4  ;;  %s16_s16 = sshll.u32 %s402_s15, 4  ;;  %s15_s14 = int_to_ptr.hbm [resolvable:$true] %s14_s14  ;;  %s17_s16 = int_to_ptr.vmem [resolvable:$true] %s16_s16 }
   0x2   :  { %19 = dma.hbm_to_vmem [thread:$0]  %s15_s14, 64, %s17_s16, [#allocation3]  }
   0x3   :  { %400 = dma.done.wait [#allocation3], 64  }
   0x4   :  { %401 = vsyncadd [#allocation3], 4294967232  ;;  %vm97_vm0 = vcmask 1043456   ;;  %v403_v0 = vmov 0   ;;  %vm98_vm1 = vcmask 1044480   ;;  %v404_v1 = vmov 65535  }
   0x5   :  { %375 = vset.pattern.permute.xlu0 %v403_v0  ;;  %v99_v2 = vsel %vm97_vm0, 4294967295, %v404_v1  ;;  %v308_v4 = vld [vmem:[%s527_s1] sm:$0xf]  ;;  %v366_v5 = vld [vmem:[%s527_s1 + $0x28] sm:$0x10]  ;;  %vm93_vm2 = vcmask 72704  }
   0x6   :  { %v100_v3 = vsel %vm98_vm1, %v99_v2, 0  ;;  %v361_v6 = vld [vmem:[%s527_s1 + $0x4] sm:$0xf]  ;;  %v309_v7 = vor.u32 %v366_v5, %v308_v4  ;;  %v310_v8 = vld [vmem:[%s527_s1 + $0x2c] sm:$0x10]  ;;  %vm299_vm3 = vcmask 584704  }
   0x7   :  { %v316_v9 = vld [vmem:[%s527_s1 + $0x8] sm:$0xf]  ;;  %v367_v10 = vld [vmem:[%s527_s1 + $0x30] sm:$0x10]  ;;  %v313_v11 = vor.u32 %v361_v6, %v310_v8  ;;  %v362_v13 = vld [vmem:[%s527_s1 + $0xc] sm:$0xf] }
   0x8   :  { %v317_v12 = vor.u32 %v367_v10, %v316_v9  ;;  %v318_v14 = vld [vmem:[%s527_s1 + $0x34] sm:$0x10]  ;;  %v102_v15 = vand.u32 %v309_v7, %v100_v3  ;;  %v29_v17 = vld [vmem:[#allocation2] sm:$0xf]  ;;  %v369_v19 = vld [vmem:[%s527_s1 + $0x40] sm:$0x10] }
   0x9   :  { %v321_v16 = vor.u32 %v362_v13, %v318_v14  ;;  %v332_v18 = vld [vmem:[%s527_s1 + $0x18] sm:$0xf]  ;;  %v324_v20 = vld [vmem:[%s527_s1 + $0x10] sm:$0xf]  ;;  %v105_v21 = vand.u32 %v313_v11, %v100_v3  ;;  %v368_v24 = vld [vmem:[%s527_s1 + $0x38] sm:$0x10] }
   0xa   :  { %v108_v22 = vand.u32 %v317_v12, %v100_v3  ;;  %v333_v23 = vor.u32 %v369_v19, %v332_v18  ;;  %v363_v25 = vld [vmem:[%s527_s1 + $0x14] sm:$0xf]  ;;  %v326_v26 = vld [vmem:[%s527_s1 + $0x3c] sm:$0x10]  ;;  %141 = vmatpush.bf16.msra.mxu0 %v102_v15  ;;  %v325_v28 = vor.u32 %v368_v24, %v324_v20  ;;  %v364_v30 = vld [vmem:[%s527_s1 + $0x1c] sm:$0xf] }
   0xb   :  { %v111_v27 = vand.u32 %v321_v16, %v100_v3  ;;  %v329_v29 = vor.u32 %v363_v25, %v326_v26  ;;  %v334_v31 = vld [vmem:[%s527_s1 + $0x44] sm:$0x10]  ;;  %154 = vmatpush.bf16.msra.mxu1 %v105_v21  ;;  %v371_v35 = vld [vmem:[%s527_s1 + $0x50] sm:$0x10]  ;;  %v42_v36 = vld [vmem:[%s528_s2] sm:$0xff] }
   0xc   :  { %v348_v32 = vld [vmem:[%s527_s1 + $0x28] sm:$0xf]  ;;  %167 = vmatpush.bf16.msra.mxu2 %v108_v22  ;;  %v120_v33 = vand.u32 %v333_v23, %v100_v3  ;;  %v337_v34 = vor.u32 %v364_v30, %v334_v31  ;;  %v340_v37 = vld [vmem:[%s527_s1 + $0x20] sm:$0xf]  ;;  %v114_v38 = vand.u32 %v325_v28, %v100_v3  ;;  %45 = vperm.xlu0 %375, %v42_v36   ;;  %v370_v41 = vld [vmem:[%s527_s1 + $0x48] sm:$0x10] }
   0xd   :  { %180 = vmatpush.bf16.msra.mxu3 %v111_v27  ;;  %v117_v39 = vand.u32 %v329_v29, %v100_v3  ;;  %v349_v40 = vor.u32 %v371_v35, %v348_v32  ;;  %v365_v42 = vld [vmem:[%s527_s1 + $0x24] sm:$0xf]  ;;  %v342_v43 = vld [vmem:[%s527_s1 + $0x4c] sm:$0x10]  ;;  %350 = vmatmul.msk.bf16.vlgmr.msra.gmra.mxu0 %vm93_vm2, %v29_v17  ;;  %v341_v45 = vor.u32 %v370_v41, %v340_v37 }
   0xe   :  { %v123_v44 = vand.u32 %v337_v34, %v100_v3  ;;  %v345_v46 = vor.u32 %v365_v42, %v342_v43  ;;  %351 = vmatmul.msk.bf16.vlgmr.msra.gmra.mxu1 %vm93_vm2, %v29_v17  ;;  %193 = vmatpush.bf16.msrb.mxu0 %v114_v38 }
   0xf   :  { %352 = vmatmul.msk.bf16.vlgmr.msra.gmra.mxu2 %vm93_vm2, %v29_v17  ;;  %v132_v47 = vand.u32 %v349_v40, %v100_v3  ;;  %v126_v48 = vand.u32 %v341_v45, %v100_v3  ;;  %206 = vmatpush.bf16.msrb.mxu1 %v117_v39 }
  0x10   :  { %219 = vmatpush.bf16.msrb.mxu2 %v120_v33  ;;  %353 = vmatmul.msk.bf16.vlgmr.msra.gmra.mxu3 %vm93_vm2, %v29_v17  ;;  %v129_v49 = vand.u32 %v345_v46, %v100_v3 }
  0x11   :  { %232 = vmatpush.bf16.msrb.mxu3 %v123_v44 }
  0x12   :  { %245 = vmatpush.bf16.msra.mxu0 %v126_v48 }
  0x13   :  { %258 = vmatpush.bf16.msra.mxu1 %v129_v49 }
  0x14   :  { %271 = vmatpush.bf16.msra.mxu2 %v132_v47 }
  0x1d   :  { %354 = vmatmul.msk.bf16.vlgmr.msrb.gmra.mxu0 %vm93_vm2, %v29_v17 }
  0x1e   :  { %355 = vmatmul.msk.bf16.vlgmr.msrb.gmra.mxu1 %vm93_vm2, %v29_v17 }
  0x1f   :  { %356 = vmatmul.msk.bf16.vlgmr.msrb.gmra.mxu2 %vm93_vm2, %v29_v17 }
  0x20   :  { %357 = vmatmul.msk.bf16.vlgmr.msrb.gmra.mxu3 %vm93_vm2, %v29_v17 }
  0x2d   :  { %358 = vmatmul.msk.bf16.vlgmr.msra.gmra.mxu0 %vm93_vm2, %v29_v17 }
  0x2e   :  { %359 = vmatmul.msk.bf16.vlgmr.msra.gmra.mxu1 %vm93_vm2, %v29_v17 }
  0x2f   :  { %360 = vmatmul.msk.bf16.vlgmr.msra.gmra.mxu2 %vm93_vm2, %v29_v17 }
  0x7e   :  { %v46_v50 = vpop.permute.xlu0 %45 }
  0x8a   :  { %v143_v51 = vpop.f32.mrf.mxu0 }
  0x8b   :  { %v156_v52 = vpop.f32.mrf.mxu1  ;;  %v144_v53 = vadd.f32 %v143_v51, %v46_v50 }
  0x8c   :  { %v157_v54 = vadd.f32 %v156_v52, %v46_v50 }
  0x8d   :  { %v277_v55 = vmax.f32 %v144_v53, 0.0 }
  0x8e   :  { %v278_v56 = vmax.f32 %v157_v54, 0.0 }
  0x90   :  { %v288_v57 = vpack.c.bf16 %v278_v56, %v277_v55 }
  0x92   :  { %v169_v58 = vpop.f32.mrf.mxu2  ;;  %294 = vst [vmem:[%s529_s3] sm:$0xff] %v288_v57  ;;  %v145_v61 = vpop.f32.mrf.mxu0 }
  0x93   :  { %v170_v59 = vadd.f32 %v169_v58, %v46_v50  ;;  %v182_v60 = vpop.f32.mrf.mxu3  ;;  %v158_v63 = vpop.f32.mrf.mxu1 }
  0x94   :  { %v183_v62 = vadd.f32 %v182_v60, %v46_v50 }
  0x95   :  { %v279_v0 = vmax.f32 %v170_v59, 0.0 }
  0x96   :  { %v280_v1 = vmax.f32 %v183_v62, 0.0 }
  0x98   :  { %v289_v2 = vpack.c.bf16 %v280_v1, %v279_v0 }
  0x9a   :  { %295 = vst [vmem:[%s529_s3 + $0x8] sm:$0xff] %v289_v2  ;;  %v171_v3 = vpop.f32.mrf.mxu2  ;;  %v195_v5 = vpop.f32.mrf.mxu0 }
  0x9b   :  { %v184_v4 = vpop.f32.mrf.mxu3  ;;  %v196_v6 = vadd.f32 %v195_v5, %v46_v50  ;;  %v208_v7 = vpop.f32.mrf.mxu1 }
  0x9c   :  { %v209_v8 = vadd.f32 %v208_v7, %v46_v50 }
  0x9d   :  { %v281_v9 = vmax.f32 %v196_v6, 0.0 }
  0x9e   :  { %v282_v10 = vmax.f32 %v209_v8, 0.0 }
  0xa0   :  { %v290_v11 = vpack.c.bf16 %v282_v10, %v281_v9 }
  0xa2   :  { %v221_v12 = vpop.f32.mrf.mxu2  ;;  %296 = vst [vmem:[%s529_s3 + $0x10] sm:$0xff] %v290_v11  ;;  %v197_v15 = vpop.f32.mrf.mxu0 }
  0xa3   :  { %v222_v13 = vadd.f32 %v221_v12, %v46_v50  ;;  %v234_v14 = vpop.f32.mrf.mxu3  ;;  %v210_v17 = vpop.f32.mrf.mxu1 }
  0xa4   :  { %v235_v16 = vadd.f32 %v234_v14, %v46_v50 }
  0xa5   :  { %v283_v18 = vmax.f32 %v222_v13, 0.0 }
  0xa6   :  { %v284_v19 = vmax.f32 %v235_v16, 0.0 }
  0xa8   :  { %v291_v20 = vpack.c.bf16 %v284_v19, %v283_v18 }
  0xaa   :  { %297 = vst [vmem:[%s529_s3 + $0x18] sm:$0xff] %v291_v20  ;;  %v223_v21 = vpop.f32.mrf.mxu2  ;;  %v247_v22 = vpop.f32.mrf.mxu0 }
  0xab   :  { %v236_v23 = vpop.f32.mrf.mxu3  ;;  %v248_v24 = vadd.f32 %v247_v22, %v46_v50  ;;  %v260_v25 = vpop.f32.mrf.mxu1 }
  0xac   :  { %v261_v26 = vadd.f32 %v260_v25, %v46_v50 }
  0xad   :  { %v285_v27 = vmax.f32 %v248_v24, 0.0 }
  0xae   :  { %v286_v28 = vmax.f32 %v261_v26, 0.0 }
  0xb0   :  { %v292_v29 = vpack.c.bf16 %v286_v28, %v285_v27 }
  0xb2   :  { %v273_v30 = vpop.f32.mrf.mxu2  ;;  %298 = vst [vmem:[%s529_s3 + $0x20] sm:$0xff] %v292_v29  ;;  %v249_v32 = vpop.f32.mrf.mxu0 }
  0xb3   :  { %v274_v31 = vadd.f32 %v273_v30, %v46_v50  ;;  %v262_v33 = vpop.f32.mrf.mxu1 }
  0xb5   :  { %v287_v34 = vmax.f32 %v274_v31, 0.0 }
  0xb7   :  { %v293_v35 = vpack.c.bf16 %v287_v34, %v287_v34 }
  0xb9   :  { %300 = vst.msk [vmem:[%s529_s3 + $0x28] sm:$0xf] %vm299_vm3, %v293_v35 }
  0xba   :  { %v275_v36 = vpop.f32.mrf.mxu2 }
  0xbb   :  { %305 = vsyncpa [#allocation3], 1 }

// kernel: ae_forward.8
= control target key start
LH: loop header
LB: loop body
LE: loop exit
PB: predicated region body
PF: predicated region fallthrough
CT: control target
= control target key end

     0   :  { %vm642_vm0 = vcmask 1043456   ;;  %vm638_vm1 = vcmask 588800   ;;  %vm918_vm2 = vcmask 588804   ;;  %s2141_s1 = inlined_call_operand.vmem [shape: bf16[200,968], index: 1, kind: input, shape index: {}]   ;;  %s2142_s0 = inlined_call_operand.vmem [shape: bf16[16,200], index: 0, kind: input, shape index: {}]   ;;  %s2143_s2 = inlined_call_operand.vmem [shape: f32[16,1], index: 2, kind: input, shape index: {}]   ;;  %s2144_s3 = inlined_call_operand.vmem [shape: bf16[16,968], index: 3, kind: output, shape index: {}]  }
   0x1   :  { %v1163_v0 = vld [vmem:[%s2141_s1 + $0x1c0] sm:$0xf]  ;;  %v1387_v2 = vld [vmem:[%s2141_s1 + $0x1c4] sm:$0xf]  ;;  %v114_v51 = vld [vmem:[%s2141_s1 + $0x308] sm:$0xff] }
   0x2   :  { %v1391_v1 = vld [vmem:[%s2141_s1 + $0x1dc] sm:$0xf0]  ;;  %v1165_v4 = vld [vmem:[%s2141_s1 + $0x1e0] sm:$0xf0]  ;;  %v432_v56 = vunpack.c.l.b16 %v114_v51  ;;  %vm919_vm3 = vmor %vm918_vm2, %vm642_vm0 }
   0x3   :  { %v1164_v3 = vor.u32 %v1391_v1, %v1163_v0  ;;  %v113_v5 = vld [vmem:[%s2141_s1 + $0x300] sm:$0xff]  ;;  %v1168_v7 = vor.u32 %v1387_v2, %v1165_v4  ;;  %v1171_v1 = vld [vmem:[%s2141_s1 + $0x1c8] sm:$0xf] }
   0x4   :  { %v1131_v6 = vld [vmem:[%s2141_s1 + $0x180] sm:$0xf]  ;;  %v430_v8 = vunpack.c.l.b16 %v113_v5  ;;  %v431_v9 = vunpack.c.h.b16 %v113_v5  ;;  %v1379_v11 = vld [vmem:[%s2141_s1 + $0x184] sm:$0xf]  ;;  %v1392_v2 = vld [vmem:[%s2141_s1 + $0x1e4] sm:$0xf0] }
   0x5   :  { %v1383_v10 = vld [vmem:[%s2141_s1 + $0x19c] sm:$0xf0]  ;;  %v1133_v12 = vld [vmem:[%s2141_s1 + $0x1a0] sm:$0xf0]  ;;  %667 = vmatpush.bf16.msra.mxu0 %v1164_v3  ;;  %695 = vmatpush.bf16.msra.mxu2 %v1168_v7  ;;  %v536_v3 = vpack.c.b16 %v432_v56, %v432_v56  ;;  %v1043_v56 = vld [vmem:[%s2141_s1 + $0xc8] sm:$0xf] }
   0x6   :  { %v1291_v13 = vld [vmem:[%s2141_s1 + $0x2c0] sm:$0xf]  ;;  %v534_v15 = vpack.c.b16 %v430_v8, %v430_v8  ;;  %v535_v16 = vpack.c.b16 %v431_v9, %v431_v9  ;;  %v1132_v17 = vor.u32 %v1383_v10, %v1131_v6  ;;  %v1136_v18 = vor.u32 %v1379_v11, %v1133_v12  ;;  %v1419_v19 = vld [vmem:[%s2141_s1 + $0x2c4] sm:$0xf] }
   0x7   :  { %v1423_v14 = vld [vmem:[%s2141_s1 + $0x2dc] sm:$0xf0]  ;;  %v1293_v20 = vld [vmem:[%s2141_s1 + $0x2e0] sm:$0xf0] }
   0x8   :  { %v1099_v21 = vld [vmem:[%s2141_s1 + $0x140] sm:$0xf]  ;;  %v1371_v23 = vld [vmem:[%s2141_s1 + $0x144] sm:$0xf]  ;;  %v644_v25 = vsel %vm642_vm0, %v534_v15, 0  ;;  %v647_v26 = vsel %vm642_vm0, %v535_v16, 0  ;;  %v1292_v27 = vor.u32 %v1423_v14, %v1291_v13  ;;  %v1296_v28 = vor.u32 %v1419_v19, %v1293_v20 }
   0x9   :  { %v1375_v22 = vld [vmem:[%s2141_s1 + $0x15c] sm:$0xf0]  ;;  %v1101_v24 = vld [vmem:[%s2141_s1 + $0x160] sm:$0xf0]  ;;  %684 = vmatpush.bf16.msra.mxu1 %v644_v25  ;;  %712 = vmatpush.bf16.msra.mxu3 %v647_v26  ;;  %v1172_v13 = vor.u32 %v1392_v2, %v1171_v1  ;;  %v1139_v14 = vld [vmem:[%s2141_s1 + $0x188] sm:$0xf] }
   0xa   :  { %v1259_v29 = vld [vmem:[%s2141_s1 + $0x280] sm:$0xf]  ;;  %668 = vmatpush.bf16.msra.mxu0 %v1132_v17  ;;  %696 = vmatpush.bf16.msra.mxu2 %v1136_v18  ;;  %v1100_v31 = vor.u32 %v1375_v22, %v1099_v21  ;;  %v1104_v32 = vor.u32 %v1371_v23, %v1101_v24  ;;  %v1411_v33 = vld [vmem:[%s2141_s1 + $0x284] sm:$0xf]  ;;  %v1384_v15 = vld [vmem:[%s2141_s1 + $0x1a4] sm:$0xf0]  ;;  %v433_v17 = vunpack.c.h.b16 %v114_v51 }
   0xb   :  { %v1415_v30 = vld [vmem:[%s2141_s1 + $0x29c] sm:$0xf0]  ;;  %v1261_v34 = vld [vmem:[%s2141_s1 + $0x2a0] sm:$0xf0]  ;;  %v933_v16 = vld [vmem:[%s2142_s0 + $0x8] sm:$0xf0]  ;;  %v1140_v26 = vor.u32 %v1384_v15, %v1139_v14 }
   0xc   :  { %v1067_v35 = vld [vmem:[%s2141_s1 + $0x100] sm:$0xf]  ;;  %v1363_v37 = vld [vmem:[%s2141_s1 + $0x104] sm:$0xf]  ;;  %v1260_v39 = vor.u32 %v1415_v30, %v1259_v29  ;;  %v1264_v40 = vor.u32 %v1411_v33, %v1261_v34  ;;  %v650_v18 = vsel %vm642_vm0, %v536_v3, 0 }
   0xd   :  { %v1367_v36 = vld [vmem:[%s2141_s1 + $0x11c] sm:$0xf0]  ;;  %v1069_v38 = vld [vmem:[%s2141_s1 + $0x120] sm:$0xf0]  ;;  %685 = vmatpush.bf16.msra.mxu1 %v1292_v27  ;;  %713 = vmatpush.bf16.msra.mxu3 %v1296_v28  ;;  %v1299_v19 = vld [vmem:[%s2141_s1 + $0x2c8] sm:$0xf] }
   0xe   :  { %v1227_v41 = vld [vmem:[%s2141_s1 + $0x240] sm:$0xf]  ;;  %669 = vmatpush.bf16.msra.mxu0 %v1100_v31  ;;  %697 = vmatpush.bf16.msra.mxu2 %v1104_v32  ;;  %v1068_v43 = vor.u32 %v1367_v36, %v1067_v35  ;;  %v1072_v44 = vor.u32 %v1363_v37, %v1069_v38  ;;  %v1403_v45 = vld [vmem:[%s2141_s1 + $0x244] sm:$0xf]  ;;  %v1424_v20 = vld [vmem:[%s2141_s1 + $0x2e4] sm:$0xf0]  ;;  %v537_v31 = vpack.c.b16 %v433_v17, %v433_v17 }
   0xf   :  { %v1407_v42 = vld [vmem:[%s2141_s1 + $0x25c] sm:$0xf0]  ;;  %v1229_v46 = vld [vmem:[%s2141_s1 + $0x260] sm:$0xf0]  ;;  %v1300_v27 = vor.u32 %v1424_v20, %v1299_v19  ;;  %v1107_v30 = vld [vmem:[%s2141_s1 + $0x148] sm:$0xf] }
  0x10   :  { %v1035_v47 = vld [vmem:[%s2141_s1 + $0xc0] sm:$0xf]  ;;  %v1355_v49 = vld [vmem:[%s2141_s1 + $0xc4] sm:$0xf]  ;;  %v1228_v52 = vor.u32 %v1407_v42, %v1227_v41  ;;  %v1232_v53 = vor.u32 %v1403_v45, %v1229_v46  ;;  %v1376_v32 = vld [vmem:[%s2141_s1 + $0x164] sm:$0xf0] }
  0x11   :  { %v1359_v48 = vld [vmem:[%s2141_s1 + $0xdc] sm:$0xf0]  ;;  %v1037_v50 = vld [vmem:[%s2141_s1 + $0xe0] sm:$0xf0]  ;;  %686 = vmatpush.bf16.msra.mxu1 %v1260_v39  ;;  %714 = vmatpush.bf16.msra.mxu3 %v1264_v40  ;;  %v1267_v33 = vld [vmem:[%s2141_s1 + $0x288] sm:$0xf]  ;;  %v1108_v41 = vor.u32 %v1376_v32, %v1107_v30 }
  0x12   :  { %v1195_v54 = vld [vmem:[%s2141_s1 + $0x200] sm:$0xf]  ;;  %670 = vmatpush.bf16.msra.mxu0 %v1068_v43  ;;  %698 = vmatpush.bf16.msra.mxu2 %v1072_v44  ;;  %v1036_v57 = vor.u32 %v1359_v48, %v1035_v47  ;;  %v1040_v58 = vor.u32 %v1355_v49, %v1037_v50  ;;  %v1395_v59 = vld [vmem:[%s2141_s1 + $0x204] sm:$0xf]  ;;  %v1416_v34 = vld [vmem:[%s2141_s1 + $0x2a4] sm:$0xf0] }
  0x13   :  { %v1399_v55 = vld [vmem:[%s2141_s1 + $0x21c] sm:$0xf0]  ;;  %v1197_v60 = vld [vmem:[%s2141_s1 + $0x220] sm:$0xf0]  ;;  %v1388_v35 = vld [vmem:[%s2141_s1 + $0x1cc] sm:$0xf]  ;;  %v1268_v42 = vor.u32 %v1416_v34, %v1267_v33 }
  0x14   :  { %v1003_v61 = vld [vmem:[%s2141_s1 + $0x80] sm:$0xf]  ;;  %v1347_v63 = vld [vmem:[%s2141_s1 + $0x84] sm:$0xf]  ;;  %v1196_v4 = vor.u32 %v1399_v55, %v1195_v54  ;;  %v1200_v5 = vor.u32 %v1395_v59, %v1197_v60  ;;  %v1173_v36 = vld [vmem:[%s2141_s1 + $0x1e8] sm:$0xf0] }
  0x15   :  { %v1351_v62 = vld [vmem:[%s2141_s1 + $0x9c] sm:$0xf0]  ;;  %v1005_v0 = vld [vmem:[%s2141_s1 + $0xa0] sm:$0xf0]  ;;  %687 = vmatpush.bf16.msra.mxu1 %v1228_v52  ;;  %715 = vmatpush.bf16.msra.mxu3 %v1232_v53  ;;  %v1330_v40 = vld [vmem:[%s2142_s0 + $0x4] sm:$0xf0]  ;;  %v1176_v46 = vor.u32 %v1388_v35, %v1173_v36 }
  0x16   :  { %v971_v6 = vld [vmem:[%s2141_s1 + $0x40] sm:$0xf]  ;;  %671 = vmatpush.bf16.msra.mxu0 %v1036_v57  ;;  %699 = vmatpush.bf16.msra.mxu2 %v1040_v58  ;;  %v1004_v8 = vor.u32 %v1351_v62, %v1003_v61  ;;  %v1008_v9 = vor.u32 %v1347_v63, %v1005_v0  ;;  %v1339_v10 = vld [vmem:[%s2141_s1 + $0x44] sm:$0xf]  ;;  %v653_v43 = vsel %vm642_vm0, %v537_v31, 0  ;;  %v1746_v19 = vld [vmem:[%s2141_s1 + $0x310] sm:$0xff] }
  0x17   :  { %v1343_v7 = vld [vmem:[%s2141_s1 + $0x5c] sm:$0xf0]  ;;  %v973_v11 = vld [vmem:[%s2141_s1 + $0x60] sm:$0xf0]  ;;  %v1075_v44 = vld [vmem:[%s2141_s1 + $0x108] sm:$0xf]  ;;  %v434_v33 = vunpack.c.l.b16 %v1746_v19 }
  0x18   :  { %v1329_v12 = vld [vmem:[%s2142_s0 + $0x4] sm:$0xf]  ;;  %v972_v22 = vor.u32 %v1343_v7, %v971_v6  ;;  %v976_v23 = vor.u32 %v1339_v10, %v973_v11  ;;  %v939_v24 = vld [vmem:[%s2141_s1] sm:$0xf]  ;;  %v1368_v45 = vld [vmem:[%s2141_s1 + $0x124] sm:$0xf0] }
  0x19   :  { %v1615_v21 = vor.u32 %v1329_v12, %v933_v16  ;;  %688 = vmatpush.bf16.msra.mxu1 %v1196_v4  ;;  %716 = vmatpush.bf16.msra.mxu3 %v1200_v5  ;;  %v1335_v25 = vld [vmem:[%s2141_s1 + $0x1c] sm:$0xf0]  ;;  %v1331_v28 = vld [vmem:[%s2141_s1 + $0x4] sm:$0xf]  ;;  %v1235_v47 = vld [vmem:[%s2141_s1 + $0x248] sm:$0xf]  ;;  %v1076_v54 = vor.u32 %v1368_v45, %v1075_v44 }
  0x1a   :  { %672 = vmatpush.bf16.msra.mxu0 %v1004_v8  ;;  %700 = vmatpush.bf16.msra.mxu2 %v1008_v9  ;;  %v941_v29 = vld [vmem:[%s2141_s1 + $0x20] sm:$0xf0]  ;;  %v940_v37 = vor.u32 %v1335_v25, %v939_v24  ;;  %v931_v39 = vld [vmem:[%s2142_s0] sm:$0xf]  ;;  %v1408_v48 = vld [vmem:[%s2141_s1 + $0x264] sm:$0xf0] }
  0x1b   :  { %v944_v38 = vor.u32 %v1331_v28, %v941_v29  ;;  %v1380_v49 = vld [vmem:[%s2141_s1 + $0x18c] sm:$0xf]  ;;  %v1673_v50 = vor.u32 %v1330_v40, %v931_v39  ;;  %v1236_v55 = vor.u32 %v1408_v48, %v1235_v47  ;;  %v1360_v57 = vld [vmem:[%s2141_s1 + $0xe4] sm:$0xf0]  ;;  %v1179_v2 = vld [vmem:[%s2141_s1 + $0x1d0] sm:$0xf]  ;;  %v538_v47 = vpack.c.b16 %v434_v33, %v434_v33 }
  0x1c   :  { %1322 = vmatmul.msk.bf16.vlgmr.msra.gmra.mxu3 %vm638_vm1, %v1615_v21  ;;  %1321 = vmatmul.msk.bf16.vlgmr.msra.gmra.mxu1 %vm638_vm1, %v1615_v21  ;;  %v1141_v51 = vld [vmem:[%s2141_s1 + $0x1a8] sm:$0xf0]  ;;  %v1203_v58 = vld [vmem:[%s2141_s1 + $0x208] sm:$0xf]  ;;  %v1393_v3 = vld [vmem:[%s2141_s1 + $0x1ec] sm:$0xf0]  ;;  %v1044_v6 = vor.u32 %v1360_v57, %v1043_v56 }
  0x1d   :  { %723 = vmatpush.bf16.msrb.mxu1 %v1172_v13  ;;  %740 = vmatpush.bf16.msrb.mxu3 %v650_v18  ;;  %v1420_v52 = vld [vmem:[%s2141_s1 + $0x2cc] sm:$0xf]  ;;  %v1144_v59 = vor.u32 %v1380_v49, %v1141_v51  ;;  %v1400_v61 = vld [vmem:[%s2141_s1 + $0x224] sm:$0xf0]  ;;  %v1429_v4 = vmov 0   ;;  %v117_v5 = vld [vmem:[%s2143_s2] sm:$0xff]  ;;  %v1180_v13 = vor.u32 %v1393_v3, %v1179_v2 }
  0x1e   :  { %673 = vmatpush.bf16.msra.mxu0 %v972_v22  ;;  %701 = vmatpush.bf16.msra.mxu2 %v976_v23  ;;  %v1301_v53 = vld [vmem:[%s2141_s1 + $0x2e8] sm:$0xf0]  ;;  %v1204_v7 = vor.u32 %v1400_v61, %v1203_v58  ;;  %v1011_v10 = vld [vmem:[%s2141_s1 + $0x88] sm:$0xf]  ;;  %v1147_v17 = vld [vmem:[%s2141_s1 + $0x190] sm:$0xf] }
  0x1f   :  { %v1304_v60 = vor.u32 %v1420_v52, %v1301_v53  ;;  %v1372_v62 = vld [vmem:[%s2141_s1 + $0x14c] sm:$0xf]  ;;  %1428 = vset.pattern.permute.xlu0 %v1429_v4  ;;  %v1352_v11 = vld [vmem:[%s2141_s1 + $0xa4] sm:$0xf0]  ;;  %v1385_v18 = vld [vmem:[%s2141_s1 + $0x1ac] sm:$0xf0] }
  0x20   :  { %v1109_v63 = vld [vmem:[%s2141_s1 + $0x168] sm:$0xf0]  ;;  %121 = vperm.xlu0 %1428, %v117_v5   ;;  %v1012_v20 = vor.u32 %v1352_v11, %v1011_v10  ;;  %v979_v22 = vld [vmem:[%s2141_s1 + $0x48] sm:$0xf]  ;;  %v1148_v29 = vor.u32 %v1385_v18, %v1147_v17  ;;  %v1115_v31 = vld [vmem:[%s2141_s1 + $0x150] sm:$0xf] }
  0x21   :  { %724 = vmatpush.bf16.msrb.mxu1 %v1140_v26  ;;  %741 = vmatpush.bf16.msrb.mxu3 %v1300_v27  ;;  %v1412_v0 = vld [vmem:[%s2141_s1 + $0x28c] sm:$0xf]  ;;  %v1112_v8 = vor.u32 %v1372_v62, %v1109_v63  ;;  %v1344_v23 = vld [vmem:[%s2141_s1 + $0x64] sm:$0xf0]  ;;  %v1377_v32 = vld [vmem:[%s2141_s1 + $0x16c] sm:$0xf0] }
  0x22   :  { %674 = vmatpush.bf16.msra.mxu0 %v940_v37  ;;  %702 = vmatpush.bf16.msra.mxu2 %v944_v38  ;;  %v1269_v1 = vld [vmem:[%s2141_s1 + $0x2a8] sm:$0xf0]  ;;  %v1389_v34 = vld [vmem:[%s2141_s1 + $0x1d4] sm:$0xf]  ;;  %v980_v37 = vor.u32 %v1344_v23, %v979_v22  ;;  %v947_v40 = vld [vmem:[%s2141_s1 + $0x8] sm:$0xf] }
  0x23   :  { %v1272_v9 = vor.u32 %v1412_v0, %v1269_v1  ;;  %v1364_v12 = vld [vmem:[%s2141_s1 + $0x10c] sm:$0xf]  ;;  %v1181_v35 = vld [vmem:[%s2141_s1 + $0x1f0] sm:$0xf0]  ;;  %v1369_v48 = vld [vmem:[%s2141_s1 + $0x12c] sm:$0xf0] }
  0x24   :  { %v1077_v14 = vld [vmem:[%s2141_s1 + $0x128] sm:$0xf0]  ;;  %v1381_v49 = vld [vmem:[%s2141_s1 + $0x194] sm:$0xf]  ;;  %v1051_v56 = vld [vmem:[%s2141_s1 + $0xd0] sm:$0xf] }
  0x25   :  { %725 = vmatpush.bf16.msrb.mxu1 %v1108_v41  ;;  %742 = vmatpush.bf16.msrb.mxu3 %v1268_v42  ;;  %v1404_v15 = vld [vmem:[%s2141_s1 + $0x24c] sm:$0xf]  ;;  %v1080_v24 = vor.u32 %v1364_v12, %v1077_v14  ;;  %v1336_v41 = vld [vmem:[%s2141_s1 + $0x24] sm:$0xf0]  ;;  %v1116_v42 = vor.u32 %v1377_v32, %v1115_v31  ;;  %v1149_v51 = vld [vmem:[%s2141_s1 + $0x1b0] sm:$0xf0] }
  0x26   :  { %751 = vmatpush.bf16.msrb.mxu0 %v1176_v46  ;;  %768 = vmatpush.bf16.msrb.mxu2 %v653_v43  ;;  %v1237_v16 = vld [vmem:[%s2141_s1 + $0x268] sm:$0xf0]  ;;  %v1184_v43 = vor.u32 %v1389_v34, %v1181_v35  ;;  %v1083_v46 = vld [vmem:[%s2141_s1 + $0x110] sm:$0xf]  ;;  %v948_v52 = vor.u32 %v1336_v41, %v947_v40  ;;  %v656_v58 = vsel %vm642_vm0, %v538_v47, 0 }
  0x27   :  { %703 = vmatmul.bf16.vlgmr.msra.gmra.mxu2 %v1673_v50  ;;  %675 = vmatmul.bf16.vlgmr.msra.gmra.mxu0 %v1673_v50  ;;  %v1240_v25 = vor.u32 %v1404_v15, %v1237_v16  ;;  %v1356_v26 = vld [vmem:[%s2141_s1 + $0xcc] sm:$0xf]  ;;  %v1084_v57 = vor.u32 %v1369_v48, %v1083_v46  ;;  %v1425_v61 = vld [vmem:[%s2141_s1 + $0x2ec] sm:$0xf0]  ;;  %v1373_v63 = vld [vmem:[%s2141_s1 + $0x154] sm:$0xf] }
  0x28   :  { %v1045_v27 = vld [vmem:[%s2141_s1 + $0xe8] sm:$0xf0]  ;;  %v1361_v62 = vld [vmem:[%s2141_s1 + $0xec] sm:$0xf0]  ;;  %v1117_v0 = vld [vmem:[%s2141_s1 + $0x170] sm:$0xf0] }
  0x29   :  { %726 = vmatpush.bf16.msrb.mxu1 %v1076_v54  ;;  %743 = vmatpush.bf16.msrb.mxu3 %v1236_v55  ;;  %v1396_v28 = vld [vmem:[%s2141_s1 + $0x20c] sm:$0xf]  ;;  %v1048_v38 = vor.u32 %v1356_v26, %v1045_v27  ;;  %v1052_v5 = vor.u32 %v1361_v62, %v1051_v56  ;;  %v1353_v10 = vld [vmem:[%s2141_s1 + $0xac] sm:$0xf0]  ;;  %v1365_v11 = vld [vmem:[%s2141_s1 + $0x114] sm:$0xf] }
  0x2a   :  { %752 = vmatpush.bf16.msrb.mxu0 %v1144_v59  ;;  %769 = vmatpush.bf16.msrb.mxu2 %v1304_v60  ;;  %v1205_v30 = vld [vmem:[%s2141_s1 + $0x228] sm:$0xf0]  ;;  %v1152_v59 = vor.u32 %v1381_v49, %v1149_v51  ;;  %v1307_v60 = vld [vmem:[%s2141_s1 + $0x2d0] sm:$0xf]  ;;  %v1085_v12 = vld [vmem:[%s2141_s1 + $0x130] sm:$0xf0] }
  0x2b   :  { %v118_v36 = vld [vmem:[%s2143_s2 + $0x8] sm:$0xff]  ;;  %v1208_v39 = vor.u32 %v1396_v28, %v1205_v30  ;;  %v1308_v2 = vor.u32 %v1425_v61, %v1307_v60  ;;  %v1189_v14 = vld [vmem:[%s2141_s1 + $0x1f8] sm:$0xf0]  ;;  %v1088_v18 = vor.u32 %v1365_v11, %v1085_v12  ;;  %v1243_v22 = vld [vmem:[%s2141_s1 + $0x250] sm:$0xf] }
  0x2c   :  { %v1348_v44 = vld [vmem:[%s2141_s1 + $0x8c] sm:$0xf]  ;;  %126 = vperm.xlu0 %1428, %v118_v36   ;;  %v1409_v23 = vld [vmem:[%s2141_s1 + $0x26c] sm:$0xf0]  ;;  %v1357_v26 = vld [vmem:[%s2141_s1 + $0xd4] sm:$0xf] }
  0x2d   :  { %727 = vmatpush.bf16.msrb.mxu1 %v1044_v6  ;;  %744 = vmatpush.bf16.msrb.mxu3 %v1204_v7  ;;  %v1013_v45 = vld [vmem:[%s2141_s1 + $0xa8] sm:$0xf0]  ;;  %v1120_v6 = vor.u32 %v1373_v63, %v1117_v0  ;;  %v1019_v7 = vld [vmem:[%s2141_s1 + $0x90] sm:$0xf]  ;;  %v1053_v27 = vld [vmem:[%s2141_s1 + $0xf0] sm:$0xf0]  ;;  %v1244_v30 = vor.u32 %v1409_v23, %v1243_v22 }
  0x2e   :  { %753 = vmatpush.bf16.msrb.mxu0 %v1112_v8  ;;  %770 = vmatpush.bf16.msrb.mxu2 %v1272_v9  ;;  %v1016_v53 = vor.u32 %v1348_v44, %v1013_v45  ;;  %v1340_v54 = vld [vmem:[%s2141_s1 + $0x4c] sm:$0xf]  ;;  %v1275_v8 = vld [vmem:[%s2141_s1 + $0x290] sm:$0xf]  ;;  %v1020_v17 = vor.u32 %v1353_v10, %v1019_v7  ;;  %v1056_v32 = vor.u32 %v1357_v26, %v1053_v27  ;;  %v1187_v41 = vld [vmem:[%s2141_s1 + $0x1d8] sm:$0xf] }
  0x2f   :  { %v981_v55 = vld [vmem:[%s2141_s1 + $0x68] sm:$0xf0]  ;;  %v1417_v9 = vld [vmem:[%s2141_s1 + $0x2ac] sm:$0xf0]  ;;  %v1374_v44 = vld [vmem:[%s2141_s1 + $0x15c] sm:$0xf] }
  0x30   :  { %1323 = vmatmul.msk.bf16.vlgmr.msrb.gmra.mxu3 %vm638_vm1, %v1615_v21  ;;  %v984_v1 = vor.u32 %v1340_v54, %v981_v55  ;;  %v1332_v3 = vld [vmem:[%s2141_s1 + $0xc] sm:$0xf]  ;;  %v1276_v16 = vor.u32 %v1417_v9, %v1275_v8  ;;  %v955_v33 = vld [vmem:[%s2141_s1 + $0x10] sm:$0xf]  ;;  %v1125_v45 = vld [vmem:[%s2141_s1 + $0x178] sm:$0xf0] }
  0x31   :  { %779 = vmatpush.bf16.msra.mxu3 %v1180_v13  ;;  %728 = vmatpush.bf16.msrb.mxu1 %v1012_v20  ;;  %v949_v4 = vld [vmem:[%s2141_s1 + $0x28] sm:$0xf0]  ;;  %v1390_v13 = vld [vmem:[%s2141_s1 + $0x1dc] sm:$0xf]  ;;  %v987_v20 = vld [vmem:[%s2141_s1 + $0x50] sm:$0xf] }
  0x32   :  { %754 = vmatpush.bf16.msrb.mxu0 %v1080_v24  ;;  %771 = vmatpush.bf16.msrb.mxu2 %v1240_v25  ;;  %v952_v15 = vor.u32 %v1332_v3, %v949_v4  ;;  %v435_v24 = vunpack.c.h.b16 %v1746_v19  ;;  %v1345_v25 = vld [vmem:[%s2141_s1 + $0x6c] sm:$0xf0]  ;;  %v1192_v28 = vor.u32 %v1390_v13, %v1189_v14  ;;  %v1157_v19 = vld [vmem:[%s2141_s1 + $0x1b8] sm:$0xf0]  ;;  %v1421_v54 = vld [vmem:[%s2141_s1 + $0x2d4] sm:$0xf] }
  0x33   :  { %v988_v31 = vor.u32 %v1345_v25, %v987_v20  ;;  %v1211_v34 = vld [vmem:[%s2141_s1 + $0x210] sm:$0xf]  ;;  %v116_v49 = vld [vmem:[%s2141_s1 + $0x318] sm:$0xff]  ;;  %v1309_v55 = vld [vmem:[%s2141_s1 + $0x2f0] sm:$0xf0] }
  0x34   :  { %v1401_v35 = vld [vmem:[%s2141_s1 + $0x22c] sm:$0xf0]  ;;  %v539_v36 = vpack.c.b16 %v435_v24, %v435_v24  ;;  %v1155_v56 = vld [vmem:[%s2141_s1 + $0x198] sm:$0xf]  ;;  %v1366_v60 = vld [vmem:[%s2141_s1 + $0x11c] sm:$0xf]  ;;  %v1312_v63 = vor.u32 %v1421_v54, %v1309_v55 }
  0x35   :  { %780 = vmatpush.bf16.msra.mxu3 %v1148_v29  ;;  %729 = vmatpush.bf16.msrb.mxu1 %v980_v37  ;;  %v1382_v29 = vld [vmem:[%s2141_s1 + $0x19c] sm:$0xf]  ;;  %v1337_v37 = vld [vmem:[%s2141_s1 + $0x2c] sm:$0xf0]  ;;  %v1413_v3 = vld [vmem:[%s2141_s1 + $0x294] sm:$0xf] }
  0x36   :  { %755 = vmatpush.bf16.msrb.mxu0 %v1048_v38  ;;  %772 = vmatpush.bf16.msrb.mxu2 %v1208_v39  ;;  %v1349_v38 = vld [vmem:[%s2141_s1 + $0x94] sm:$0xf]  ;;  %v1160_v40 = vor.u32 %v1382_v29, %v1157_v19  ;;  %v956_v46 = vor.u32 %v1337_v37, %v955_v33  ;;  %v659_v48 = vsel %vm642_vm0, %v539_v36, 0  ;;  %v1093_v61 = vld [vmem:[%s2141_s1 + $0x138] sm:$0xf0] }
  0x37   :  { %v1021_v39 = vld [vmem:[%s2141_s1 + $0xb0] sm:$0xf0]  ;;  %v1096_v7 = vor.u32 %v1366_v60, %v1093_v61  ;;  %v1358_v9 = vld [vmem:[%s2141_s1 + $0xdc] sm:$0xf]  ;;  %v1362_v33 = vld [vmem:[%s2141_s1 + $0xf4] sm:$0xf0] }
  0x38   :  { %v1024_v47 = vor.u32 %v1349_v38, %v1021_v39  ;;  %v1277_v4 = vld [vmem:[%s2141_s1 + $0x2b0] sm:$0xf0]  ;;  %v1061_v10 = vld [vmem:[%s2141_s1 + $0xf8] sm:$0xf0] }
  0x39   :  { %781 = vmatpush.bf16.msra.mxu3 %v1116_v42  ;;  %730 = vmatpush.bf16.msrb.mxu1 %v948_v52  ;;  %v1394_v42 = vld [vmem:[%s2141_s1 + $0x1f4] sm:$0xf0]  ;;  %v1341_v52 = vld [vmem:[%s2141_s1 + $0x54] sm:$0xf]  ;;  %v1280_v12 = vor.u32 %v1413_v3, %v1277_v4  ;;  %v1422_v20 = vld [vmem:[%s2141_s1 + $0x2dc] sm:$0xf]  ;;  %v1064_v23 = vor.u32 %v1358_v9, %v1061_v10 }
  0x3a   :  { %807 = vmatpush.bf16.msra.mxu2 %v1184_v43  ;;  %756 = vmatpush.bf16.msrb.mxu0 %v1016_v53  ;;  %v1212_v43 = vor.u32 %v1401_v35, %v1211_v34  ;;  %v1188_v51 = vor.u32 %v1394_v42, %v1187_v41  ;;  %v989_v53 = vld [vmem:[%s2141_s1 + $0x70] sm:$0xf0]  ;;  %v1317_v22 = vld [vmem:[%s2141_s1 + $0x2f8] sm:$0xf0]  ;;  %v1338_v3 = vld [vmem:[%s2141_s1 + $0x34] sm:$0xf0] }
  0x3b   :  { %1324 = vmatmul.msk.bf16.vlgmr.msrb.gmra.mxu2 %vm638_vm1, %v1615_v21  ;;  %v992_v62 = vor.u32 %v1341_v52, %v989_v53  ;;  %v1405_v14 = vld [vmem:[%s2141_s1 + $0x254] sm:$0xf]  ;;  %v1350_v25 = vld [vmem:[%s2141_s1 + $0x9c] sm:$0xf]  ;;  %v1251_v4 = vld [vmem:[%s2141_s1 + $0x258] sm:$0xf] }
  0x3c   :  { %731 = vmatmul.bf16.vlgmr.msrb.gmra.mxu1 %v1673_v50  ;;  %v1029_v26 = vld [vmem:[%s2141_s1 + $0xb8] sm:$0xf0]  ;;  %v1397_v29 = vld [vmem:[%s2141_s1 + $0x214] sm:$0xf]  ;;  %v1402_v9 = vld [vmem:[%s2141_s1 + $0x234] sm:$0xf0] }
  0x3d   :  { %796 = vmatpush.bf16.msra.mxu1 %v656_v58  ;;  %782 = vmatpush.bf16.msra.mxu3 %v1084_v57  ;;  %v1386_v57 = vld [vmem:[%s2141_s1 + $0x1b4] sm:$0xf0]  ;;  %v1128_v58 = vor.u32 %v1374_v44, %v1125_v45  ;;  %v1032_v34 = vor.u32 %v1350_v25, %v1029_v26  ;;  %v1414_v35 = vld [vmem:[%s2141_s1 + $0x29c] sm:$0xf] }
  0x3e   :  { %808 = vmatpush.bf16.msra.mxu2 %v1152_v59  ;;  %757 = vmatpush.bf16.msrb.mxu0 %v984_v1  ;;  %v437_v59 = vunpack.c.h.b16 %v116_v49  ;;  %v1156_v0 = vor.u32 %v1386_v57, %v1155_v56  ;;  %v1333_v1 = vld [vmem:[%s2141_s1 + $0x14] sm:$0xf]  ;;  %v1285_v36 = vld [vmem:[%s2141_s1 + $0x2b8] sm:$0xf0]  ;;  %v1354_v44 = vld [vmem:[%s2141_s1 + $0xb4] sm:$0xf0] }
  0x3f   :  { %v1342_v37 = vld [vmem:[%s2141_s1 + $0x5c] sm:$0xf]  ;;  %v1288_v42 = vor.u32 %v1414_v35, %v1285_v36  ;;  %v1315_v45 = vld [vmem:[%s2141_s1 + $0x2d8] sm:$0xf] }
  0x40   :  { %v541_v8 = vpack.c.b16 %v437_v59, %v437_v59  ;;  %v997_v38 = vld [vmem:[%s2141_s1 + $0x78] sm:$0xf0]  ;;  %v995_v56 = vld [vmem:[%s2141_s1 + $0x58] sm:$0xf] }
  0x41   :  { %797 = vmatpush.bf16.msra.mxu1 %v1308_v2  ;;  %783 = vmatpush.bf16.msra.mxu3 %v1052_v5  ;;  %v957_v2 = vld [vmem:[%s2141_s1 + $0x30] sm:$0xf0]  ;;  %v1123_v5 = vld [vmem:[%s2141_s1 + $0x158] sm:$0xf]  ;;  %v965_v52 = vld [vmem:[%s2141_s1 + $0x38] sm:$0xf0] }
  0x42   :  { %809 = vmatpush.bf16.msra.mxu2 %v1120_v6  ;;  %758 = vmatpush.bf16.msrb.mxu0 %v952_v15  ;;  %v1378_v6 = vld [vmem:[%s2141_s1 + $0x174] sm:$0xf0]  ;;  %v960_v11 = vor.u32 %v1333_v1, %v957_v2  ;;  %v1245_v15 = vld [vmem:[%s2141_s1 + $0x270] sm:$0xf0]  ;;  %v665_v24 = vsel %vm642_vm0, %v541_v8, 0 }
  0x43   :  { %v1124_v13 = vor.u32 %v1378_v6, %v1123_v5  ;;  %v1248_v27 = vor.u32 %v1405_v14, %v1245_v15  ;;  %v1346_v57 = vld [vmem:[%s2141_s1 + $0x74] sm:$0xf0]  ;;  %v1398_v60 = vld [vmem:[%s2141_s1 + $0x21c] sm:$0xf] }
  0x44   :  { %v1418_v59 = vld [vmem:[%s2141_s1 + $0x2b4] sm:$0xf0]  ;;  %v1221_v61 = vld [vmem:[%s2141_s1 + $0x238] sm:$0xf0] }
  0x45   :  { %798 = vmatpush.bf16.msra.mxu1 %v1276_v16  ;;  %784 = vmatpush.bf16.msra.mxu3 %v1020_v17  ;;  %v1091_v16 = vld [vmem:[%s2141_s1 + $0x118] sm:$0xf]  ;;  %v436_v17 = vunpack.c.l.b16 %v116_v49  ;;  %v1000_v49 = vor.u32 %v1342_v37, %v997_v38  ;;  %v1224_v1 = vor.u32 %v1398_v60, %v1221_v61 }
  0x46   :  { %810 = vmatpush.bf16.msra.mxu2 %v1088_v18  ;;  %863 = vmatpush.bf16.msra.mxu0 %v1192_v28  ;;  %v1370_v18 = vld [vmem:[%s2141_s1 + $0x134] sm:$0xf0] }
  0x47   :  { %759 = vmatmul.bf16.vlgmr.msrb.gmra.mxu0 %v1673_v50  ;;  %v1092_v28 = vor.u32 %v1370_v18, %v1091_v16  ;;  %v540_v19 = vpack.c.b16 %v436_v17, %v436_v17  ;;  %v963_v2 = vld [vmem:[%s2141_s1 + $0x18] sm:$0xf] }
  0x48   :  { %v1410_v5 = vld [vmem:[%s2141_s1 + $0x274] sm:$0xf0]  ;;  %v964_v6 = vor.u32 %v1338_v3, %v963_v2 }
  0x49   :  { %799 = vmatpush.bf16.msra.mxu1 %v1244_v30  ;;  %785 = vmatpush.bf16.msra.mxu3 %v988_v31  ;;  %v1320_v30 = vor.u32 %v1422_v20, %v1317_v22  ;;  %v1213_v31 = vld [vmem:[%s2141_s1 + $0x230] sm:$0xf0]  ;;  %v662_v41 = vsel %vm642_vm0, %v540_v19, 0  ;;  %v1219_v8 = vld [vmem:[%s2141_s1 + $0x218] sm:$0xf] }
  0x4a   :  { %811 = vmatpush.bf16.msra.mxu2 %v1056_v32  ;;  %864 = vmatpush.bf16.msra.mxu0 %v1160_v40  ;;  %v1059_v32 = vld [vmem:[%s2141_s1 + $0xd8] sm:$0xf]  ;;  %v1216_v39 = vor.u32 %v1397_v29, %v1213_v31  ;;  %v1220_v10 = vor.u32 %v1402_v9, %v1219_v8 }
  0x4b   :  { %v1060_v40 = vor.u32 %v1362_v33, %v1059_v32 }
  0x4d   :  { %800 = vmatpush.bf16.msra.mxu1 %v1212_v43  ;;  %786 = vmatpush.bf16.msra.mxu3 %v956_v46  ;;  %v1027_v43 = vld [vmem:[%s2141_s1 + $0x98] sm:$0xf] }
  0x4e   :  { %812 = vmatpush.bf16.msra.mxu2 %v1024_v47  ;;  %865 = vmatpush.bf16.msra.mxu0 %v1128_v58  ;;  %v1426_v46 = vld [vmem:[%s2141_s1 + $0x2f4] sm:$0xf0]  ;;  %v1406_v47 = vld [vmem:[%s2141_s1 + $0x25c] sm:$0xf]  ;;  %v1028_v53 = vor.u32 %v1354_v44, %v1027_v43 }
  0x4f   :  { %v1316_v54 = vor.u32 %v1426_v46, %v1315_v45  ;;  %v1283_v58 = vld [vmem:[%s2141_s1 + $0x298] sm:$0xf] }
  0x50   :  { %1325 = vmatmul.msk.bf16.vlgmr.msra.gmra.mxu1 %vm638_vm1, %v1615_v21  ;;  %787 = vmatmul.bf16.vlgmr.msra.gmra.mxu3 %v1673_v50 }
  0x51   :  { %824 = vmatpush.bf16.msrb.mxu3 %v659_v48  ;;  %835 = vmatpush.bf16.msrb.mxu1 %v1188_v51  ;;  %v1253_v48 = vld [vmem:[%s2141_s1 + $0x278] sm:$0xf0] }
  0x52   :  { %813 = vmatpush.bf16.msra.mxu2 %v992_v62  ;;  %866 = vmatpush.bf16.msra.mxu0 %v1096_v7  ;;  %v1334_v51 = vld [vmem:[%s2141_s1 + $0x1c] sm:$0xf]  ;;  %v1256_v55 = vor.u32 %v1406_v47, %v1253_v48  ;;  %v1252_v7 = vor.u32 %v1410_v5, %v1251_v4 }
  0x53   :  { %v968_v62 = vor.u32 %v1334_v51, %v965_v52 }
  0x55   :  { %825 = vmatpush.bf16.msrb.mxu3 %v1312_v63  ;;  %836 = vmatpush.bf16.msrb.mxu1 %v1156_v0  ;;  %v996_v63 = vor.u32 %v1346_v57, %v995_v56  ;;  %v1284_v0 = vor.u32 %v1418_v59, %v1283_v58 }
  0x56   :  { %814 = vmatpush.bf16.msra.mxu2 %v960_v11  ;;  %867 = vmatpush.bf16.msra.mxu0 %v1064_v23 }
  0x59   :  { %826 = vmatpush.bf16.msrb.mxu3 %v1280_v12  ;;  %837 = vmatpush.bf16.msrb.mxu1 %v1124_v13 }
  0x5a   :  { %880 = vmatpush.bf16.msrb.mxu2 %v665_v24  ;;  %868 = vmatpush.bf16.msra.mxu0 %v1032_v34 }
  0x5b   :  { %815 = vmatmul.bf16.vlgmr.msra.gmra.mxu2 %v1673_v50 }
  0x5d   :  { %827 = vmatpush.bf16.msrb.mxu3 %v1248_v27  ;;  %838 = vmatpush.bf16.msrb.mxu1 %v1092_v28 }
  0x5e   :  { %881 = vmatpush.bf16.msrb.mxu2 %v1320_v30  ;;  %869 = vmatpush.bf16.msra.mxu0 %v1000_v49 }
  0x61   :  { %828 = vmatpush.bf16.msrb.mxu3 %v1216_v39  ;;  %839 = vmatpush.bf16.msrb.mxu1 %v1060_v40 }
  0x62   :  { %882 = vmatpush.bf16.msrb.mxu2 %v1288_v42  ;;  %870 = vmatpush.bf16.msra.mxu0 %v968_v62 }
  0x64   :  { %1326 = vmatmul.msk.bf16.vlgmr.msrb.gmra.mxu3 %vm638_vm1, %v1615_v21 }
  0x65   :  { %852 = vmatpush.bf16.msra.mxu3 %v662_v41  ;;  %840 = vmatpush.bf16.msrb.mxu1 %v1028_v53 }
  0x66   :  { %883 = vmatpush.bf16.msrb.mxu2 %v1256_v55  ;;  %871 = vmatmul.bf16.vlgmr.msra.gmra.mxu0 %v1673_v50 }
  0x69   :  { %853 = vmatpush.bf16.msra.mxu3 %v1316_v54  ;;  %841 = vmatpush.bf16.msrb.mxu1 %v996_v63 }
  0x6a   :  { %884 = vmatpush.bf16.msrb.mxu2 %v1224_v1 }
  0x6d   :  { %854 = vmatpush.bf16.msra.mxu3 %v1284_v0  ;;  %1328 = vmatmul.msk.bf16.vlgmr.msrb.gmra.mxu2 %vm638_vm1, %v1615_v21 }
  0x6e   :  { %842 = vmatpush.bf16.msrb.mxu1 %v964_v6 }
  0x71   :  { %855 = vmatpush.bf16.msra.mxu3 %v1252_v7  ;;  %843 = vmatmul.bf16.vlgmr.msrb.gmra.mxu1 %v1673_v50 }
  0x75   :  { %856 = vmatpush.bf16.msra.mxu3 %v1220_v10 }
  0x78   :  { %1327 = vmatmul.msk.bf16.vlgmr.msra.gmra.mxu3 %vm638_vm1, %v1615_v21 }
  0x92   :  { %v2096_v11 = vpop.permute.xlu0 %121 }
  0x99   :  { %v690_v14 = vpop.f32.mrf.mxu1 }
  0x9e   :  { %v2099_v18 = vpop.permute.xlu0 %126 }
  0x9f   :  { %v718_v15 = vpop.f32.mrf.mxu3 }
  0xa1   :  { %v692_v21 = vpop.f32.mrf.mxu1 }
  0xa4   :  { %v676_v12 = vpop.f32.mrf.mxu0 }
  0xa5   :  { %v677_v13 = vadd.f32 %v676_v12, %v2096_v11 }
  0xa7   :  { %v691_v16 = vadd.f32 %v690_v14, %v677_v13  ;;  %v720_v19 = vpop.f32.mrf.mxu3 }
  0xa9   :  { %v891_v23 = vmax.f32 %v691_v16, 0.0 }
  0xaa   :  { %v704_v17 = vpop.f32.mrf.mxu2 }
  0xab   :  { %v705_v20 = vadd.f32 %v704_v17, %v2096_v11 }
  0xac   :  { %v678_v22 = vpop.f32.mrf.mxu0 }
  0xad   :  { %v719_v50 = vadd.f32 %v718_v15, %v705_v20  ;;  %v679_v24 = vadd.f32 %v678_v22, %v2099_v18 }
  0xaf   :  { %v892_v25 = vmax.f32 %v719_v50, 0.0  ;;  %v693_v27 = vadd.f32 %v692_v21, %v679_v24 }
  0xb1   :  { %v907_v26 = vpack.c.bf16 %v892_v25, %v891_v23  ;;  %v899_v30 = vmax.f32 %v693_v27, 0.0 }
  0xb2   :  { %v706_v28 = vpop.f32.mrf.mxu2 }
  0xb3   :  { %915 = vst [vmem:[%s2144_s3] sm:$0xff] %v907_v26  ;;  %v707_v29 = vadd.f32 %v706_v28, %v2099_v18  ;;  %v746_v35 = vpop.f32.mrf.mxu3 }
  0xb5   :  { %v721_v31 = vadd.f32 %v720_v19, %v707_v29 }
  0xb7   :  { %v900_v32 = vmax.f32 %v721_v31, 0.0 }
  0xb9   :  { %v911_v33 = vpack.c.bf16 %v900_v32, %v899_v30  ;;  %v732_v34 = vpop.f32.mrf.mxu1 }
  0xba   :  { %v733_v36 = vadd.f32 %v732_v34, %v2096_v11 }
  0xbb   :  { %921 = vst [vmem:[%s2144_s3 + $0x20] sm:$0xff] %v911_v33  ;;  %v748_v46 = vpop.f32.mrf.mxu3 }
  0xbc   :  { %v747_v39 = vadd.f32 %v746_v35, %v733_v36 }
  0xbe   :  { %v774_v37 = vpop.f32.mrf.mxu2  ;;  %v893_v43 = vmax.f32 %v747_v39, 0.0 }
  0xc1   :  { %v734_v41 = vpop.f32.mrf.mxu1 }
  0xc2   :  { %v735_v44 = vadd.f32 %v734_v41, %v2099_v18 }
  0xc4   :  { %v760_v38 = vpop.f32.mrf.mxu0  ;;  %v749_v51 = vadd.f32 %v748_v46, %v735_v44 }
  0xc5   :  { %v761_v40 = vadd.f32 %v760_v38, %v2096_v11 }
  0xc6   :  { %v776_v49 = vpop.f32.mrf.mxu2  ;;  %v901_v54 = vmax.f32 %v749_v51, 0.0 }
  0xc7   :  { %v775_v42 = vadd.f32 %v774_v37, %v761_v40 }
  0xc9   :  { %v894_v45 = vmax.f32 %v775_v42, 0.0 }
  0xcb   :  { %v908_v47 = vpack.c.bf16 %v894_v45, %v893_v43 }
  0xcc   :  { %v762_v48 = vpop.f32.mrf.mxu0 }
  0xcd   :  { %916 = vst [vmem:[%s2144_s3 + $0x8] sm:$0xff] %v908_v47  ;;  %v763_v52 = vadd.f32 %v762_v48, %v2099_v18  ;;  %v802_v60 = vpop.f32.mrf.mxu1 }
  0xcf   :  { %v777_v53 = vadd.f32 %v776_v49, %v763_v52 }
  0xd1   :  { %v902_v55 = vmax.f32 %v777_v53, 0.0 }
  0xd3   :  { %v912_v56 = vpack.c.bf16 %v902_v55, %v901_v54  ;;  %v788_v57 = vpop.f32.mrf.mxu3 }
  0xd4   :  { %v789_v61 = vadd.f32 %v788_v57, %v2096_v11 }
  0xd5   :  { %922 = vst [vmem:[%s2144_s3 + $0x28] sm:$0xff] %v912_v56  ;;  %v804_v5 = vpop.f32.mrf.mxu1 }
  0xd6   :  { %v803_v63 = vadd.f32 %v802_v60, %v789_v61 }
  0xd8   :  { %v895_v3 = vmax.f32 %v803_v63, 0.0 }
  0xdb   :  { %v790_v58 = vpop.f32.mrf.mxu3 }
  0xdc   :  { %v791_v4 = vadd.f32 %v790_v58, %v2099_v18 }
  0xde   :  { %v816_v59 = vpop.f32.mrf.mxu2  ;;  %v805_v8 = vadd.f32 %v804_v5, %v791_v4 }
  0xdf   :  { %v817_v62 = vadd.f32 %v816_v59, %v2096_v11 }
  0xe0   :  { %v903_v15 = vmax.f32 %v805_v8, 0.0 }
  0xe3   :  { %v872_v10 = vpop.f32.mrf.mxu0 }
  0xe4   :  { %v873_v14 = vadd.f32 %v872_v10, %v2096_v11 }
  0xe6   :  { %v818_v2 = vpop.f32.mrf.mxu2 }
  0xe7   :  { %v830_v0 = vpop.f32.mrf.mxu3  ;;  %v819_v9 = vadd.f32 %v818_v2, %v2099_v18 }
  0xe8   :  { %v831_v1 = vadd.f32 %v830_v0, %v817_v62 }
  0xea   :  { %v896_v6 = vmax.f32 %v831_v1, 0.0 }
  0xeb   :  { %v874_v24 = vpop.f32.mrf.mxu0 }
  0xec   :  { %v909_v7 = vpack.c.bf16 %v896_v6, %v895_v3  ;;  %v875_v27 = vadd.f32 %v874_v24, %v2099_v18 }
  0xee   :  { %917 = vst [vmem:[%s2144_s3 + $0x10] sm:$0xff] %v909_v7  ;;  %v844_v16 = vpop.f32.mrf.mxu1 }
  0xef   :  { %v832_v12 = vpop.f32.mrf.mxu3  ;;  %v845_v23 = vadd.f32 %v844_v16, %v2096_v11 }
  0xf0   :  { %v833_v13 = vadd.f32 %v832_v12, %v819_v9  ;;  %v886_v20 = vpop.f32.mrf.mxu2 }
  0xf1   :  { %v887_v50 = vadd.f32 %v886_v20, %v873_v14 }
  0xf2   :  { %v904_v17 = vmax.f32 %v833_v13, 0.0 }
  0xf3   :  { %v898_v21 = vmax.f32 %v887_v50, 0.0 }
  0xf4   :  { %v913_v22 = vpack.c.bf16 %v904_v17, %v903_v15 }
  0xf6   :  { %923 = vst [vmem:[%s2144_s3 + $0x30] sm:$0xff] %v913_v22  ;;  %v846_v29 = vpop.f32.mrf.mxu1 }
  0xf7   :  { %v847_v11 = vadd.f32 %v846_v29, %v2099_v18 }
  0xf8   :  { %v888_v19 = vpop.f32.mrf.mxu2 }
  0xf9   :  { %v889_v31 = vadd.f32 %v888_v19, %v875_v27 }
  0xfb   :  { %v858_v25 = vpop.f32.mrf.mxu3  ;;  %v906_v34 = vmax.f32 %v889_v31, 0.0 }
  0xfc   :  { %v859_v26 = vadd.f32 %v858_v25, %v845_v23 }
  0xfe   :  { %v897_v28 = vmax.f32 %v859_v26, 0.0 }
 0x100   :  { %v910_v30 = vpack.c.bf16 %v898_v21, %v897_v28 }
 0x102   :  { %920 = vst.msk [vmem:[%s2144_s3 + $0x18] sm:$0xff] %vm919_vm3, %v910_v30 }
 0x103   :  { %v860_v32 = vpop.f32.mrf.mxu3 }
 0x104   :  { %v861_v33 = vadd.f32 %v860_v32, %v847_v11 }
 0x106   :  { %v905_v35 = vmax.f32 %v861_v33, 0.0 }
 0x108   :  { %v914_v36 = vpack.c.bf16 %v906_v34, %v905_v35 }
 0x10a   :  { %924 = vst.msk [vmem:[%s2144_s3 + $0x38] sm:$0xff] %vm919_vm3, %v914_v36 }

// kernel: ae_forward.9
= control target key start
LH: loop header
LB: loop body
LE: loop exit
PB: predicated region body
PF: predicated region fallthrough
CT: control target
= control target key end

     0   :  { %vm385_vm0 = vcmask 130048   ;;  %vm556_vm1 = vcmask 1043456   ;;  %vm557_vm2 = vcmask 277508   ;;  %s1303_s1 = inlined_call_operand.vmem [shape: bf16[400,162], index: 1, kind: input, shape index: {}]   ;;  %s1304_s0 = inlined_call_operand.vmem [shape: bf16[32,400], index: 0, kind: input, shape index: {}]   ;;  %s1305_s2 = inlined_call_operand.vmem [shape: f32[32,1], index: 2, kind: input, shape index: {}]   ;;  %s1306_s3 = inlined_call_operand.vmem [shape: bf16[32,162], index: 3, kind: output, shape index: {}]  }
   0x1   :  { %v657_v0 = vld [vmem:[%s1303_s1 + $0x70] sm:$0xf]  ;;  %v826_v1 = vld [vmem:[%s1303_s1 + $0x74] sm:$0xf0]  ;;  %v793_v9 = vld [vmem:[%s1303_s1 + $0x180] sm:$0xf] }
   0x2   :  { %v721_v2 = vld [vmem:[%s1303_s1 + $0xf0] sm:$0xf]  ;;  %v658_v3 = vor.u32 %v826_v1, %v657_v0  ;;  %v842_v4 = vld [vmem:[%s1303_s1 + $0xf4] sm:$0xf0]  ;;  %v860_v10 = vld [vmem:[%s1303_s1 + $0x184] sm:$0xf0] }
   0x3   :  { %v785_v5 = vld [vmem:[%s1303_s1 + $0x170] sm:$0xf]  ;;  %v858_v6 = vld [vmem:[%s1303_s1 + $0x174] sm:$0xf0]  ;;  %v722_v7 = vor.u32 %v842_v4, %v721_v2  ;;  %v804_v11 = vld [vmem:[%s1304_s0 + $0xc] sm:$0xf]  ;;  %v794_v12 = vor.u32 %v860_v10, %v793_v9 }
   0x4   :  { %v786_v8 = vor.u32 %v858_v6, %v785_v5  ;;  %392 = vmatpush.bf16.msra.mxu0 %v658_v3  ;;  %v579_v13 = vld [vmem:[%s1304_s0 + $0x18] sm:$0xf0]  ;;  %v649_v14 = vld [vmem:[%s1303_s1 + $0x60] sm:$0xf]  ;;  %v824_v15 = vld [vmem:[%s1303_s1 + $0x64] sm:$0xf0] }
   0x5   :  { %411 = vmatpush.bf16.msra.mxu1 %v722_v7  ;;  %v929_v16 = vor.u32 %v804_v11, %v579_v13  ;;  %v650_v17 = vor.u32 %v824_v15, %v649_v14  ;;  %v713_v18 = vld [vmem:[%s1303_s1 + $0xe0] sm:$0xf]  ;;  %v840_v19 = vld [vmem:[%s1303_s1 + $0xe4] sm:$0xf0]  ;;  %456 = vmatpush.bf16.msra.mxu3 %v794_v12  ;;  %v825_v23 = vld [vmem:[%s1303_s1 + $0x74] sm:$0xf] }
   0x6   :  { %430 = vmatpush.bf16.msra.mxu2 %v786_v8  ;;  %v777_v20 = vld [vmem:[%s1303_s1 + $0x160] sm:$0xf]  ;;  %v714_v21 = vor.u32 %v840_v19, %v713_v18  ;;  %v856_v22 = vld [vmem:[%s1303_s1 + $0x164] sm:$0xf0]  ;;  %v659_v24 = vld [vmem:[%s1303_s1 + $0x78] sm:$0xf0] }
   0x7   :  { %v778_v25 = vor.u32 %v856_v22, %v777_v20  ;;  %v662_v26 = vor.u32 %v825_v23, %v659_v24  ;;  %v641_v27 = vld [vmem:[%s1303_s1 + $0x50] sm:$0xf]  ;;  %v822_v28 = vld [vmem:[%s1303_s1 + $0x54] sm:$0xf0]  ;;  %v823_v35 = vld [vmem:[%s1303_s1 + $0x64] sm:$0xf] }
   0x8   :  { %v705_v29 = vld [vmem:[%s1303_s1 + $0xd0] sm:$0xf]  ;;  %393 = vmatpush.bf16.msra.mxu0 %v650_v17  ;;  %v642_v30 = vor.u32 %v822_v28, %v641_v27  ;;  %v838_v31 = vld [vmem:[%s1303_s1 + $0xd4] sm:$0xf0]  ;;  %799 = vmatmul.msk.bf16.vlgmr.msra.gmra.mxu3 %vm385_vm0, %v929_v16  ;;  %v651_v36 = vld [vmem:[%s1303_s1 + $0x68] sm:$0xf0] }
   0x9   :  { %v769_v32 = vld [vmem:[%s1303_s1 + $0x150] sm:$0xf]  ;;  %v854_v33 = vld [vmem:[%s1303_s1 + $0x154] sm:$0xf0]  ;;  %412 = vmatpush.bf16.msra.mxu1 %v714_v21  ;;  %v706_v34 = vor.u32 %v838_v31, %v705_v29  ;;  %v633_v37 = vld [vmem:[%s1303_s1 + $0x40] sm:$0xf]  ;;  %468 = vmatpush.bf16.msrb.mxu3 %v662_v26  ;;  %v654_v39 = vor.u32 %v823_v35, %v651_v36 }
   0xa   :  { %431 = vmatpush.bf16.msra.mxu2 %v778_v25  ;;  %v770_v38 = vor.u32 %v854_v33, %v769_v32  ;;  %v820_v40 = vld [vmem:[%s1303_s1 + $0x44] sm:$0xf0]  ;;  %v697_v41 = vld [vmem:[%s1303_s1 + $0xc0] sm:$0xf]  ;;  %v821_v45 = vld [vmem:[%s1303_s1 + $0x54] sm:$0xf] }
   0xb   :  { %v836_v42 = vld [vmem:[%s1303_s1 + $0xc4] sm:$0xf0]  ;;  %v761_v43 = vld [vmem:[%s1303_s1 + $0x140] sm:$0xf]  ;;  %v634_v46 = vor.u32 %v820_v40, %v633_v37  ;;  %v643_v47 = vld [vmem:[%s1303_s1 + $0x58] sm:$0xf0] }
   0xc   :  { %v852_v44 = vld [vmem:[%s1303_s1 + $0x144] sm:$0xf0]  ;;  %394 = vmatpush.bf16.msra.mxu0 %v642_v30  ;;  %v698_v48 = vor.u32 %v836_v42, %v697_v41  ;;  %v625_v49 = vld [vmem:[%s1303_s1 + $0x30] sm:$0xf]  ;;  %v818_v50 = vld [vmem:[%s1303_s1 + $0x34] sm:$0xf0]  ;;  %v646_v52 = vor.u32 %v821_v45, %v643_v47 }
   0xd   :  { %413 = vmatpush.bf16.msra.mxu1 %v706_v34  ;;  %469 = vmatpush.bf16.msrb.mxu3 %v654_v39  ;;  %v762_v51 = vor.u32 %v852_v44, %v761_v43  ;;  %v689_v53 = vld [vmem:[%s1303_s1 + $0xb0] sm:$0xf]  ;;  %v834_v54 = vld [vmem:[%s1303_s1 + $0xb4] sm:$0xf0]  ;;  %v819_v57 = vld [vmem:[%s1303_s1 + $0x44] sm:$0xf]  ;;  %v626_v59 = vor.u32 %v818_v50, %v625_v49 }
   0xe   :  { %432 = vmatpush.bf16.msra.mxu2 %v770_v38  ;;  %v753_v55 = vld [vmem:[%s1303_s1 + $0x130] sm:$0xf]  ;;  %v850_v56 = vld [vmem:[%s1303_s1 + $0x134] sm:$0xf0]  ;;  %v635_v58 = vld [vmem:[%s1303_s1 + $0x48] sm:$0xf0]  ;;  %v690_v61 = vor.u32 %v834_v54, %v689_v53 }
   0xf   :  { %v808_v60 = vld [vmem:[%s1304_s0 + $0x2c] sm:$0xf]  ;;  %v595_v62 = vld [vmem:[%s1304_s0 + $0x38] sm:$0xf0]  ;;  %v617_v63 = vld [vmem:[%s1303_s1 + $0x20] sm:$0xf]  ;;  %v754_v1 = vor.u32 %v850_v56, %v753_v55  ;;  %v638_v2 = vor.u32 %v819_v57, %v635_v58 }
  0x10   :  { %395 = vmatpush.bf16.msra.mxu0 %v634_v46  ;;  %v816_v0 = vld [vmem:[%s1303_s1 + $0x24] sm:$0xf0]  ;;  %v681_v3 = vld [vmem:[%s1303_s1 + $0xa0] sm:$0xf]  ;;  %v817_v7 = vld [vmem:[%s1303_s1 + $0x34] sm:$0xf]  ;;  %v1053_v10 = vor.u32 %v808_v60, %v595_v62 }
  0x11   :  { %414 = vmatpush.bf16.msra.mxu1 %v698_v48  ;;  %470 = vmatpush.bf16.msrb.mxu3 %v646_v52  ;;  %v832_v4 = vld [vmem:[%s1303_s1 + $0xa4] sm:$0xf0]  ;;  %v745_v5 = vld [vmem:[%s1303_s1 + $0x120] sm:$0xf]  ;;  %v627_v8 = vld [vmem:[%s1303_s1 + $0x38] sm:$0xf0]  ;;  %v618_v9 = vor.u32 %v816_v0, %v617_v63 }
  0x12   :  { %433 = vmatpush.bf16.msra.mxu2 %v762_v51  ;;  %v848_v6 = vld [vmem:[%s1303_s1 + $0x124] sm:$0xf0]  ;;  %v682_v11 = vor.u32 %v832_v4, %v681_v3  ;;  %v609_v12 = vld [vmem:[%s1303_s1 + $0x10] sm:$0xf]  ;;  %v814_v13 = vld [vmem:[%s1303_s1 + $0x14] sm:$0xf0]  ;;  %v630_v17 = vor.u32 %v817_v7, %v627_v8 }
  0x13   :  { %v673_v14 = vld [vmem:[%s1303_s1 + $0x90] sm:$0xf]  ;;  %v746_v15 = vor.u32 %v848_v6, %v745_v5  ;;  %v830_v18 = vld [vmem:[%s1303_s1 + $0x94] sm:$0xf0]  ;;  %v815_v21 = vld [vmem:[%s1303_s1 + $0x24] sm:$0xf]  ;;  %v610_v24 = vor.u32 %v814_v13, %v609_v12 }
  0x14   :  { %396 = vmatpush.bf16.msra.mxu0 %v626_v59  ;;  %v737_v19 = vld [vmem:[%s1303_s1 + $0x110] sm:$0xf]  ;;  %v846_v20 = vld [vmem:[%s1303_s1 + $0x114] sm:$0xf0]  ;;  %v619_v22 = vld [vmem:[%s1303_s1 + $0x28] sm:$0xf0]  ;;  %v674_v28 = vor.u32 %v830_v18, %v673_v14 }
  0x15   :  { %415 = vmatpush.bf16.msra.mxu1 %v690_v61  ;;  %471 = vmatpush.bf16.msrb.mxu3 %v638_v2  ;;  %v601_v23 = vld [vmem:[%s1303_s1] sm:$0xf]  ;;  %v812_v25 = vld [vmem:[%s1303_s1 + $0x4] sm:$0xf0]  ;;  %v813_v31 = vld [vmem:[%s1303_s1 + $0x14] sm:$0xf]  ;;  %v738_v32 = vor.u32 %v846_v20, %v737_v19  ;;  %v622_v33 = vor.u32 %v815_v21, %v619_v22 }
  0x16   :  { %434 = vmatpush.bf16.msra.mxu2 %v754_v1  ;;  %v665_v26 = vld [vmem:[%s1303_s1 + $0x80] sm:$0xf]  ;;  %v828_v27 = vld [vmem:[%s1303_s1 + $0x84] sm:$0xf0]  ;;  %v611_v34 = vld [vmem:[%s1303_s1 + $0x18] sm:$0xf0]  ;;  %v602_v40 = vor.u32 %v812_v25, %v601_v23 }
  0x17   :  { %v729_v29 = vld [vmem:[%s1303_s1 + $0x100] sm:$0xf]  ;;  %v844_v30 = vld [vmem:[%s1303_s1 + $0x104] sm:$0xf0]  ;;  %v805_v36 = vld [vmem:[%s1304_s0 + $0xc] sm:$0xf0]  ;;  %v666_v44 = vor.u32 %v828_v27, %v665_v26  ;;  %v614_v50 = vor.u32 %v813_v31, %v611_v34 }
  0x18   :  { %397 = vmatpush.bf16.msra.mxu0 %v618_v9  ;;  %800 = vmatmul.msk.bf16.gmra.mxu3 %vm385_vm0, %v1053_v10  ;;  %v569_v35 = vld [vmem:[%s1304_s0] sm:$0xf]  ;;  %v803_v37 = vld [vmem:[%s1304_s0 + $0x4] sm:$0xf]  ;;  %v841_v38 = vld [vmem:[%s1303_s1 + $0xf4] sm:$0xf]  ;;  %v730_v49 = vor.u32 %v844_v30, %v729_v29 }
  0x19   :  { %416 = vmatpush.bf16.msra.mxu1 %v682_v11  ;;  %472 = vmatpush.bf16.msrb.mxu3 %v630_v17  ;;  %v723_v39 = vld [vmem:[%s1303_s1 + $0xf8] sm:$0xf0]  ;;  %v571_v41 = vld [vmem:[%s1304_s0 + $0x10] sm:$0xf0]  ;;  %v859_v42 = vld [vmem:[%s1303_s1 + $0x184] sm:$0xf]  ;;  %v570_v54 = vor.u32 %v805_v36, %v569_v35 }
  0x1a   :  { %435 = vmatpush.bf16.msra.mxu2 %v746_v15  ;;  %v795_v43 = vld [vmem:[%s1303_s1 + $0x188] sm:$0xf0]  ;;  %v577_v45 = vld [vmem:[%s1304_s0 + $0x8] sm:$0xf]  ;;  %v806_v46 = vld [vmem:[%s1304_s0 + $0x14] sm:$0xf0]  ;;  %v726_v48 = vor.u32 %v841_v38, %v723_v39  ;;  %v1153_v58 = vor.u32 %v803_v37, %v571_v41 }
  0x1b   :  { %v811_v47 = vld [vmem:[%s1303_s1 + $0x4] sm:$0xf]  ;;  %v603_v51 = vld [vmem:[%s1303_s1 + $0x8] sm:$0xf0]  ;;  %v857_v52 = vld [vmem:[%s1303_s1 + $0x174] sm:$0xf]  ;;  %v798_v55 = vor.u32 %v859_v42, %v795_v43  ;;  %v1155_v60 = vor.u32 %v806_v46, %v577_v45 }
  0x1c   :  { %398 = vmatpush.bf16.msra.mxu0 %v610_v24  ;;  %v787_v53 = vld [vmem:[%s1303_s1 + $0x178] sm:$0xf0]  ;;  %v839_v56 = vld [vmem:[%s1303_s1 + $0xe4] sm:$0xf]  ;;  %v715_v57 = vld [vmem:[%s1303_s1 + $0xe8] sm:$0xf0]  ;;  %v606_v63 = vor.u32 %v811_v47, %v603_v51 }
  0x1d   :  { %417 = vmatpush.bf16.msra.mxu1 %v674_v28  ;;  %473 = vmatpush.bf16.msrb.mxu3 %v622_v33  ;;  %v872_v59 = vmov 0   ;;  %v790_v61 = vor.u32 %v857_v52, %v787_v53  ;;  %v73_v62 = vld [vmem:[%s1305_s2] sm:$0xff]  ;;  %v718_v0 = vor.u32 %v839_v56, %v715_v57  ;;  %v779_v2 = vld [vmem:[%s1303_s1 + $0x168] sm:$0xf0]  ;;  %v837_v3 = vld [vmem:[%s1303_s1 + $0xd4] sm:$0xf] }
  0x1e   :  { %436 = vmatpush.bf16.msra.mxu2 %v738_v32  ;;  %870 = vset.pattern.permute.xlu0 %v872_v59  ;;  %v855_v1 = vld [vmem:[%s1303_s1 + $0x164] sm:$0xf]  ;;  %v707_v4 = vld [vmem:[%s1303_s1 + $0xd8] sm:$0xf0]  ;;  %v853_v7 = vld [vmem:[%s1303_s1 + $0x154] sm:$0xf] }
  0x1f   :  { %79 = vperm.xlu0 %870, %v73_v62   ;;  %v782_v5 = vor.u32 %v855_v1, %v779_v2  ;;  %v710_v6 = vor.u32 %v837_v3, %v707_v4  ;;  %v771_v8 = vld [vmem:[%s1303_s1 + $0x158] sm:$0xf0]  ;;  %v835_v9 = vld [vmem:[%s1303_s1 + $0xc4] sm:$0xf]  ;;  %v699_v11 = vld [vmem:[%s1303_s1 + $0xc8] sm:$0xf0]  ;;  %871 = vset.pattern.permute.xlu1 %v872_v59 }
  0x20   :  { %399 = vmatpush.bf16.msra.mxu0 %v602_v40  ;;  %v75_v12 = vld [vmem:[%s1305_s2 + $0x10] sm:$0xff]  ;;  %v774_v13 = vor.u32 %v853_v7, %v771_v8  ;;  %v74_v14 = vld [vmem:[%s1305_s2 + $0x8] sm:$0xff]  ;;  %v702_v15 = vor.u32 %v835_v9, %v699_v11  ;;  %v851_v17 = vld [vmem:[%s1303_s1 + $0x144] sm:$0xf] }
  0x21   :  { %418 = vmatpush.bf16.msra.mxu1 %v666_v44  ;;  %474 = vmatpush.bf16.msrb.mxu3 %v614_v50  ;;  %v763_v18 = vld [vmem:[%s1303_s1 + $0x148] sm:$0xf0]  ;;  %v833_v19 = vld [vmem:[%s1303_s1 + $0xb4] sm:$0xf]  ;;  %v691_v20 = vld [vmem:[%s1303_s1 + $0xb8] sm:$0xf0] }
  0x22   :  { %437 = vmatpush.bf16.msra.mxu2 %v730_v49  ;;  %89 = vperm.xlu1 %871, %v75_v12   ;;  %v585_v21 = vld [vmem:[%s1304_s0 + $0x20] sm:$0xf]  ;;  %v809_v22 = vld [vmem:[%s1304_s0 + $0x2c] sm:$0xf0]  ;;  %v807_v23 = vld [vmem:[%s1304_s0 + $0x24] sm:$0xf]  ;;  %v766_v24 = vor.u32 %v851_v17, %v763_v18  ;;  %v694_v29 = vor.u32 %v833_v19, %v691_v20 }
  0x23   :  { %400 = vmatmul.bf16.vlgmr.msra.gmra.mxu0 %v570_v54  ;;  %v587_v25 = vld [vmem:[%s1304_s0 + $0x30] sm:$0xf0]  ;;  %v593_v26 = vld [vmem:[%s1304_s0 + $0x28] sm:$0xf]  ;;  %v76_v27 = vld [vmem:[%s1305_s2 + $0x18] sm:$0xff]  ;;  %v586_v32 = vor.u32 %v809_v22, %v585_v21 }
  0x24   :  { %487 = vmatpush.bf16.msrb.mxu0 %v726_v48  ;;  %419 = vmatmul.bf16.vlgmr.msra.gmra.mxu1 %v1153_v58  ;;  %v810_v28 = vld [vmem:[%s1304_s0 + $0x34] sm:$0xf0]  ;;  %v849_v30 = vld [vmem:[%s1303_s1 + $0x134] sm:$0xf]  ;;  %v755_v31 = vld [vmem:[%s1303_s1 + $0x138] sm:$0xf0]  ;;  %v590_v35 = vor.u32 %v807_v23, %v587_v25 }
  0x25   :  { %438 = vmatmul.bf16.vlgmr.msra.gmra.mxu2 %v1155_v60  ;;  %506 = vmatpush.bf16.msrb.mxu1 %v790_v61  ;;  %v831_v33 = vld [vmem:[%s1303_s1 + $0xa4] sm:$0xf]  ;;  %v683_v34 = vld [vmem:[%s1303_s1 + $0xa8] sm:$0xf0]  ;;  %v594_v36 = vor.u32 %v810_v28, %v593_v26  ;;  %v758_v37 = vor.u32 %v849_v30, %v755_v31  ;;  %v829_v41 = vld [vmem:[%s1303_s1 + $0x94] sm:$0xf] }
  0x26   :  { %532 = vmatpush.bf16.msrb.mxu2 %v798_v55  ;;  %475 = vmatpush.bf16.msrb.mxu3 %v606_v63  ;;  %v686_v38 = vor.u32 %v831_v33, %v683_v34  ;;  %v847_v39 = vld [vmem:[%s1303_s1 + $0x124] sm:$0xf]  ;;  %v747_v40 = vld [vmem:[%s1303_s1 + $0x128] sm:$0xf0]  ;;  %v675_v42 = vld [vmem:[%s1303_s1 + $0x98] sm:$0xf0] }
  0x27   :  { %84 = vperm.xlu0 %870, %v74_v14   ;;  %v750_v43 = vor.u32 %v847_v39, %v747_v40  ;;  %v678_v44 = vor.u32 %v829_v41, %v675_v42  ;;  %v845_v45 = vld [vmem:[%s1303_s1 + $0x114] sm:$0xf]  ;;  %v739_v46 = vld [vmem:[%s1303_s1 + $0x118] sm:$0xf0]  ;;  %v827_v47 = vld [vmem:[%s1303_s1 + $0x84] sm:$0xf] }
  0x28   :  { %488 = vmatpush.bf16.msrb.mxu0 %v718_v0  ;;  %v742_v49 = vor.u32 %v845_v45, %v739_v46  ;;  %v843_v51 = vld [vmem:[%s1303_s1 + $0x104] sm:$0xf]  ;;  %v731_v52 = vld [vmem:[%s1303_s1 + $0x108] sm:$0xf0]  ;;  %vm1277_vm3 = vmor %vm557_vm2, %vm556_vm1 }
  0x29   :  { %476 = vmatmul.bf16.vlgmr.msrb.gmra.mxu3 %v570_v54  ;;  %507 = vmatpush.bf16.msrb.mxu1 %v782_v5  ;;  %v734_v53 = vor.u32 %v843_v51, %v731_v52 }
  0x2a   :  { %861 = vmatpush.bf16.msra.mxu3 %v726_v48  ;;  %94 = vperm.xlu1 %871, %v76_v27   ;;  %v667_v48 = vld [vmem:[%s1303_s1 + $0x88] sm:$0xf0] }
  0x2b   :  { %v670_v50 = vor.u32 %v827_v47, %v667_v48 }
  0x2c   :  { %489 = vmatpush.bf16.msrb.mxu0 %v710_v6 }
  0x2d   :  { %508 = vmatpush.bf16.msrb.mxu1 %v774_v13 }
  0x2e   :  { %862 = vmatpush.bf16.msra.mxu3 %v718_v0 }
  0x30   :  { %490 = vmatpush.bf16.msrb.mxu0 %v702_v15 }
  0x31   :  { %509 = vmatpush.bf16.msrb.mxu1 %v766_v24 }
  0x32   :  { %863 = vmatpush.bf16.msra.mxu3 %v710_v6 }
  0x33   :  { %405 = vmatmul.bf16.gmra.mxu0 %v586_v32 }
  0x34   :  { %491 = vmatpush.bf16.msrb.mxu0 %v694_v29  ;;  %424 = vmatmul.bf16.gmra.mxu1 %v590_v35 }
  0x35   :  { %443 = vmatmul.bf16.gmra.mxu2 %v594_v36  ;;  %510 = vmatpush.bf16.msrb.mxu1 %v758_v37 }
  0x36   :  { %864 = vmatpush.bf16.msra.mxu3 %v702_v15 }
  0x38   :  { %492 = vmatpush.bf16.msrb.mxu0 %v686_v38 }
  0x39   :  { %481 = vmatmul.bf16.gmra.mxu3 %v586_v32  ;;  %511 = vmatpush.bf16.msrb.mxu1 %v750_v43 }
  0x3a   :  { %865 = vmatpush.bf16.msra.mxu3 %v694_v29 }
  0x3c   :  { %493 = vmatpush.bf16.msrb.mxu0 %v678_v44 }
  0x3d   :  { %512 = vmatpush.bf16.msrb.mxu1 %v742_v49 }
  0x3e   :  { %866 = vmatpush.bf16.msra.mxu3 %v686_v38 }
  0x40   :  { %494 = vmatpush.bf16.msrb.mxu0 %v670_v50 }
  0x41   :  { %513 = vmatpush.bf16.msrb.mxu1 %v734_v53 }
  0x42   :  { %867 = vmatpush.bf16.msra.mxu3 %v678_v44 }
  0x43   :  { %495 = vmatmul.bf16.vlgmr.msrb.gmra.mxu0 %v1153_v58 }
  0x44   :  { %514 = vmatmul.bf16.vlgmr.msrb.gmra.mxu1 %v1155_v60 }
  0x45   :  { %801 = vmatmul.msk.bf16.vlgmr.msrb.gmra.mxu2 %vm385_vm0, %v929_v16 }
  0x46   :  { %868 = vmatpush.bf16.msra.mxu3 %v670_v50 }
  0x49   :  { %500 = vmatmul.bf16.vlgmr.msra.gmra.mxu3 %v590_v35 }
  0x54   :  { %519 = vmatmul.bf16.gmra.mxu1 %v594_v36 }
  0x55   :  { %802 = vmatmul.msk.bf16.gmra.mxu2 %vm385_vm0, %v1053_v10 }
  0x8b   :  { %v458_v54 = vpop.f32.mrf.mxu3 }
  0x91   :  { %v80_v3 = vpop.permute.xlu0 %79 }
  0x93   :  { %v460_v55 = vpop.f32.mrf.mxu3 }
  0x94   :  { %v90_v21 = vpop.permute.xlu1 %89 }
  0x99   :  { %v85_v12 = vpop.permute.xlu0 %84 }
  0x9b   :  { %v1273_v56 = vpop.f32.mrf.mxu3 }
  0x9c   :  { %v95_v42 = vpop.permute.xlu1 %94 }
  0xa0   :  { %v401_v57 = vpop.f32.mrf.mxu0 }
  0xa1   :  { %v420_v59 = vpop.f32.mrf.mxu1  ;;  %v402_v6 = vadd.f32 %v401_v57, %v80_v3 }
  0xa3   :  { %v1275_v61 = vpop.f32.mrf.mxu3  ;;  %v421_v8 = vadd.f32 %v420_v59, %v402_v6 }
  0xa8   :  { %v439_v58 = vpop.f32.mrf.mxu2  ;;  %v403_v62 = vpop.f32.mrf.mxu0 }
  0xa9   :  { %v422_v63 = vpop.f32.mrf.mxu1  ;;  %v440_v15 = vadd.f32 %v439_v58, %v421_v8  ;;  %v404_v18 = vadd.f32 %v403_v62, %v85_v12 }
  0xab   :  { %v459_v19 = vadd.f32 %v458_v54, %v440_v15  ;;  %v423_v23 = vadd.f32 %v422_v63, %v404_v18 }
  0xac   :  { %v477_v60 = vpop.f32.mrf.mxu3 }
  0xad   :  { %v478_v13 = vadd.f32 %v477_v60, %v80_v3  ;;  %v544_v29 = vmax.f32 %v459_v19, 0.0 }
  0xb0   :  { %v441_v0 = vpop.f32.mrf.mxu2  ;;  %v406_v1 = vpop.f32.mrf.mxu0 }
  0xb1   :  { %v425_v16 = vpop.f32.mrf.mxu1  ;;  %v442_v30 = vadd.f32 %v441_v0, %v423_v23  ;;  %v407_v31 = vadd.f32 %v406_v1, %v90_v21 }
  0xb3   :  { %v461_v36 = vadd.f32 %v460_v55, %v442_v30  ;;  %v426_v37 = vadd.f32 %v425_v16, %v407_v31 }
  0xb4   :  { %v479_v2 = vpop.f32.mrf.mxu3 }
  0xb5   :  { %v480_v26 = vadd.f32 %v479_v2, %v85_v12  ;;  %v546_v44 = vmax.f32 %v461_v36, 0.0 }
  0xb8   :  { %v444_v4 = vpop.f32.mrf.mxu2  ;;  %v408_v5 = vpop.f32.mrf.mxu0 }
  0xb9   :  { %v427_v10 = vpop.f32.mrf.mxu1  ;;  %v445_v45 = vadd.f32 %v444_v4, %v426_v37  ;;  %v409_v48 = vadd.f32 %v408_v5, %v95_v42 }
  0xbb   :  { %v464_v51 = vadd.f32 %v1273_v56, %v445_v45  ;;  %v428_v54 = vadd.f32 %v427_v10, %v409_v48 }
  0xbc   :  { %v482_v7 = vpop.f32.mrf.mxu3 }
  0xbd   :  { %v483_v46 = vadd.f32 %v482_v7, %v90_v21  ;;  %v548_v59 = vmax.f32 %v464_v51, 0.0 }
  0xc0   :  { %v446_v9 = vpop.f32.mrf.mxu2  ;;  %v496_v11 = vpop.f32.mrf.mxu0 }
  0xc1   :  { %v515_v14 = vpop.f32.mrf.mxu1  ;;  %v497_v17 = vadd.f32 %v496_v11, %v478_v13  ;;  %v447_v58 = vadd.f32 %v446_v9, %v428_v54 }
  0xc3   :  { %v516_v22 = vadd.f32 %v515_v14, %v497_v17  ;;  %v466_v56 = vadd.f32 %v1275_v61, %v447_v58 }
  0xc4   :  { %v484_v20 = vpop.f32.mrf.mxu3 }
  0xc5   :  { %v485_v62 = vadd.f32 %v484_v20, %v95_v42  ;;  %v550_v4 = vmax.f32 %v466_v56, 0.0 }
  0xc8   :  { %v534_v24 = vpop.f32.mrf.mxu2  ;;  %v498_v25 = vpop.f32.mrf.mxu0 }
  0xc9   :  { %v535_v27 = vadd.f32 %v534_v24, %v516_v22  ;;  %v517_v28 = vpop.f32.mrf.mxu1  ;;  %v499_v33 = vadd.f32 %v498_v25, %v480_v26 }
  0xcb   :  { %v545_v32 = vmax.f32 %v535_v27, 0.0  ;;  %v518_v38 = vadd.f32 %v517_v28, %v499_v33 }
  0xcc   :  { %v501_v39 = vpop.f32.mrf.mxu3 }
  0xcd   :  { %v552_v35 = vpack.c.bf16 %v545_v32, %v544_v29  ;;  %v502_v49 = vadd.f32 %v501_v39, %v483_v46 }
  0xcf   :  { %559 = vst.msk [vmem:[%s1306_s3] sm:$0xff] %vm1277_vm3, %v552_v35 }
  0xd0   :  { %v536_v40 = vpop.f32.mrf.mxu2 }
  0xd1   :  { %v537_v41 = vadd.f32 %v536_v40, %v518_v38  ;;  %v520_v43 = vpop.f32.mrf.mxu1 }
  0xd2   :  { %v521_v52 = vadd.f32 %v520_v43, %v502_v49 }
  0xd3   :  { %v547_v47 = vmax.f32 %v537_v41, 0.0 }
  0xd4   :  { %v503_v57 = vpop.f32.mrf.mxu3 }
  0xd5   :  { %v553_v50 = vpack.c.bf16 %v547_v47, %v546_v44  ;;  %v504_v0 = vadd.f32 %v503_v57, %v485_v62 }
  0xd7   :  { %560 = vst.msk [vmem:[%s1306_s3 + $0x8] sm:$0xff] %vm1277_vm3, %v553_v50 }
  0xd8   :  { %v539_v53 = vpop.f32.mrf.mxu2 }
  0xd9   :  { %v540_v55 = vadd.f32 %v539_v53, %v521_v52  ;;  %v522_v60 = vpop.f32.mrf.mxu1 }
  0xda   :  { %v523_v16 = vadd.f32 %v522_v60, %v504_v0 }
  0xdb   :  { %v549_v63 = vmax.f32 %v540_v55, 0.0 }
  0xdd   :  { %v554_v1 = vpack.c.bf16 %v549_v63, %v548_v59 }
  0xdf   :  { %561 = vst.msk [vmem:[%s1306_s3 + $0x10] sm:$0xff] %vm1277_vm3, %v554_v1 }
  0xe0   :  { %v541_v2 = vpop.f32.mrf.mxu2 }
  0xe1   :  { %v542_v3 = vadd.f32 %v541_v2, %v523_v16 }
  0xe3   :  { %v551_v5 = vmax.f32 %v542_v3, 0.0 }
  0xe5   :  { %v555_v10 = vpack.c.bf16 %v551_v5, %v550_v4 }
  0xe7   :  { %562 = vst.msk [vmem:[%s1306_s3 + $0x18] sm:$0xff] %vm1277_vm3, %v555_v10 }

// kernel: ae_forward.10
= control target key start
LH: loop header
LB: loop body
LE: loop exit
PB: predicated region body
PF: predicated region fallthrough
CT: control target
= control target key end

     0   :  { %v304_v1 = vmov 0   ;;  %vm203_vm0 = vcmask 257024   ;;  %s417_s1 = inlined_call_operand.vmem [shape: bf16[128,32], index: 1, kind: input, shape index: {}]   ;;  %s418_s2 = inlined_call_operand.vmem [shape: f32[64,1], index: 2, kind: input, shape index: {}]   ;;  %s419_s0 = inlined_call_operand.vmem [shape: bf16[64,128], index: 0, kind: input, shape index: {}]   ;;  %s420_s3 = inlined_call_operand.vmem [shape: bf16[64,32], index: 3, kind: output, shape index: {}]  }
   0x1   :  { %v275_v0 = vld [vmem:[%s417_s1 + $0x38] sm:$0xff]  ;;  %302 = vset.pattern.permute.xlu1 %v304_v1  ;;  %301 = vset.pattern.permute.xlu0 %v304_v1  ;;  %v274_v2 = vld [vmem:[%s417_s1 + $0x30] sm:$0xff]  ;;  %v38_v4 = vld [vmem:[%s418_s2] sm:$0xff] }
   0x2   :  { %303 = vset.pattern.permute.xlu2 %v304_v1  ;;  %158 = vmatpush.bf16.msra.mxu0 %v275_v0  ;;  %v40_v3 = vld [vmem:[%s418_s2 + $0x10] sm:$0xff]  ;;  %v273_v5 = vld [vmem:[%s417_s1 + $0x28] sm:$0xff]  ;;  %v42_v6 = vld [vmem:[%s418_s2 + $0x20] sm:$0xff] }
   0x3   :  { %276 = vmatpush.bf16.msra.mxu1 %v275_v0  ;;  %277 = vmatpush.bf16.msra.mxu2 %v275_v0  ;;  %v41_v7 = vld [vmem:[%s418_s2 + $0x18] sm:$0xff]  ;;  %v39_v8 = vld [vmem:[%s418_s2 + $0x8] sm:$0xff]  ;;  %v272_v9 = vld [vmem:[%s417_s1 + $0x20] sm:$0xff] }
   0x4   :  { %278 = vmatpush.bf16.msra.mxu3 %v275_v0  ;;  %58 = vperm.xlu1 %302, %v40_v3   ;;  %v43_v10 = vld [vmem:[%s418_s2 + $0x28] sm:$0xff]  ;;  %v271_v11 = vld [vmem:[%s417_s1 + $0x18] sm:$0xff]  ;;  %v44_v13 = vld [vmem:[%s418_s2 + $0x30] sm:$0xff] }
   0x5   :  { %48 = vperm.xlu0 %301, %v38_v4   ;;  %68 = vperm.xlu2 %303, %v42_v6   ;;  %v45_v12 = vld [vmem:[%s418_s2 + $0x38] sm:$0xff]  ;;  %v270_v14 = vld [vmem:[%s417_s1 + $0x10] sm:$0xff]  ;;  %v269_v15 = vld [vmem:[%s417_s1 + $0x8] sm:$0xff] }
   0x6   :  { %159 = vmatpush.bf16.msra.mxu0 %v274_v2  ;;  %v268_v16 = vld [vmem:[%s417_s1] sm:$0xff]  ;;  %v265_v18 = vld [vmem:[%s419_s0 + $0x8] sm:$0xff]  ;;  %v266_v19 = vld [vmem:[%s419_s0 + $0x10] sm:$0xff] }
   0x7   :  { %279 = vmatpush.bf16.msra.mxu1 %v274_v2  ;;  %280 = vmatpush.bf16.msra.mxu2 %v274_v2  ;;  %v264_v17 = vld [vmem:[%s419_s0] sm:$0xff]  ;;  %v267_v20 = vld [vmem:[%s419_s0 + $0x18] sm:$0xff] }
   0x8   :  { %281 = vmatpush.bf16.msra.mxu3 %v274_v2 }
   0xa   :  { %160 = vmatpush.bf16.msra.mxu0 %v273_v5 }
   0xb   :  { %282 = vmatpush.bf16.msra.mxu1 %v273_v5  ;;  %283 = vmatpush.bf16.msra.mxu2 %v273_v5 }
   0xc   :  { %284 = vmatpush.bf16.msra.mxu3 %v273_v5  ;;  %63 = vperm.xlu1 %302, %v41_v7  }
   0xd   :  { %53 = vperm.xlu0 %301, %v39_v8   ;;  %73 = vperm.xlu2 %303, %v43_v10  }
   0xe   :  { %161 = vmatpush.bf16.msra.mxu0 %v272_v9 }
   0xf   :  { %285 = vmatpush.bf16.msra.mxu1 %v272_v9  ;;  %286 = vmatpush.bf16.msra.mxu2 %v272_v9 }
  0x10   :  { %287 = vmatpush.bf16.msra.mxu3 %v272_v9 }
  0x12   :  { %162 = vmatpush.bf16.msra.mxu0 %v271_v11 }
  0x13   :  { %288 = vmatpush.bf16.msra.mxu1 %v271_v11  ;;  %289 = vmatpush.bf16.msra.mxu2 %v271_v11 }
  0x14   :  { %290 = vmatpush.bf16.msra.mxu3 %v271_v11  ;;  %83 = vperm.xlu1 %302, %v45_v12  }
  0x15   :  { %78 = vperm.xlu0 %301, %v44_v13  }
  0x16   :  { %163 = vmatpush.bf16.msra.mxu0 %v270_v14 }
  0x17   :  { %291 = vmatpush.bf16.msra.mxu1 %v270_v14  ;;  %292 = vmatpush.bf16.msra.mxu2 %v270_v14 }
  0x18   :  { %293 = vmatpush.bf16.msra.mxu3 %v270_v14 }
  0x1a   :  { %164 = vmatpush.bf16.msra.mxu0 %v269_v15 }
  0x1b   :  { %294 = vmatpush.bf16.msra.mxu1 %v269_v15  ;;  %295 = vmatpush.bf16.msra.mxu2 %v269_v15 }
  0x1c   :  { %296 = vmatpush.bf16.msra.mxu3 %v269_v15 }
  0x1e   :  { %165 = vmatpush.bf16.msra.mxu0 %v268_v16 }
  0x1f   :  { %297 = vmatpush.bf16.msra.mxu1 %v268_v16  ;;  %298 = vmatpush.bf16.msra.mxu2 %v268_v16 }
  0x20   :  { %299 = vmatpush.bf16.msra.mxu3 %v268_v16 }
  0x21   :  { %166 = vmatmul.bf16.vlgmr.msra.gmra.mxu0 %v264_v17 }
  0x22   :  { %171 = vmatmul.bf16.vlgmr.msra.gmra.mxu1 %v265_v18  ;;  %176 = vmatmul.bf16.vlgmr.msra.gmra.mxu2 %v266_v19 }
  0x23   :  { %181 = vmatmul.bf16.vlgmr.msra.gmra.mxu3 %v267_v20 }
  0x5f   :  { %v69_v31 = vpop.permute.xlu2 %68 }
  0x67   :  { %v74_v52 = vpop.permute.xlu2 %73 }
  0x76   :  { %v59_v22 = vpop.permute.xlu1 %58 }
  0x77   :  { %v49_v21 = vpop.permute.xlu0 %48 }
  0x7e   :  { %v64_v30 = vpop.permute.xlu1 %63 }
  0x7f   :  { %v54_v23 = vpop.permute.xlu0 %53 }
  0x86   :  { %v84_v51 = vpop.permute.xlu1 %83 }
  0x87   :  { %v79_v34 = vpop.permute.xlu0 %78 }
  0x9e   :  { %v167_v24 = vpop.f32.mrf.mxu0 }
  0x9f   :  { %v172_v25 = vpop.f32.mrf.mxu1  ;;  %v168_v26 = vadd.f32 %v167_v24, %v49_v21 }
  0xa0   :  { %v173_v27 = vadd.f32 %v172_v25, %v59_v22 }
  0xa1   :  { %v187_v28 = vmax.f32 %v168_v26, 0.0 }
  0xa2   :  { %v189_v29 = vmax.f32 %v173_v27, 0.0 }
  0xa3   :  { %v195_v32 = vpack.c.bf16 %v187_v28, %v187_v28 }
  0xa4   :  { %v197_v33 = vpack.c.bf16 %v189_v29, %v189_v29 }
  0xa5   :  { %204 = vst.msk [vmem:[%s420_s3] sm:$0xf] %vm203_vm0, %v195_v32  ;;  %v177_v35 = vpop.f32.mrf.mxu2 }
  0xa6   :  { %v182_v36 = vpop.f32.mrf.mxu3  ;;  %206 = vst.msk [vmem:[%s420_s3 + $0x8] sm:$0xf] %vm203_vm0, %v197_v33  ;;  %v178_v37 = vadd.f32 %v177_v35, %v69_v31  ;;  %v169_v39 = vpop.f32.mrf.mxu0 }
  0xa7   :  { %v183_v38 = vadd.f32 %v182_v36, %v79_v34  ;;  %v174_v40 = vpop.f32.mrf.mxu1  ;;  %v170_v41 = vadd.f32 %v169_v39, %v54_v23 }
  0xa8   :  { %v175_v42 = vadd.f32 %v174_v40, %v64_v30  ;;  %v191_v43 = vmax.f32 %v178_v37, 0.0 }
  0xa9   :  { %v193_v44 = vmax.f32 %v183_v38, 0.0  ;;  %v188_v45 = vmax.f32 %v170_v41, 0.0 }
  0xaa   :  { %v190_v46 = vmax.f32 %v175_v42, 0.0  ;;  %v199_v47 = vpack.c.bf16 %v191_v43, %v191_v43 }
  0xab   :  { %v201_v48 = vpack.c.bf16 %v193_v44, %v193_v44  ;;  %v196_v49 = vpack.c.bf16 %v188_v45, %v188_v45 }
  0xac   :  { %v198_v50 = vpack.c.bf16 %v190_v46, %v190_v46  ;;  %208 = vst.msk [vmem:[%s420_s3 + $0x10] sm:$0xf] %vm203_vm0, %v199_v47 }
  0xad   :  { %210 = vst.msk [vmem:[%s420_s3 + $0x18] sm:$0xf] %vm203_vm0, %v201_v48  ;;  %v179_v53 = vpop.f32.mrf.mxu2 }
  0xae   :  { %v184_v54 = vpop.f32.mrf.mxu3  ;;  %205 = vst.msk [vmem:[%s420_s3 + $0x4] sm:$0xf] %vm203_vm0, %v196_v49  ;;  %v180_v55 = vadd.f32 %v179_v53, %v74_v52 }
  0xaf   :  { %v185_v56 = vadd.f32 %v184_v54, %v84_v51  ;;  %207 = vst.msk [vmem:[%s420_s3 + $0xc] sm:$0xf] %vm203_vm0, %v198_v50 }
  0xb0   :  { %v192_v57 = vmax.f32 %v180_v55, 0.0 }
  0xb1   :  { %v194_v58 = vmax.f32 %v185_v56, 0.0 }
  0xb2   :  { %v200_v59 = vpack.c.bf16 %v192_v57, %v192_v57 }
  0xb3   :  { %v202_v60 = vpack.c.bf16 %v194_v58, %v194_v58 }
  0xb4   :  { %209 = vst.msk [vmem:[%s420_s3 + $0x14] sm:$0xf] %vm203_vm0, %v200_v59 }
  0xb5   :  { %211 = vst.msk [vmem:[%s420_s3 + $0x1c] sm:$0xf] %vm203_vm0, %v202_v60 }

// kernel: ae_forward.11
= control target key start
LH: loop header
LB: loop body
LE: loop exit
PB: predicated region body
PF: predicated region fallthrough
CT: control target
= control target key end

     0   :  { %v413_v0 = vmov 0   ;;  %vm218_vm0 = vcmask 523264   ;;  %vm300_vm1 = vcmask 261120   ;;  %s608_s2 = inlined_call_operand.vmem [shape: f32[144,1], index: 2, kind: input, shape index: {}]   ;;  %s609_s1 = inlined_call_operand.vmem [shape: bf16[64,32], index: 1, kind: input, shape index: {}]   ;;  %s610_s0 = inlined_call_operand.vmem [shape: bf16[144,64], index: 0, kind: input, shape index: {}]   ;;  %s611_s3 = inlined_call_operand.vmem [shape: f32[144,32], index: 3, kind: output, shape index: {}]  }
   0x1   :  { %411 = vset.pattern.permute.xlu1 %v413_v0  ;;  %410 = vset.pattern.permute.xlu0 %v413_v0  ;;  %v43_v1 = vld [vmem:[%s608_s2 + $0x10] sm:$0xff]  ;;  %v41_v2 = vld [vmem:[%s608_s2] sm:$0xff]  ;;  %v396_v3 = vld [vmem:[%s609_s1 + $0x18] sm:$0xff] }
   0x2   :  { %71 = vperm.xlu1 %411, %v43_v1   ;;  %61 = vperm.xlu0 %410, %v41_v2   ;;  %v395_v4 = vld [vmem:[%s609_s1 + $0x10] sm:$0xff]  ;;  %v45_v5 = vld [vmem:[%s608_s2 + $0x20] sm:$0xff]  ;;  %v44_v6 = vld [vmem:[%s608_s2 + $0x18] sm:$0xff] }
   0x3   :  { %250 = vmatpush.bf16.msra.mxu0 %v396_v3  ;;  %397 = vmatpush.bf16.msra.mxu1 %v396_v3  ;;  %v42_v7 = vld [vmem:[%s608_s2 + $0x8] sm:$0xff]  ;;  %v393_v9 = vld [vmem:[%s609_s1] sm:$0xff]  ;;  %v48_v11 = vld [vmem:[%s608_s2 + $0x38] sm:$0xff] }
   0x4   :  { %398 = vmatpush.bf16.msra.mxu2 %v396_v3  ;;  %399 = vmatpush.bf16.msra.mxu3 %v396_v3  ;;  %v394_v8 = vld [vmem:[%s609_s1 + $0x8] sm:$0xff]  ;;  %v47_v12 = vld [vmem:[%s608_s2 + $0x30] sm:$0xff]  ;;  %v384_v13 = vld [vmem:[%s610_s0] sm:$0xff] }
   0x5   :  { %412 = vset.pattern.permute.xlu2 %v413_v0  ;;  %v46_v10 = vld [vmem:[%s608_s2 + $0x28] sm:$0xff]  ;;  %v386_v14 = vld [vmem:[%s610_s0 + $0x10] sm:$0xff]  ;;  %v388_v15 = vld [vmem:[%s610_s0 + $0x20] sm:$0xff] }
   0x6   :  { %81 = vperm.xlu2 %412, %v45_v5   ;;  %v391_v16 = vld [vmem:[%s610_s0 + $0x38] sm:$0xff]  ;;  %v49_v17 = vld [vmem:[%s608_s2 + $0x40] sm:$0xff]  ;;  %v51_v18 = vld [vmem:[%s608_s2 + $0x50] sm:$0xff] }
   0x7   :  { %251 = vmatpush.bf16.msra.mxu0 %v395_v4  ;;  %400 = vmatpush.bf16.msra.mxu1 %v395_v4  ;;  %v50_v19 = vld [vmem:[%s608_s2 + $0x48] sm:$0xff]  ;;  %v52_v20 = vld [vmem:[%s608_s2 + $0x58] sm:$0xff]  ;;  %v53_v22 = vld [vmem:[%s608_s2 + $0x60] sm:$0xff] }
   0x8   :  { %401 = vmatpush.bf16.msra.mxu2 %v395_v4  ;;  %402 = vmatpush.bf16.msra.mxu3 %v395_v4  ;;  %v54_v21 = vld [vmem:[%s608_s2 + $0x68] sm:$0xff]  ;;  %v387_v24 = vld [vmem:[%s610_s0 + $0x18] sm:$0xff]  ;;  %v392_v26 = vld [vmem:[%s610_s0 + $0x40] sm:$0xff] }
   0x9   :  { %v385_v23 = vld [vmem:[%s610_s0 + $0x8] sm:$0xff]  ;;  %v55_v27 = vld [vmem:[%s608_s2 + $0x70] sm:$0xff]  ;;  %v57_v28 = vld [vmem:[%s608_s2 + $0x80] sm:$0xff] }
   0xa   :  { %76 = vperm.xlu1 %411, %v44_v6   ;;  %66 = vperm.xlu0 %410, %v42_v7   ;;  %v389_v25 = vld [vmem:[%s610_s0 + $0x28] sm:$0xff]  ;;  %v56_v29 = vld [vmem:[%s608_s2 + $0x78] sm:$0xff]  ;;  %v390_v31 = vld [vmem:[%s610_s0 + $0x30] sm:$0xff] }
   0xb   :  { %252 = vmatpush.bf16.msra.mxu0 %v394_v8  ;;  %403 = vmatpush.bf16.msra.mxu1 %v394_v8  ;;  %v58_v30 = vld [vmem:[%s608_s2 + $0x88] sm:$0xff] }
   0xc   :  { %404 = vmatpush.bf16.msra.mxu2 %v394_v8  ;;  %405 = vmatpush.bf16.msra.mxu3 %v394_v8 }
   0xe   :  { %86 = vperm.xlu2 %412, %v46_v10  }
   0xf   :  { %253 = vmatpush.bf16.msra.mxu0 %v393_v9  ;;  %406 = vmatpush.bf16.msra.mxu1 %v393_v9 }
  0x10   :  { %407 = vmatpush.bf16.msra.mxu2 %v393_v9  ;;  %408 = vmatpush.bf16.msra.mxu3 %v393_v9 }
  0x12   :  { %96 = vperm.xlu1 %411, %v48_v11   ;;  %91 = vperm.xlu0 %410, %v47_v12  }
  0x13   :  { %375 = vmatmul.msk.bf16.vlgmr.msra.gmra.mxu0 %vm218_vm0, %v384_v13  ;;  %377 = vmatmul.msk.bf16.vlgmr.msra.gmra.mxu1 %vm218_vm0, %v386_v14 }
  0x14   :  { %379 = vmatmul.msk.bf16.vlgmr.msra.gmra.mxu2 %vm218_vm0, %v388_v15  ;;  %382 = vmatmul.msk.bf16.vlgmr.msra.gmra.mxu3 %vm218_vm0, %v391_v16 }
  0x16   :  { %101 = vperm.xlu2 %412, %v49_v17  }
  0x1a   :  { %111 = vperm.xlu1 %411, %v51_v18   ;;  %106 = vperm.xlu0 %410, %v50_v19  }
  0x1e   :  { %116 = vperm.xlu2 %412, %v52_v20  }
  0x22   :  { %126 = vperm.xlu1 %411, %v54_v21   ;;  %121 = vperm.xlu0 %410, %v53_v22  }
  0x23   :  { %376 = vmatmul.msk.bf16.gmra.mxu0 %vm218_vm0, %v385_v23  ;;  %378 = vmatmul.msk.bf16.gmra.mxu1 %vm218_vm0, %v387_v24 }
  0x24   :  { %380 = vmatmul.msk.bf16.gmra.mxu2 %vm218_vm0, %v389_v25  ;;  %383 = vmatmul.msk.bf16.gmra.mxu3 %vm218_vm0, %v392_v26 }
  0x26   :  { %131 = vperm.xlu2 %412, %v55_v27  }
  0x2a   :  { %141 = vperm.xlu1 %411, %v57_v28   ;;  %136 = vperm.xlu0 %410, %v56_v29  }
  0x2e   :  { %146 = vperm.xlu2 %412, %v58_v30  }
  0x34   :  { %381 = vmatmul.msk.bf16.gmra.mxu2 %vm218_vm0, %v390_v31 }
  0x60   :  { %v82_v32 = vpop.permute.xlu2 %81 }
  0x68   :  { %v87_v35 = vpop.permute.xlu2 %86 }
  0x70   :  { %v102_v38 = vpop.permute.xlu2 %101 }
  0x74   :  { %v72_v33 = vpop.permute.xlu1 %71  ;;  %v62_v34 = vpop.permute.xlu0 %61 }
  0x78   :  { %v117_v41 = vpop.permute.xlu2 %116 }
  0x7c   :  { %v67_v36 = vpop.permute.xlu0 %66  ;;  %v77_v37 = vpop.permute.xlu1 %76 }
  0x80   :  { %v132_v49 = vpop.permute.xlu2 %131 }
  0x84   :  { %v92_v39 = vpop.permute.xlu0 %91  ;;  %v97_v40 = vpop.permute.xlu1 %96 }
  0x88   :  { %v147_v13 = vpop.permute.xlu2 %146 }
  0x8c   :  { %v107_v42 = vpop.permute.xlu0 %106  ;;  %v112_v47 = vpop.permute.xlu1 %111 }
  0x90   :  { %v255_v43 = vpop.f32.mrf.mxu0  ;;  %v265_v44 = vpop.f32.mrf.mxu1 }
  0x91   :  { %v256_v45 = vadd.f32 %v255_v43, %v62_v34  ;;  %v266_v46 = vadd.f32 %v265_v44, %v82_v32 }
  0x93   :  { %301 = vst.msk [vmem:[%s611_s3] sm:$0xff] %vm300_vm1, %v256_v45 }
  0x94   :  { %305 = vst.msk [vmem:[%s611_s3 + $0x20] sm:$0xff] %vm300_vm1, %v266_v46  ;;  %v122_v48 = vpop.permute.xlu0 %121  ;;  %v127_v58 = vpop.permute.xlu1 %126 }
  0x97   :  { %v275_v50 = vpop.f32.mrf.mxu2  ;;  %v290_v51 = vpop.f32.mrf.mxu3 }
  0x98   :  { %v276_v52 = vadd.f32 %v275_v50, %v102_v38  ;;  %v291_v53 = vadd.f32 %v290_v51, %v132_v49  ;;  %v257_v54 = vpop.f32.mrf.mxu0  ;;  %v267_v55 = vpop.f32.mrf.mxu1 }
  0x99   :  { %v258_v56 = vadd.f32 %v257_v54, %v67_v36  ;;  %v268_v57 = vadd.f32 %v267_v55, %v87_v35 }
  0x9a   :  { %309 = vst.msk [vmem:[%s611_s3 + $0x40] sm:$0xff] %vm300_vm1, %v276_v52 }
  0x9b   :  { %315 = vst.msk [vmem:[%s611_s3 + $0x70] sm:$0xff] %vm300_vm1, %v291_v53 }
  0x9c   :  { %302 = vst.msk [vmem:[%s611_s3 + $0x8] sm:$0xff] %vm300_vm1, %v258_v56  ;;  %v137_v59 = vpop.permute.xlu0 %136  ;;  %v142_v4 = vpop.permute.xlu1 %141 }
  0x9d   :  { %306 = vst.msk [vmem:[%s611_s3 + $0x28] sm:$0xff] %vm300_vm1, %v268_v57 }
  0x9f   :  { %v277_v60 = vpop.f32.mrf.mxu2  ;;  %v292_v61 = vpop.f32.mrf.mxu3 }
  0xa0   :  { %v278_v62 = vadd.f32 %v277_v60, %v107_v42  ;;  %v293_v63 = vadd.f32 %v292_v61, %v137_v59  ;;  %v260_v0 = vpop.f32.mrf.mxu0  ;;  %v270_v1 = vpop.f32.mrf.mxu1 }
  0xa1   :  { %v261_v2 = vadd.f32 %v260_v0, %v72_v33  ;;  %v271_v3 = vadd.f32 %v270_v1, %v92_v39 }
  0xa2   :  { %310 = vst.msk [vmem:[%s611_s3 + $0x48] sm:$0xff] %vm300_vm1, %v278_v62 }
  0xa3   :  { %316 = vst.msk [vmem:[%s611_s3 + $0x78] sm:$0xff] %vm300_vm1, %v293_v63 }
  0xa4   :  { %303 = vst.msk [vmem:[%s611_s3 + $0x10] sm:$0xff] %vm300_vm1, %v261_v2 }
  0xa5   :  { %307 = vst.msk [vmem:[%s611_s3 + $0x30] sm:$0xff] %vm300_vm1, %v271_v3 }
  0xa7   :  { %v280_v5 = vpop.f32.mrf.mxu2  ;;  %v295_v6 = vpop.f32.mrf.mxu3 }
  0xa8   :  { %v281_v7 = vadd.f32 %v280_v5, %v112_v47  ;;  %v296_v8 = vadd.f32 %v295_v6, %v142_v4  ;;  %v262_v9 = vpop.f32.mrf.mxu0  ;;  %v272_v10 = vpop.f32.mrf.mxu1 }
  0xa9   :  { %v263_v11 = vadd.f32 %v262_v9, %v77_v37  ;;  %v273_v12 = vadd.f32 %v272_v10, %v97_v40 }
  0xaa   :  { %311 = vst.msk [vmem:[%s611_s3 + $0x50] sm:$0xff] %vm300_vm1, %v281_v7 }
  0xab   :  { %317 = vst.msk [vmem:[%s611_s3 + $0x80] sm:$0xff] %vm300_vm1, %v296_v8 }
  0xac   :  { %304 = vst.msk [vmem:[%s611_s3 + $0x18] sm:$0xff] %vm300_vm1, %v263_v11 }
  0xad   :  { %308 = vst.msk [vmem:[%s611_s3 + $0x38] sm:$0xff] %vm300_vm1, %v273_v12 }
  0xaf   :  { %v282_v14 = vpop.f32.mrf.mxu2  ;;  %v297_v15 = vpop.f32.mrf.mxu3 }
  0xb0   :  { %v283_v16 = vadd.f32 %v282_v14, %v117_v41  ;;  %v298_v17 = vadd.f32 %v297_v15, %v147_v13 }
  0xb2   :  { %312 = vst.msk [vmem:[%s611_s3 + $0x58] sm:$0xff] %vm300_vm1, %v283_v16 }
  0xb3   :  { %318 = vst.msk [vmem:[%s611_s3 + $0x88] sm:$0xff] %vm300_vm1, %v298_v17 }
  0xb7   :  { %v285_v18 = vpop.f32.mrf.mxu2 }
  0xb8   :  { %v286_v19 = vadd.f32 %v285_v18, %v122_v48 }
  0xba   :  { %313 = vst.msk [vmem:[%s611_s3 + $0x60] sm:$0xff] %vm300_vm1, %v286_v19 }
  0xbf   :  { %v287_v20 = vpop.f32.mrf.mxu2 }
  0xc0   :  { %v288_v21 = vadd.f32 %v287_v20, %v127_v58 }
  0xc2   :  { %314 = vst.msk [vmem:[%s611_s3 + $0x68] sm:$0xff] %vm300_vm1, %v288_v21 }

// kernel: ae_forward.12
= control target key start
LH: loop header
LB: loop body
LE: loop exit
PB: predicated region body
PF: predicated region fallthrough
CT: control target
= control target key end

     0   :  { %v608_v0 = vmov 0   ;;  %vm265_vm0 = vcmask 130048   ;;  %vm452_vm1 = vcmask 277504   ;;  %s996_s2 = inlined_call_operand.vmem [shape: f32[200,1], index: 2, kind: input, shape index: {}]   ;;  %s997_s1 = inlined_call_operand.vmem [shape: bf16[16,162], index: 1, kind: input, shape index: {}]   ;;  %s998_s0 = inlined_call_operand.vmem [shape: bf16[200,16], index: 0, kind: input, shape index: {}]   ;;  %s999_s3 = inlined_call_operand.vmem [shape: f32[200,162], index: 3, kind: output, shape index: {}]  }
   0x1   :  { %605 = vset.pattern.permute.xlu0 %v608_v0  ;;  %v42_v1 = vld [vmem:[%s996_s2] sm:$0xff]  ;;  %v601_v3 = vld [vmem:[%s997_s1 + $0x4] sm:$0xf0]  ;;  %606 = vset.pattern.permute.xlu1 %v608_v0  ;;  %v558_v6 = vld [vmem:[%s997_s1 + $0x8] sm:$0xf0] }
   0x2   :  { %v556_v2 = vld [vmem:[%s997_s1] sm:$0xf]  ;;  %69 = vperm.xlu0 %605, %v42_v1   ;;  %v600_v5 = vld [vmem:[%s997_s1 + $0x4] sm:$0xf]  ;;  %607 = vset.pattern.permute.xlu2 %v608_v0  ;;  %v595_v9 = vld [vmem:[%s998_s0 + $0x38] sm:$0xff] }
   0x3   :  { %v557_v4 = vor.u32 %v601_v3, %v556_v2  ;;  %v561_v7 = vor.u32 %v600_v5, %v558_v6  ;;  %v588_v8 = vld [vmem:[%s998_s0] sm:$0xff]  ;;  %v44_v10 = vld [vmem:[%s996_s2 + $0x10] sm:$0xff]  ;;  %v43_v12 = vld [vmem:[%s996_s2 + $0x8] sm:$0xff] }
   0x4   :  { %79 = vperm.xlu1 %606, %v44_v10   ;;  %v46_v11 = vld [vmem:[%s996_s2 + $0x20] sm:$0xff]  ;;  %v45_v13 = vld [vmem:[%s996_s2 + $0x18] sm:$0xff]  ;;  %v47_v14 = vld [vmem:[%s996_s2 + $0x28] sm:$0xff] }
   0x5   :  { %312 = vmatpush.bf16.msra.mxu0 %v557_v4  ;;  %602 = vmatpush.bf16.msra.mxu2 %v557_v4  ;;  %v48_v15 = vld [vmem:[%s996_s2 + $0x30] sm:$0xff]  ;;  %v589_v16 = vld [vmem:[%s998_s0 + $0x8] sm:$0xff]  ;;  %v596_v17 = vld [vmem:[%s998_s0 + $0x40] sm:$0xff] }
   0x6   :  { %385 = vmatpush.bf16.msra.mxu1 %v561_v7  ;;  %603 = vmatpush.bf16.msra.mxu3 %v561_v7  ;;  %v49_v18 = vld [vmem:[%s996_s2 + $0x38] sm:$0xff]  ;;  %v50_v19 = vld [vmem:[%s996_s2 + $0x40] sm:$0xff]  ;;  %v51_v20 = vld [vmem:[%s996_s2 + $0x48] sm:$0xff] }
   0x7   :  { %89 = vperm.xlu2 %607, %v46_v11   ;;  %v52_v21 = vld [vmem:[%s996_s2 + $0x50] sm:$0xff]  ;;  %v53_v22 = vld [vmem:[%s996_s2 + $0x58] sm:$0xff]  ;;  %v54_v23 = vld [vmem:[%s996_s2 + $0x60] sm:$0xff] }
   0x8   :  { %562 = vmatmul.msk.bf16.vlgmr.msra.gmra.mxu0 %vm265_vm0, %v588_v8  ;;  %569 = vmatmul.msk.bf16.vlgmr.msra.gmra.mxu2 %vm265_vm0, %v595_v9  ;;  %v590_v24 = vld [vmem:[%s998_s0 + $0x10] sm:$0xff]  ;;  %v597_v25 = vld [vmem:[%s998_s0 + $0x48] sm:$0xff]  ;;  %v57_v28 = vld [vmem:[%s996_s2 + $0x78] sm:$0xff] }
   0x9   :  { %575 = vmatmul.msk.bf16.vlgmr.msra.gmra.mxu1 %vm265_vm0, %v588_v8  ;;  %582 = vmatmul.msk.bf16.vlgmr.msra.gmra.mxu3 %vm265_vm0, %v595_v9  ;;  %v55_v26 = vld [vmem:[%s996_s2 + $0x68] sm:$0xff]  ;;  %v56_v27 = vld [vmem:[%s996_s2 + $0x70] sm:$0xff]  ;;  %v58_v29 = vld [vmem:[%s996_s2 + $0x80] sm:$0xff] }
   0xa   :  { %74 = vperm.xlu0 %605, %v43_v12   ;;  %v59_v30 = vld [vmem:[%s996_s2 + $0x88] sm:$0xff]  ;;  %v60_v31 = vld [vmem:[%s996_s2 + $0x90] sm:$0xff]  ;;  %v591_v32 = vld [vmem:[%s998_s0 + $0x18] sm:$0xff] }
   0xb   :  { %v598_v33 = vld [vmem:[%s998_s0 + $0x50] sm:$0xff]  ;;  %v61_v34 = vld [vmem:[%s996_s2 + $0x98] sm:$0xff]  ;;  %v62_v35 = vld [vmem:[%s996_s2 + $0xa0] sm:$0xff] }
   0xc   :  { %84 = vperm.xlu1 %606, %v45_v13   ;;  %v63_v36 = vld [vmem:[%s996_s2 + $0xa8] sm:$0xff]  ;;  %v64_v37 = vld [vmem:[%s996_s2 + $0xb0] sm:$0xff]  ;;  %v65_v38 = vld [vmem:[%s996_s2 + $0xb8] sm:$0xff] }
   0xd   :  { %v66_v39 = vld [vmem:[%s996_s2 + $0xc0] sm:$0xff]  ;;  %v599_v41 = vld [vmem:[%s998_s0 + $0x58] sm:$0xff]  ;;  %v593_v44 = vld [vmem:[%s998_s0 + $0x28] sm:$0xff] }
   0xe   :  { %v592_v40 = vld [vmem:[%s998_s0 + $0x20] sm:$0xff]  ;;  %v594_v46 = vld [vmem:[%s998_s0 + $0x30] sm:$0xff] }
   0xf   :  { %94 = vperm.xlu2 %607, %v47_v14   ;;  %v39_v42 = vld [vmem:[%s998_s0 + $0x60] sm:$0xf] }
  0x10   :  { %v241_v43 = vunpack.c.l.b16 %v39_v42 }
  0x12   :  { %99 = vperm.xlu0 %605, %v48_v15   ;;  %v254_v45 = vpack.c.b16 %v241_v43, %v241_v43 }
  0x14   :  { %104 = vperm.xlu1 %606, %v49_v18  }
  0x17   :  { %109 = vperm.xlu2 %607, %v50_v19  }
  0x18   :  { %563 = vmatmul.msk.bf16.gmra.mxu0 %vm265_vm0, %v589_v16  ;;  %570 = vmatmul.msk.bf16.gmra.mxu2 %vm265_vm0, %v596_v17 }
  0x19   :  { %576 = vmatmul.msk.bf16.gmra.mxu1 %vm265_vm0, %v589_v16  ;;  %583 = vmatmul.msk.bf16.gmra.mxu3 %vm265_vm0, %v596_v17 }
  0x1a   :  { %114 = vperm.xlu0 %605, %v51_v20  }
  0x1c   :  { %119 = vperm.xlu1 %606, %v52_v21  }
  0x1f   :  { %124 = vperm.xlu2 %607, %v53_v22  }
  0x22   :  { %129 = vperm.xlu0 %605, %v54_v23  }
  0x24   :  { %134 = vperm.xlu1 %606, %v55_v26  }
  0x27   :  { %139 = vperm.xlu2 %607, %v56_v27  }
  0x28   :  { %564 = vmatmul.msk.bf16.gmra.mxu0 %vm265_vm0, %v590_v24  ;;  %571 = vmatmul.msk.bf16.gmra.mxu2 %vm265_vm0, %v597_v25 }
  0x29   :  { %577 = vmatmul.msk.bf16.gmra.mxu1 %vm265_vm0, %v590_v24  ;;  %584 = vmatmul.msk.bf16.gmra.mxu3 %vm265_vm0, %v597_v25 }
  0x2a   :  { %144 = vperm.xlu0 %605, %v57_v28  }
  0x2c   :  { %149 = vperm.xlu1 %606, %v58_v29  }
  0x2f   :  { %154 = vperm.xlu2 %607, %v59_v30  }
  0x32   :  { %159 = vperm.xlu0 %605, %v60_v31  }
  0x34   :  { %164 = vperm.xlu1 %606, %v61_v34  }
  0x37   :  { %169 = vperm.xlu2 %607, %v62_v35  }
  0x38   :  { %565 = vmatmul.msk.bf16.gmra.mxu0 %vm265_vm0, %v591_v32  ;;  %572 = vmatmul.msk.bf16.gmra.mxu2 %vm265_vm0, %v598_v33 }
  0x39   :  { %578 = vmatmul.msk.bf16.gmra.mxu1 %vm265_vm0, %v591_v32  ;;  %585 = vmatmul.msk.bf16.gmra.mxu3 %vm265_vm0, %v598_v33 }
  0x3a   :  { %174 = vperm.xlu0 %605, %v63_v36  }
  0x3c   :  { %179 = vperm.xlu1 %606, %v64_v37  }
  0x3f   :  { %184 = vperm.xlu2 %607, %v65_v38  }
  0x42   :  { %189 = vperm.xlu0 %605, %v66_v39  }
  0x48   :  { %566 = vmatmul.msk.bf16.gmra.mxu0 %vm265_vm0, %v592_v40  ;;  %573 = vmatmul.msk.bf16.gmra.mxu2 %vm265_vm0, %v599_v41 }
  0x49   :  { %579 = vmatmul.msk.bf16.gmra.mxu1 %vm265_vm0, %v592_v40  ;;  %586 = vmatmul.msk.bf16.gmra.mxu3 %vm265_vm0, %v599_v41 }
  0x58   :  { %567 = vmatmul.msk.bf16.gmra.mxu0 %vm265_vm0, %v593_v44  ;;  %574 = vmatmul.msk.bf16.gmra.mxu2 %vm265_vm0, %v254_v45 }
  0x59   :  { %580 = vmatmul.msk.bf16.gmra.mxu1 %vm265_vm0, %v593_v44  ;;  %587 = vmatmul.msk.bf16.gmra.mxu3 %vm265_vm0, %v254_v45 }
  0x61   :  { %v779_v47 = vpop.permute.xlu2 %89 }
  0x68   :  { %568 = vmatmul.msk.bf16.gmra.mxu0 %vm265_vm0, %v594_v46 }
  0x69   :  { %581 = vmatmul.msk.bf16.gmra.mxu1 %vm265_vm0, %v594_v46  ;;  %v783_v48 = vpop.permute.xlu2 %94 }
  0x71   :  { %v785_v50 = vpop.permute.xlu2 %109 }
  0x74   :  { %v70_v49 = vpop.permute.xlu0 %69 }
  0x76   :  { %v80_v51 = vpop.permute.xlu1 %79 }
  0x79   :  { %v787_v53 = vpop.permute.xlu2 %124 }
  0x7c   :  { %v75_v52 = vpop.permute.xlu0 %74 }
  0x7e   :  { %v85_v54 = vpop.permute.xlu1 %84 }
  0x81   :  { %v140_v61 = vpop.permute.xlu2 %139 }
  0x84   :  { %v789_v55 = vpop.permute.xlu0 %99 }
  0x85   :  { %v314_v56 = vpop.f32.mrf.mxu0 }
  0x86   :  { %v315_v57 = vadd.f32 %v314_v56, %v70_v49  ;;  %v387_v58 = vpop.f32.mrf.mxu1  ;;  %v798_v60 = vpop.permute.xlu1 %104 }
  0x87   :  { %v388_v59 = vadd.f32 %v387_v58, %v70_v49 }
  0x88   :  { %451 = vst [vmem:[%s999_s3] sm:$0xff] %v315_v57 }
  0x89   :  { %453 = vst.msk [vmem:[%s999_s3 + $0x8] sm:$0xff] %vm452_vm1, %v388_v59  ;;  %v155_v29 = vpop.permute.xlu2 %154 }
  0x8b   :  { %v349_v62 = vpop.f32.mrf.mxu2 }
  0x8c   :  { %v422_v63 = vpop.f32.mrf.mxu3  ;;  %v350_v0 = vadd.f32 %v349_v62, %v140_v61  ;;  %v800_v1 = vpop.permute.xlu0 %114 }
  0x8d   :  { %v316_v2 = vpop.f32.mrf.mxu0  ;;  %v423_v3 = vadd.f32 %v422_v63, %v140_v61 }
  0x8e   :  { %v317_v4 = vadd.f32 %v316_v2, %v75_v52  ;;  %v389_v5 = vpop.f32.mrf.mxu1  ;;  %480 = vst [vmem:[%s999_s3 + $0xe0] sm:$0xff] %v350_v0  ;;  %v816_v7 = vpop.permute.xlu1 %119 }
  0x8f   :  { %v390_v6 = vadd.f32 %v389_v5, %v75_v52  ;;  %481 = vst.msk [vmem:[%s999_s3 + $0xe8] sm:$0xff] %vm452_vm1, %v423_v3 }
  0x90   :  { %454 = vst [vmem:[%s999_s3 + $0x10] sm:$0xff] %v317_v4 }
  0x91   :  { %455 = vst.msk [vmem:[%s999_s3 + $0x18] sm:$0xff] %vm452_vm1, %v390_v6  ;;  %v170_v58 = vpop.permute.xlu2 %169 }
  0x93   :  { %v351_v8 = vpop.f32.mrf.mxu2 }
  0x94   :  { %v424_v9 = vpop.f32.mrf.mxu3  ;;  %v818_v10 = vpop.permute.xlu0 %129 }
  0x95   :  { %v319_v11 = vpop.f32.mrf.mxu0 }
  0x96   :  { %v320_v12 = vadd.f32 %v319_v11, %v80_v51  ;;  %v392_v13 = vpop.f32.mrf.mxu1  ;;  %v827_v15 = vpop.permute.xlu1 %134 }
  0x97   :  { %v393_v14 = vadd.f32 %v392_v13, %v80_v51 }
  0x98   :  { %456 = vst [vmem:[%s999_s3 + $0x20] sm:$0xff] %v320_v12 }
  0x99   :  { %457 = vst.msk [vmem:[%s999_s3 + $0x28] sm:$0xff] %vm452_vm1, %v393_v14 }
  0x9b   :  { %v354_v16 = vpop.f32.mrf.mxu2 }
  0x9c   :  { %v427_v17 = vpop.f32.mrf.mxu3  ;;  %v145_v18 = vpop.permute.xlu0 %144 }
  0x9d   :  { %v321_v19 = vpop.f32.mrf.mxu0  ;;  %v352_v20 = vadd.f32 %v351_v8, %v145_v18  ;;  %v425_v21 = vadd.f32 %v424_v9, %v145_v18 }
  0x9e   :  { %v322_v22 = vadd.f32 %v321_v19, %v85_v54  ;;  %v394_v23 = vpop.f32.mrf.mxu1  ;;  %v150_v25 = vpop.permute.xlu1 %149 }
  0x9f   :  { %v395_v24 = vadd.f32 %v394_v23, %v85_v54  ;;  %482 = vst [vmem:[%s999_s3 + $0xf0] sm:$0xff] %v352_v20  ;;  %v355_v26 = vadd.f32 %v354_v16, %v150_v25  ;;  %v428_v27 = vadd.f32 %v427_v17, %v150_v25  ;;  %v185_v23 = vpop.permute.xlu2 %184 }
  0xa0   :  { %483 = vst.msk [vmem:[%s999_s3 + $0xf8] sm:$0xff] %vm452_vm1, %v425_v21 }
  0xa1   :  { %458 = vst [vmem:[%s999_s3 + $0x30] sm:$0xff] %v322_v22 }
  0xa2   :  { %459 = vst.msk [vmem:[%s999_s3 + $0x38] sm:$0xff] %vm452_vm1, %v395_v24 }
  0xa3   :  { %v356_v28 = vpop.f32.mrf.mxu2  ;;  %484 = vst [vmem:[%s999_s3 + $0x100] sm:$0xff] %v355_v26 }
  0xa4   :  { %v429_v30 = vpop.f32.mrf.mxu3  ;;  %v357_v31 = vadd.f32 %v356_v28, %v155_v29  ;;  %485 = vst.msk [vmem:[%s999_s3 + $0x108] sm:$0xff] %vm452_vm1, %v428_v27  ;;  %v160_v37 = vpop.permute.xlu0 %159 }
  0xa5   :  { %v430_v32 = vadd.f32 %v429_v30, %v155_v29  ;;  %v324_v33 = vpop.f32.mrf.mxu0 }
  0xa6   :  { %486 = vst [vmem:[%s999_s3 + $0x110] sm:$0xff] %v357_v31  ;;  %v325_v34 = vadd.f32 %v324_v33, %v779_v47  ;;  %v397_v35 = vpop.f32.mrf.mxu1  ;;  %v165_v46 = vpop.permute.xlu1 %164 }
  0xa7   :  { %487 = vst.msk [vmem:[%s999_s3 + $0x118] sm:$0xff] %vm452_vm1, %v430_v32  ;;  %v398_v36 = vadd.f32 %v397_v35, %v779_v47 }
  0xa8   :  { %460 = vst [vmem:[%s999_s3 + $0x40] sm:$0xff] %v325_v34 }
  0xa9   :  { %461 = vst.msk [vmem:[%s999_s3 + $0x48] sm:$0xff] %vm452_vm1, %v398_v36 }
  0xab   :  { %v359_v38 = vpop.f32.mrf.mxu2 }
  0xac   :  { %v360_v39 = vadd.f32 %v359_v38, %v160_v37  ;;  %v432_v40 = vpop.f32.mrf.mxu3  ;;  %v175_v4 = vpop.permute.xlu0 %174 }
  0xad   :  { %v433_v41 = vadd.f32 %v432_v40, %v160_v37  ;;  %v326_v42 = vpop.f32.mrf.mxu0 }
  0xae   :  { %488 = vst [vmem:[%s999_s3 + $0x120] sm:$0xff] %v360_v39  ;;  %v327_v43 = vadd.f32 %v326_v42, %v783_v48  ;;  %v399_v44 = vpop.f32.mrf.mxu1  ;;  %v180_v14 = vpop.permute.xlu1 %179 }
  0xaf   :  { %489 = vst.msk [vmem:[%s999_s3 + $0x128] sm:$0xff] %vm452_vm1, %v433_v41  ;;  %v400_v45 = vadd.f32 %v399_v44, %v783_v48 }
  0xb0   :  { %462 = vst [vmem:[%s999_s3 + $0x50] sm:$0xff] %v327_v43 }
  0xb1   :  { %463 = vst.msk [vmem:[%s999_s3 + $0x58] sm:$0xff] %vm452_vm1, %v400_v45 }
  0xb3   :  { %v361_v47 = vpop.f32.mrf.mxu2 }
  0xb4   :  { %v362_v49 = vadd.f32 %v361_v47, %v165_v46  ;;  %v434_v51 = vpop.f32.mrf.mxu3  ;;  %v190_v31 = vpop.permute.xlu0 %189 }
  0xb5   :  { %v435_v52 = vadd.f32 %v434_v51, %v165_v46  ;;  %v329_v54 = vpop.f32.mrf.mxu0 }
  0xb6   :  { %490 = vst [vmem:[%s999_s3 + $0x130] sm:$0xff] %v362_v49  ;;  %v330_v48 = vadd.f32 %v329_v54, %v789_v55  ;;  %v402_v56 = vpop.f32.mrf.mxu1 }
  0xb7   :  { %491 = vst.msk [vmem:[%s999_s3 + $0x138] sm:$0xff] %vm452_vm1, %v435_v52  ;;  %v403_v57 = vadd.f32 %v402_v56, %v789_v55 }
  0xb8   :  { %464 = vst [vmem:[%s999_s3 + $0x60] sm:$0xff] %v330_v48 }
  0xb9   :  { %465 = vst.msk [vmem:[%s999_s3 + $0x68] sm:$0xff] %vm452_vm1, %v403_v57 }
  0xbb   :  { %v364_v59 = vpop.f32.mrf.mxu2 }
  0xbc   :  { %v365_v61 = vadd.f32 %v364_v59, %v170_v58  ;;  %v437_v62 = vpop.f32.mrf.mxu3 }
  0xbd   :  { %v438_v63 = vadd.f32 %v437_v62, %v170_v58  ;;  %v331_v0 = vpop.f32.mrf.mxu0 }
  0xbe   :  { %492 = vst [vmem:[%s999_s3 + $0x140] sm:$0xff] %v365_v61  ;;  %v332_v55 = vadd.f32 %v331_v0, %v798_v60  ;;  %v404_v2 = vpop.f32.mrf.mxu1 }
  0xbf   :  { %493 = vst.msk [vmem:[%s999_s3 + $0x148] sm:$0xff] %vm452_vm1, %v438_v63  ;;  %v405_v3 = vadd.f32 %v404_v2, %v798_v60 }
  0xc0   :  { %466 = vst [vmem:[%s999_s3 + $0x70] sm:$0xff] %v332_v55 }
  0xc1   :  { %467 = vst.msk [vmem:[%s999_s3 + $0x78] sm:$0xff] %vm452_vm1, %v405_v3 }
  0xc3   :  { %v366_v5 = vpop.f32.mrf.mxu2 }
  0xc4   :  { %v367_v6 = vadd.f32 %v366_v5, %v175_v4  ;;  %v439_v8 = vpop.f32.mrf.mxu3 }
  0xc5   :  { %v440_v9 = vadd.f32 %v439_v8, %v175_v4  ;;  %v334_v11 = vpop.f32.mrf.mxu0 }
  0xc6   :  { %494 = vst [vmem:[%s999_s3 + $0x150] sm:$0xff] %v367_v6  ;;  %v335_v60 = vadd.f32 %v334_v11, %v785_v50  ;;  %v407_v12 = vpop.f32.mrf.mxu1 }
  0xc7   :  { %495 = vst.msk [vmem:[%s999_s3 + $0x158] sm:$0xff] %vm452_vm1, %v440_v9  ;;  %v408_v13 = vadd.f32 %v407_v12, %v785_v50 }
  0xc8   :  { %468 = vst [vmem:[%s999_s3 + $0x80] sm:$0xff] %v335_v60 }
  0xc9   :  { %469 = vst.msk [vmem:[%s999_s3 + $0x88] sm:$0xff] %vm452_vm1, %v408_v13 }
  0xcb   :  { %v369_v16 = vpop.f32.mrf.mxu2 }
  0xcc   :  { %v370_v17 = vadd.f32 %v369_v16, %v180_v14  ;;  %v442_v18 = vpop.f32.mrf.mxu3 }
  0xcd   :  { %v443_v19 = vadd.f32 %v442_v18, %v180_v14  ;;  %v336_v20 = vpop.f32.mrf.mxu0 }
  0xce   :  { %496 = vst [vmem:[%s999_s3 + $0x160] sm:$0xff] %v370_v17  ;;  %v337_v50 = vadd.f32 %v336_v20, %v800_v1  ;;  %v409_v21 = vpop.f32.mrf.mxu1 }
  0xcf   :  { %497 = vst.msk [vmem:[%s999_s3 + $0x168] sm:$0xff] %vm452_vm1, %v443_v19  ;;  %v410_v22 = vadd.f32 %v409_v21, %v800_v1 }
  0xd0   :  { %470 = vst [vmem:[%s999_s3 + $0x90] sm:$0xff] %v337_v50 }
  0xd1   :  { %471 = vst.msk [vmem:[%s999_s3 + $0x98] sm:$0xff] %vm452_vm1, %v410_v22 }
  0xd3   :  { %v371_v24 = vpop.f32.mrf.mxu2 }
  0xd4   :  { %v372_v25 = vadd.f32 %v371_v24, %v185_v23  ;;  %v444_v26 = vpop.f32.mrf.mxu3 }
  0xd5   :  { %v445_v27 = vadd.f32 %v444_v26, %v185_v23  ;;  %v339_v28 = vpop.f32.mrf.mxu0 }
  0xd6   :  { %498 = vst [vmem:[%s999_s3 + $0x170] sm:$0xff] %v372_v25  ;;  %v340_v1 = vadd.f32 %v339_v28, %v816_v7  ;;  %v412_v29 = vpop.f32.mrf.mxu1 }
  0xd7   :  { %499 = vst.msk [vmem:[%s999_s3 + $0x178] sm:$0xff] %vm452_vm1, %v445_v27  ;;  %v413_v30 = vadd.f32 %v412_v29, %v816_v7 }
  0xd8   :  { %472 = vst [vmem:[%s999_s3 + $0xa0] sm:$0xff] %v340_v1 }
  0xd9   :  { %473 = vst.msk [vmem:[%s999_s3 + $0xa8] sm:$0xff] %vm452_vm1, %v413_v30 }
  0xdb   :  { %v374_v32 = vpop.f32.mrf.mxu2 }
  0xdc   :  { %v375_v33 = vadd.f32 %v374_v32, %v190_v31  ;;  %v447_v34 = vpop.f32.mrf.mxu3 }
  0xdd   :  { %v448_v35 = vadd.f32 %v447_v34, %v190_v31  ;;  %v341_v36 = vpop.f32.mrf.mxu0 }
  0xde   :  { %500 = vst [vmem:[%s999_s3 + $0x180] sm:$0xff] %v375_v33  ;;  %v342_v7 = vadd.f32 %v341_v36, %v787_v53  ;;  %v414_v37 = vpop.f32.mrf.mxu1 }
  0xdf   :  { %501 = vst.msk [vmem:[%s999_s3 + $0x188] sm:$0xff] %vm452_vm1, %v448_v35  ;;  %v415_v38 = vadd.f32 %v414_v37, %v787_v53 }
  0xe0   :  { %474 = vst [vmem:[%s999_s3 + $0xb0] sm:$0xff] %v342_v7 }
  0xe1   :  { %475 = vst.msk [vmem:[%s999_s3 + $0xb8] sm:$0xff] %vm452_vm1, %v415_v38 }
  0xe3   :  { %v376_v39 = vpop.f32.mrf.mxu2 }
  0xe4   :  { %v449_v40 = vpop.f32.mrf.mxu3 }
  0xe5   :  { %v344_v41 = vpop.f32.mrf.mxu0 }
  0xe6   :  { %v345_v42 = vadd.f32 %v344_v41, %v818_v10  ;;  %v417_v43 = vpop.f32.mrf.mxu1 }
  0xe7   :  { %v418_v44 = vadd.f32 %v417_v43, %v818_v10 }
  0xe8   :  { %476 = vst [vmem:[%s999_s3 + $0xc0] sm:$0xff] %v345_v42 }
  0xe9   :  { %477 = vst.msk [vmem:[%s999_s3 + $0xc8] sm:$0xff] %vm452_vm1, %v418_v44 }
  0xed   :  { %v346_v53 = vpop.f32.mrf.mxu0 }
  0xee   :  { %v347_v45 = vadd.f32 %v346_v53, %v827_v15  ;;  %v419_v46 = vpop.f32.mrf.mxu1 }
  0xef   :  { %v420_v47 = vadd.f32 %v419_v46, %v827_v15 }
  0xf0   :  { %478 = vst [vmem:[%s999_s3 + $0xd0] sm:$0xff] %v347_v45 }
  0xf1   :  { %479 = vst.msk [vmem:[%s999_s3 + $0xd8] sm:$0xff] %vm452_vm1, %v420_v47 }

// kernel: ae_forward.13
= control target key start
LH: loop header
LB: loop body
LE: loop exit
PB: predicated region body
PF: predicated region fallthrough
CT: control target
= control target key end

     0   :  { %v467_v2 = vmov 0   ;;  %vm126_vm0 = vcmask 1043456   ;;  %vm113_vm1 = vcmask 64512   ;;  %vm357_vm2 = vcmask 932864   ;;  %s819_s1 = inlined_call_operand.vmem [shape: bf16[8,882], index: 1, kind: input, shape index: {}]   ;;  %s820_s2 = inlined_call_operand.vmem [shape: f32[64,1], index: 2, kind: input, shape index: {}]   ;;  %s821_s0 = inlined_call_operand.vmem [shape: bf16[64,8], index: 0, kind: input, shape index: {}]   ;;  %s822_s3 = inlined_call_operand.vmem [shape: f32[64,882], index: 3, kind: output, shape index: {}]  }
   0x1   :  { %v23_v0 = vld [vmem:[%s819_s1] sm:$0xff]  ;;  %v24_v1 = vld [vmem:[%s819_s1 + $0x8] sm:$0xff]  ;;  %465 = vset.pattern.permute.xlu1 %v467_v2  ;;  %464 = vset.pattern.permute.xlu0 %v467_v2  ;;  %v26_v7 = vld [vmem:[%s819_s1 + $0x18] sm:$0xf] }
   0x2   :  { %v99_v3 = vunpack.c.l.b16 %v23_v0  ;;  %v100_v4 = vunpack.c.h.b16 %v23_v0  ;;  %v101_v5 = vunpack.c.l.b16 %v24_v1  ;;  %v102_v6 = vunpack.c.h.b16 %v24_v1  ;;  %v25_v8 = vld [vmem:[%s819_s1 + $0x10] sm:$0xff]  ;;  %466 = vset.pattern.permute.xlu2 %v467_v2  ;;  %v27_v12 = vld [vmem:[%s820_s2] sm:$0xff]  ;;  %v457_v23 = vld [vmem:[%s821_s0 + $0x8] sm:$0xff] }
   0x3   :  { %v105_v9 = vunpack.c.l.b16 %v26_v7  ;;  %v104_v10 = vunpack.c.h.b16 %v25_v8  ;;  %v29_v11 = vld [vmem:[%s820_s2 + $0x10] sm:$0xff]  ;;  %37 = vperm.xlu0 %464, %v27_v12   ;;  %v456_v22 = vld [vmem:[%s821_s0] sm:$0xff]  ;;  %v30_v27 = vld [vmem:[%s820_s2 + $0x18] sm:$0xff]  ;;  %v103_v29 = vunpack.c.l.b16 %v25_v8 }
   0x4   :  { %v106_v13 = vpack.c.b16 %v99_v3, %v99_v3  ;;  %v107_v14 = vpack.c.b16 %v100_v4, %v100_v4  ;;  %v108_v15 = vpack.c.b16 %v101_v5, %v101_v5  ;;  %v109_v16 = vpack.c.b16 %v102_v6, %v102_v6  ;;  %47 = vperm.xlu1 %465, %v29_v11   ;;  %v28_v28 = vld [vmem:[%s820_s2 + $0x8] sm:$0xff]  ;;  %v458_v31 = vld [vmem:[%s821_s0 + $0x10] sm:$0xff]  ;;  %v31_v34 = vld [vmem:[%s820_s2 + $0x20] sm:$0xff] }
   0x5   :  { %v112_v17 = vpack.c.b16 %v105_v9, %v105_v9  ;;  %v111_v18 = vpack.c.b16 %v104_v10, %v104_v10  ;;  %v110_v30 = vpack.c.b16 %v103_v29, %v103_v29  ;;  %v33_v33 = vld [vmem:[%s820_s2 + $0x30] sm:$0xff]  ;;  %v34_v35 = vld [vmem:[%s820_s2 + $0x38] sm:$0xff]  ;;  %57 = vperm.xlu2 %466, %v31_v34   ;;  %v32_v36 = vld [vmem:[%s820_s2 + $0x28] sm:$0xff] }
   0x6   :  { %v128_v19 = vsel %vm126_vm0, %v106_v13, 0  ;;  %v131_v20 = vsel %vm126_vm0, %v107_v14, 0  ;;  %v134_v21 = vsel %vm126_vm0, %v108_v15, 0  ;;  %v137_v24 = vsel %vm126_vm0, %v109_v16, 0  ;;  %v459_v37 = vld [vmem:[%s821_s0 + $0x18] sm:$0xff] }
   0x7   :  { %155 = vmatpush.bf16.msra.mxu0 %v128_v19  ;;  %460 = vmatpush.bf16.msra.mxu3 %v128_v19  ;;  %v146_v25 = vsel %vm126_vm0, %v112_v17, 0  ;;  %v143_v26 = vsel %vm126_vm0, %v111_v18, 0  ;;  %v140_v32 = vsel %vm126_vm0, %v110_v30, 0 }
   0x8   :  { %461 = vmatpush.bf16.msra.mxu1 %v131_v20  ;;  %462 = vmatpush.bf16.msra.mxu2 %v134_v21 }
   0xa   :  { %428 = vmatmul.msk.bf16.vlgmr.msra.gmra.mxu0 %vm113_vm1, %v456_v22  ;;  %429 = vmatmul.msk.bf16.vlgmr.msra.gmra.mxu3 %vm113_vm1, %v457_v23 }
   0xb   :  { %242 = vmatpush.bf16.msrb.mxu3 %v137_v24  ;;  %433 = vmatmul.msk.bf16.vlgmr.msra.gmra.mxu1 %vm113_vm1, %v457_v23 }
   0xc   :  { %329 = vmatpush.bf16.msrb.mxu2 %v146_v25  ;;  %184 = vmatpush.bf16.msrb.mxu0 %v131_v20 }
   0xd   :  { %437 = vmatmul.msk.bf16.vlgmr.msra.gmra.mxu2 %vm113_vm1, %v457_v23  ;;  %300 = vmatpush.bf16.msrb.mxu1 %v143_v26 }
   0xe   :  { %52 = vperm.xlu1 %465, %v30_v27   ;;  %42 = vperm.xlu0 %464, %v28_v28  }
   0xf   :  { %62 = vperm.xlu2 %466, %v32_v36  }
  0x10   :  { %213 = vmatpush.bf16.msra.mxu0 %v134_v21 }
  0x16   :  { %67 = vperm.xlu0 %464, %v33_v33   ;;  %72 = vperm.xlu1 %465, %v34_v35  }
  0x1a   :  { %430 = vmatmul.msk.bf16.gmra.mxu3 %vm113_vm1, %v458_v31  ;;  %432 = vmatmul.msk.bf16.vlgmr.msrb.gmra.mxu0 %vm113_vm1, %v456_v22 }
  0x1b   :  { %434 = vmatmul.msk.bf16.gmra.mxu1 %vm113_vm1, %v458_v31  ;;  %271 = vmatpush.bf16.msrb.mxu0 %v140_v32 }
  0x1d   :  { %438 = vmatmul.msk.bf16.gmra.mxu2 %vm113_vm1, %v458_v31 }
  0x2a   :  { %431 = vmatmul.msk.bf16.gmra.mxu3 %vm113_vm1, %v459_v37  ;;  %436 = vmatmul.msk.bf16.vlgmr.msra.gmra.mxu0 %vm113_vm1, %v456_v22 }
  0x2b   :  { %435 = vmatmul.msk.bf16.gmra.mxu1 %vm113_vm1, %v459_v37 }
  0x2d   :  { %439 = vmatmul.msk.bf16.gmra.mxu2 %vm113_vm1, %v459_v37 }
  0x3a   :  { %440 = vmatmul.msk.bf16.vlgmr.msrb.gmra.mxu3 %vm113_vm1, %v456_v22  ;;  %444 = vmatmul.msk.bf16.vlgmr.msrb.gmra.mxu0 %vm113_vm1, %v456_v22 }
  0x3b   :  { %448 = vmatmul.msk.bf16.vlgmr.msrb.gmra.mxu1 %vm113_vm1, %v456_v22 }
  0x3d   :  { %452 = vmatmul.msk.bf16.vlgmr.msrb.gmra.mxu2 %vm113_vm1, %v456_v22 }
  0x4a   :  { %441 = vmatmul.msk.bf16.gmra.mxu3 %vm113_vm1, %v457_v23  ;;  %445 = vmatmul.msk.bf16.gmra.mxu0 %vm113_vm1, %v457_v23 }
  0x4b   :  { %449 = vmatmul.msk.bf16.gmra.mxu1 %vm113_vm1, %v457_v23 }
  0x4d   :  { %453 = vmatmul.msk.bf16.gmra.mxu2 %vm113_vm1, %v457_v23 }
  0x5a   :  { %442 = vmatmul.msk.bf16.gmra.mxu3 %vm113_vm1, %v458_v31  ;;  %446 = vmatmul.msk.bf16.gmra.mxu0 %vm113_vm1, %v458_v31 }
  0x5b   :  { %450 = vmatmul.msk.bf16.gmra.mxu1 %vm113_vm1, %v458_v31 }
  0x5d   :  { %454 = vmatmul.msk.bf16.gmra.mxu2 %vm113_vm1, %v458_v31 }
  0x5f   :  { %v603_v54 = vpop.permute.xlu2 %57 }
  0x69   :  { %v622_v2 = vpop.permute.xlu2 %62 }
  0x6a   :  { %443 = vmatmul.msk.bf16.gmra.mxu3 %vm113_vm1, %v459_v37  ;;  %447 = vmatmul.msk.bf16.gmra.mxu0 %vm113_vm1, %v459_v37 }
  0x6b   :  { %451 = vmatmul.msk.bf16.gmra.mxu1 %vm113_vm1, %v459_v37 }
  0x6d   :  { %455 = vmatmul.msk.bf16.gmra.mxu2 %vm113_vm1, %v459_v37 }
  0x75   :  { %v571_v38 = vpop.permute.xlu0 %37 }
  0x76   :  { %v573_v39 = vpop.permute.xlu1 %47 }
  0x80   :  { %v583_v45 = vpop.permute.xlu0 %42  ;;  %v586_v48 = vpop.permute.xlu1 %52 }
  0x87   :  { %v157_v40 = vpop.f32.mrf.mxu0 }
  0x88   :  { %v158_v41 = vadd.f32 %v157_v40, %v571_v38  ;;  %v191_v42 = vpop.f32.mrf.mxu1  ;;  %v640_v11 = vpop.permute.xlu0 %67 }
  0x89   :  { %v192_v43 = vadd.f32 %v191_v42, %v573_v39  ;;  %v658_v20 = vpop.permute.xlu1 %72 }
  0x8a   :  { %351 = vst [vmem:[%s822_s3] sm:$0xff] %v158_v41 }
  0x8b   :  { %367 = vst [vmem:[%s822_s3 + $0x78] sm:$0xff] %v192_v43 }
  0x8d   :  { %v162_v44 = vpop.f32.mrf.mxu3 }
  0x8e   :  { %v163_v46 = vadd.f32 %v162_v44, %v573_v39 }
  0x8f   :  { %v159_v50 = vpop.f32.mrf.mxu0 }
  0x90   :  { %v220_v47 = vpop.f32.mrf.mxu2  ;;  %366 = vst [vmem:[%s822_s3 + $0x70] sm:$0xff] %v163_v46  ;;  %v160_v51 = vadd.f32 %v159_v50, %v583_v45  ;;  %v193_v52 = vpop.f32.mrf.mxu1 }
  0x91   :  { %v221_v49 = vadd.f32 %v220_v47, %v573_v39  ;;  %v194_v53 = vadd.f32 %v193_v52, %v586_v48 }
  0x92   :  { %359 = vst [vmem:[%s822_s3 + $0x38] sm:$0xff] %v160_v51 }
  0x93   :  { %368 = vst [vmem:[%s822_s3 + $0x80] sm:$0xff] %v221_v49 }
  0x94   :  { %374 = vst [vmem:[%s822_s3 + $0xb0] sm:$0xff] %v194_v53 }
  0x95   :  { %v164_v55 = vpop.f32.mrf.mxu3 }
  0x96   :  { %v165_v56 = vadd.f32 %v164_v55, %v586_v48 }
  0x97   :  { %v186_v59 = vpop.f32.mrf.mxu0 }
  0x98   :  { %v222_v57 = vpop.f32.mrf.mxu2  ;;  %373 = vst [vmem:[%s822_s3 + $0xa8] sm:$0xff] %v165_v56  ;;  %v187_v60 = vadd.f32 %v186_v59, %v571_v38  ;;  %v196_v61 = vpop.f32.mrf.mxu1 }
  0x99   :  { %v223_v58 = vadd.f32 %v222_v57, %v586_v48  ;;  %v197_v62 = vadd.f32 %v196_v61, %v603_v54 }
  0x9a   :  { %352 = vst [vmem:[%s822_s3 + $0x8] sm:$0xff] %v187_v60 }
  0x9b   :  { %375 = vst [vmem:[%s822_s3 + $0xb8] sm:$0xff] %v223_v58 }
  0x9c   :  { %381 = vst [vmem:[%s822_s3 + $0xe8] sm:$0xff] %v197_v62 }
  0x9d   :  { %v167_v63 = vpop.f32.mrf.mxu3 }
  0x9e   :  { %v168_v0 = vadd.f32 %v167_v63, %v603_v54 }
  0x9f   :  { %v188_v4 = vpop.f32.mrf.mxu0 }
  0xa0   :  { %v225_v1 = vpop.f32.mrf.mxu2  ;;  %380 = vst [vmem:[%s822_s3 + $0xe0] sm:$0xff] %v168_v0  ;;  %v189_v5 = vadd.f32 %v188_v4, %v583_v45  ;;  %v198_v6 = vpop.f32.mrf.mxu1 }
  0xa1   :  { %v226_v3 = vadd.f32 %v225_v1, %v603_v54  ;;  %v199_v7 = vadd.f32 %v198_v6, %v622_v2 }
  0xa2   :  { %360 = vst [vmem:[%s822_s3 + $0x40] sm:$0xff] %v189_v5 }
  0xa3   :  { %382 = vst [vmem:[%s822_s3 + $0xf0] sm:$0xff] %v226_v3 }
  0xa4   :  { %388 = vst [vmem:[%s822_s3 + $0x120] sm:$0xff] %v199_v7 }
  0xa5   :  { %v169_v8 = vpop.f32.mrf.mxu3 }
  0xa6   :  { %v170_v9 = vadd.f32 %v169_v8, %v622_v2 }
  0xa7   :  { %v215_v13 = vpop.f32.mrf.mxu0 }
  0xa8   :  { %v227_v10 = vpop.f32.mrf.mxu2  ;;  %387 = vst [vmem:[%s822_s3 + $0x118] sm:$0xff] %v170_v9  ;;  %v201_v14 = vpop.f32.mrf.mxu1  ;;  %v216_v15 = vadd.f32 %v215_v13, %v571_v38 }
  0xa9   :  { %v228_v12 = vadd.f32 %v227_v10, %v622_v2  ;;  %v202_v16 = vadd.f32 %v201_v14, %v640_v11 }
  0xaa   :  { %353 = vst [vmem:[%s822_s3 + $0x10] sm:$0xff] %v216_v15 }
  0xab   :  { %389 = vst [vmem:[%s822_s3 + $0x128] sm:$0xff] %v228_v12 }
  0xac   :  { %395 = vst [vmem:[%s822_s3 + $0x158] sm:$0xff] %v202_v16 }
  0xad   :  { %v172_v17 = vpop.f32.mrf.mxu3 }
  0xae   :  { %v173_v18 = vadd.f32 %v172_v17, %v640_v11 }
  0xaf   :  { %v217_v22 = vpop.f32.mrf.mxu0 }
  0xb0   :  { %v230_v19 = vpop.f32.mrf.mxu2  ;;  %394 = vst [vmem:[%s822_s3 + $0x150] sm:$0xff] %v173_v18  ;;  %v203_v23 = vpop.f32.mrf.mxu1  ;;  %v218_v24 = vadd.f32 %v217_v22, %v583_v45 }
  0xb1   :  { %v231_v21 = vadd.f32 %v230_v19, %v640_v11  ;;  %v204_v25 = vadd.f32 %v203_v23, %v658_v20 }
  0xb2   :  { %361 = vst [vmem:[%s822_s3 + $0x48] sm:$0xff] %v218_v24 }
  0xb3   :  { %396 = vst [vmem:[%s822_s3 + $0x160] sm:$0xff] %v231_v21 }
  0xb4   :  { %402 = vst [vmem:[%s822_s3 + $0x190] sm:$0xff] %v204_v25 }
  0xb5   :  { %v174_v26 = vpop.f32.mrf.mxu3 }
  0xb6   :  { %v175_v27 = vadd.f32 %v174_v26, %v658_v20 }
  0xb7   :  { %v273_v30 = vpop.f32.mrf.mxu0 }
  0xb8   :  { %v232_v28 = vpop.f32.mrf.mxu2  ;;  %401 = vst [vmem:[%s822_s3 + $0x188] sm:$0xff] %v175_v27  ;;  %v274_v31 = vadd.f32 %v273_v30, %v571_v38  ;;  %v302_v32 = vpop.f32.mrf.mxu1 }
  0xb9   :  { %v233_v29 = vadd.f32 %v232_v28, %v658_v20  ;;  %v303_v33 = vadd.f32 %v302_v32, %v571_v38 }
  0xba   :  { %355 = vst [vmem:[%s822_s3 + $0x20] sm:$0xff] %v274_v31 }
  0xbb   :  { %403 = vst [vmem:[%s822_s3 + $0x198] sm:$0xff] %v233_v29 }
  0xbc   :  { %356 = vst [vmem:[%s822_s3 + $0x28] sm:$0xff] %v303_v33 }
  0xbd   :  { %v244_v34 = vpop.f32.mrf.mxu3 }
  0xbe   :  { %v245_v35 = vadd.f32 %v244_v34, %v571_v38 }
  0xbf   :  { %v275_v40 = vpop.f32.mrf.mxu0 }
  0xc0   :  { %v331_v36 = vpop.f32.mrf.mxu2  ;;  %354 = vst [vmem:[%s822_s3 + $0x18] sm:$0xff] %v245_v35  ;;  %v276_v41 = vadd.f32 %v275_v40, %v583_v45  ;;  %v304_v42 = vpop.f32.mrf.mxu1 }
  0xc1   :  { %v332_v37 = vadd.f32 %v331_v36, %v571_v38  ;;  %v305_v43 = vadd.f32 %v304_v42, %v583_v45 }
  0xc2   :  { %363 = vst [vmem:[%s822_s3 + $0x58] sm:$0xff] %v276_v41 }
  0xc3   :  { %358 = vst.msk [vmem:[%s822_s3 + $0x30] sm:$0xff] %vm357_vm2, %v332_v37 }
  0xc4   :  { %364 = vst [vmem:[%s822_s3 + $0x60] sm:$0xff] %v305_v43 }
  0xc5   :  { %v246_v38 = vpop.f32.mrf.mxu3 }
  0xc6   :  { %v247_v44 = vadd.f32 %v246_v38, %v583_v45 }
  0xc7   :  { %v278_v49 = vpop.f32.mrf.mxu0 }
  0xc8   :  { %v333_v46 = vpop.f32.mrf.mxu2  ;;  %362 = vst [vmem:[%s822_s3 + $0x50] sm:$0xff] %v247_v44  ;;  %v279_v50 = vadd.f32 %v278_v49, %v573_v39  ;;  %v307_v51 = vpop.f32.mrf.mxu1 }
  0xc9   :  { %v334_v47 = vadd.f32 %v333_v46, %v583_v45  ;;  %v308_v52 = vadd.f32 %v307_v51, %v573_v39 }
  0xca   :  { %370 = vst [vmem:[%s822_s3 + $0x90] sm:$0xff] %v279_v50 }
  0xcb   :  { %365 = vst.msk [vmem:[%s822_s3 + $0x68] sm:$0xff] %vm357_vm2, %v334_v47 }
  0xcc   :  { %371 = vst [vmem:[%s822_s3 + $0x98] sm:$0xff] %v308_v52 }
  0xcd   :  { %v249_v45 = vpop.f32.mrf.mxu3 }
  0xce   :  { %v250_v53 = vadd.f32 %v249_v45, %v573_v39 }
  0xcf   :  { %v280_v57 = vpop.f32.mrf.mxu0 }
  0xd0   :  { %v336_v55 = vpop.f32.mrf.mxu2  ;;  %369 = vst [vmem:[%s822_s3 + $0x88] sm:$0xff] %v250_v53  ;;  %v281_v58 = vadd.f32 %v280_v57, %v586_v48  ;;  %v309_v59 = vpop.f32.mrf.mxu1 }
  0xd1   :  { %v337_v56 = vadd.f32 %v336_v55, %v573_v39  ;;  %v310_v60 = vadd.f32 %v309_v59, %v586_v48 }
  0xd2   :  { %377 = vst [vmem:[%s822_s3 + $0xc8] sm:$0xff] %v281_v58 }
  0xd3   :  { %372 = vst.msk [vmem:[%s822_s3 + $0xa0] sm:$0xff] %vm357_vm2, %v337_v56 }
  0xd4   :  { %378 = vst [vmem:[%s822_s3 + $0xd0] sm:$0xff] %v310_v60 }
  0xd5   :  { %v251_v39 = vpop.f32.mrf.mxu3 }
  0xd6   :  { %v252_v61 = vadd.f32 %v251_v39, %v586_v48 }
  0xd7   :  { %v283_v0 = vpop.f32.mrf.mxu0 }
  0xd8   :  { %v338_v62 = vpop.f32.mrf.mxu2  ;;  %376 = vst [vmem:[%s822_s3 + $0xc0] sm:$0xff] %v252_v61  ;;  %v284_v1 = vadd.f32 %v283_v0, %v603_v54  ;;  %v312_v3 = vpop.f32.mrf.mxu1 }
  0xd9   :  { %v339_v63 = vadd.f32 %v338_v62, %v586_v48  ;;  %v313_v4 = vadd.f32 %v312_v3, %v603_v54 }
  0xda   :  { %384 = vst [vmem:[%s822_s3 + $0x100] sm:$0xff] %v284_v1 }
  0xdb   :  { %379 = vst.msk [vmem:[%s822_s3 + $0xd8] sm:$0xff] %vm357_vm2, %v339_v63 }
  0xdc   :  { %385 = vst [vmem:[%s822_s3 + $0x108] sm:$0xff] %v313_v4 }
  0xdd   :  { %v254_v48 = vpop.f32.mrf.mxu3 }
  0xde   :  { %v255_v5 = vadd.f32 %v254_v48, %v603_v54 }
  0xdf   :  { %v285_v8 = vpop.f32.mrf.mxu0 }
  0xe0   :  { %v341_v6 = vpop.f32.mrf.mxu2  ;;  %383 = vst [vmem:[%s822_s3 + $0xf8] sm:$0xff] %v255_v5  ;;  %v286_v9 = vadd.f32 %v285_v8, %v622_v2  ;;  %v314_v10 = vpop.f32.mrf.mxu1 }
  0xe1   :  { %v342_v7 = vadd.f32 %v341_v6, %v603_v54  ;;  %v315_v12 = vadd.f32 %v314_v10, %v622_v2 }
  0xe2   :  { %391 = vst [vmem:[%s822_s3 + $0x138] sm:$0xff] %v286_v9 }
  0xe3   :  { %386 = vst.msk [vmem:[%s822_s3 + $0x110] sm:$0xff] %vm357_vm2, %v342_v7 }
  0xe4   :  { %392 = vst [vmem:[%s822_s3 + $0x140] sm:$0xff] %v315_v12 }
  0xe5   :  { %v256_v54 = vpop.f32.mrf.mxu3 }
  0xe6   :  { %v257_v13 = vadd.f32 %v256_v54, %v622_v2 }
  0xe7   :  { %v288_v16 = vpop.f32.mrf.mxu0 }
  0xe8   :  { %v343_v14 = vpop.f32.mrf.mxu2  ;;  %390 = vst [vmem:[%s822_s3 + $0x130] sm:$0xff] %v257_v13  ;;  %v289_v17 = vadd.f32 %v288_v16, %v640_v11  ;;  %v317_v18 = vpop.f32.mrf.mxu1 }
  0xe9   :  { %v344_v15 = vadd.f32 %v343_v14, %v622_v2  ;;  %v318_v19 = vadd.f32 %v317_v18, %v640_v11 }
  0xea   :  { %398 = vst [vmem:[%s822_s3 + $0x170] sm:$0xff] %v289_v17 }
  0xeb   :  { %393 = vst.msk [vmem:[%s822_s3 + $0x148] sm:$0xff] %vm357_vm2, %v344_v15 }
  0xec   :  { %399 = vst [vmem:[%s822_s3 + $0x178] sm:$0xff] %v318_v19 }
  0xed   :  { %v259_v2 = vpop.f32.mrf.mxu3 }
  0xee   :  { %v260_v21 = vadd.f32 %v259_v2, %v640_v11 }
  0xef   :  { %v290_v24 = vpop.f32.mrf.mxu0 }
  0xf0   :  { %v346_v22 = vpop.f32.mrf.mxu2  ;;  %397 = vst [vmem:[%s822_s3 + $0x168] sm:$0xff] %v260_v21  ;;  %v291_v25 = vadd.f32 %v290_v24, %v658_v20  ;;  %v319_v26 = vpop.f32.mrf.mxu1 }
  0xf1   :  { %v347_v23 = vadd.f32 %v346_v22, %v640_v11  ;;  %v320_v27 = vadd.f32 %v319_v26, %v658_v20 }
  0xf2   :  { %405 = vst [vmem:[%s822_s3 + $0x1a8] sm:$0xff] %v291_v25 }
  0xf3   :  { %400 = vst.msk [vmem:[%s822_s3 + $0x180] sm:$0xff] %vm357_vm2, %v347_v23 }
  0xf4   :  { %406 = vst [vmem:[%s822_s3 + $0x1b0] sm:$0xff] %v320_v27 }
  0xf5   :  { %v261_v11 = vpop.f32.mrf.mxu3 }
  0xf6   :  { %v262_v28 = vadd.f32 %v261_v11, %v658_v20 }
  0xf8   :  { %v348_v29 = vpop.f32.mrf.mxu2  ;;  %404 = vst [vmem:[%s822_s3 + $0x1a0] sm:$0xff] %v262_v28 }
  0xf9   :  { %v349_v30 = vadd.f32 %v348_v29, %v658_v20 }
  0xfb   :  { %407 = vst.msk [vmem:[%s822_s3 + $0x1b8] sm:$0xff] %vm357_vm2, %v349_v30 }

</bundles_post_ra>
